<compile_context>
chip_gen: v5e
topology: v5e:2x2
jax: 0.10.0
libtpu: 0.0.40
codegen_flags: <defaults>
</compile_context>

<pallas_src>
import functools

import jax
import jax.numpy as jnp
from jax.experimental import pallas as pl
from jax.experimental.pallas import tpu as pltpu


_EPS = 1e-5
_COMPUTE_DTYPE = jnp.bfloat16     # MXU operand / inter-kernel activation dtype


# ----------------------------------------------------------------------------
# Helpers
# ----------------------------------------------------------------------------
@functools.lru_cache(maxsize=None)
def _vmem_limit_bytes():
    """~3/4 of physical VMEM (96 MiB on v5e/v6e, 48 MiB on v7x)."""
    cap = 64 * 1024 * 1024
    try:
        info = pltpu.get_tpu_info()
        cap = int(getattr(info, "vmem_capacity_bytes", cap) or cap)
    except Exception:
        pass
    return max(32 * 1024 * 1024, (cap * 3) // 4)


def _cparams(*sems):
    return pltpu.CompilerParams(dimension_semantics=tuple(sems),
                                vmem_limit_bytes=_vmem_limit_bytes())


def _row_tiling(m, preferred=512):
    """(row_tile, padded_rows): pad M up to a tile multiple instead of one big block."""
    if m <= preferred:
        return m, m
    pm = ((m + preferred - 1) // preferred) * preferred
    return preferred, pm


def _pick_seq_tile(s, preferred=256):
    if s <= preferred:
        return s
    for t in (preferred, 128, 64, 32, 16, 8):
        if s % t == 0:
            return t
    return s   # TODO(synk): pad ragged sequence lengths instead of one full block.


def _pick_col_tile(f, preferred=1024):
    if f <= preferred:
        return f
    for t in (preferred, 512, 256, 128):
        if f % t == 0:
            return t
    return f


def _const_spec(shape):
    """Grid-invariant block: constant index_map + single buffer (saves VMEM)."""
    return pl.BlockSpec(shape, lambda *_: (0,) * len(shape),
                        pipeline_mode=pl.Buffered(1))


def _layernorm_f32(x, g, b):
    mean = jnp.mean(x, axis=-1, keepdims=True)
    var = jnp.mean((x - mean) ** 2, axis=-1, keepdims=True)
    return (x - mean) * jax.lax.rsqrt(var + _EPS) * g + b


def _pad_rows(x2d, pm):
    m = x2d.shape[0]
    return x2d if pm == m else jnp.pad(x2d, ((0, pm - m), (0, 0)))


# ----------------------------------------------------------------------------
# Kernel 1: LayerNorm + fused Q/K/V projections (self-attention path)
# ----------------------------------------------------------------------------
def _ln_qkv_kernel(x_ref, g_ref, b_ref, wq_ref, wk_ref, wv_ref,
                   q_ref, k_ref, v_ref):
    x = x_ref[...].astype(jnp.float32)
    xn = _layernorm_f32(x, g_ref[...], b_ref[...]).astype(wq_ref.dtype)   # bf16 MXU operand
    q_ref[...] = jnp.dot(xn, wq_ref[...],
                         preferred_element_type=jnp.float32).astype(q_ref.dtype)
    k_ref[...] = jnp.dot(xn, wk_ref[...],
                         preferred_element_type=jnp.float32).astype(k_ref.dtype)
    v_ref[...] = jnp.dot(xn, wv_ref[...],
                         preferred_element_type=jnp.float32).astype(v_ref.dtype)


def ln_qkv(x2d, gamma, beta, wq, wk, wv):
    M, D = x2d.shape
    inner = wq.shape[1]
    tm, pm = _row_tiling(M)
    xp = _pad_rows(x2d, pm)
    g = gamma.reshape(1, D).astype(jnp.float32)
    b = beta.reshape(1, D).astype(jnp.float32)
    row_spec = pl.BlockSpec((tm, D), lambda i: (i, 0))
    out_spec = pl.BlockSpec((tm, inner), lambda i: (i, 0))
    q, k, v = pl.pallas_call(
        _ln_qkv_kernel,
        out_shape=[jax.ShapeDtypeStruct((pm, inner), _COMPUTE_DTYPE)] * 3,
        grid=(pm // tm,),
        in_specs=[row_spec,
                  _const_spec((1, D)), _const_spec((1, D)),
                  _const_spec((D, inner)), _const_spec((D, inner)),
                  _const_spec((D, inner))],
        out_specs=[out_spec, out_spec, out_spec],
        compiler_params=_cparams("parallel"),
    )(xp, g, b, wq, wk, wv)
    if pm != M:
        q, k, v = q[:M], k[:M], v[:M]
    return q, k, v


# ----------------------------------------------------------------------------
# Kernel 2: LayerNorm + single projection (cross-attention query path)
# ----------------------------------------------------------------------------
def _ln_matmul_kernel(x_ref, g_ref, b_ref, w_ref, o_ref):
    x = x_ref[...].astype(jnp.float32)
    xn = _layernorm_f32(x, g_ref[...], b_ref[...]).astype(w_ref.dtype)
    o_ref[...] = jnp.dot(xn, w_ref[...],
                         preferred_element_type=jnp.float32).astype(o_ref.dtype)


def ln_matmul(x2d, gamma, beta, w):
    M, D = x2d.shape
    N = w.shape[1]
    tm, pm = _row_tiling(M)
    xp = _pad_rows(x2d, pm)
    g = gamma.reshape(1, D).astype(jnp.float32)
    b = beta.reshape(1, D).astype(jnp.float32)
    out = pl.pallas_call(
        _ln_matmul_kernel,
        out_shape=jax.ShapeDtypeStruct((pm, N), _COMPUTE_DTYPE),
        grid=(pm // tm,),
        in_specs=[pl.BlockSpec((tm, D), lambda i: (i, 0)),
                  _const_spec((1, D)), _const_spec((1, D)),
                  _const_spec((D, N))],
        out_specs=pl.BlockSpec((tm, N), lambda i: (i, 0)),
        compiler_params=_cparams("parallel"),
    )(xp, g, b, w)
    return out if pm == M else out[:M]


# ----------------------------------------------------------------------------
# Kernel 3: fused K/V projections from encoder hidden states (no norm, no bias)
# ----------------------------------------------------------------------------
def _kv_proj_kernel(c_ref, wk_ref, wv_ref, k_ref, v_ref):
    c = c_ref[...].astype(wk_ref.dtype)
    k_ref[...] = jnp.dot(c, wk_ref[...],
                         preferred_element_type=jnp.float32).astype(k_ref.dtype)
    v_ref[...] = jnp.dot(c, wv_ref[...],
                         preferred_element_type=jnp.float32).astype(v_ref.dtype)


def kv_proj(ctx2d, wk, wv):
    M, C = ctx2d.shape
    inner = wk.shape[1]
    tm, pm = _row_tiling(M)
    cp = _pad_rows(ctx2d, pm)
    out_spec = pl.BlockSpec((tm, inner), lambda i: (i, 0))
    k, v = pl.pallas_call(
        _kv_proj_kernel,
        out_shape=[jax.ShapeDtypeStruct((pm, inner), _COMPUTE_DTYPE)] * 2,
        grid=(pm // tm,),
        in_specs=[pl.BlockSpec((tm, C), lambda i: (i, 0)),
                  _const_spec((C, inner)), _const_spec((C, inner))],
        out_specs=[out_spec, out_spec],
        compiler_params=_cparams("parallel"),
    )(cp, wk, wv)
    if pm != M:
        k, v = k[:M], v[:M]
    return k, v


# ----------------------------------------------------------------------------
# Kernel 4: flash multi-head attention + output projection + residual add
#   grid = (B, Sq_tiles, Sk_tiles); Sk is the reduction ("arbitrary") axis with
#   online-softmax m/l/acc scratch.  The head merge + out-projection is a single
#   K=inner matmul in the finalize step.
# ----------------------------------------------------------------------------
def _flash_mha_kernel(q_ref, k_ref, v_ref, wo_ref, bo_ref, res_ref, o_ref,
                      m_scr, l_scr, acc_scr, *, heads, head_dim, scale):
    ki = pl.program_id(2)

    @pl.when(ki == 0)
    def _():
        m_scr[...] = jnp.full(m_scr.shape, -jnp.inf, m_scr.dtype)
        l_scr[...] = jnp.zeros(l_scr.shape, l_scr.dtype)
        acc_scr[...] = jnp.zeros(acc_scr.shape, acc_scr.dtype)

    q = q_ref[0]                      # (tq, inner) bf16
    k = k_ref[0]                      # (tk, inner) bf16
    v = v_ref[0]                      # (tk, inner) bf16

    # Static unrolled loop over heads; per-head state lives in scratch indexed by h.
    for h in range(heads):
        lo = h * head_dim
        qh = q[:, lo:lo + head_dim]
        kh = k[:, lo:lo + head_dim]
        vh = v[:, lo:lo + head_dim]
        # scores: bf16 x bf16 MXU, f32 accumulate; contract head_dim of both (no .T).
        s = jax.lax.dot_general(qh, kh, (((1,), (1,)), ((), ())),
                                preferred_element_type=jnp.float32) * scale
        m_prev = m_scr[h]                                       # (tq, 1)
        m_new = jnp.maximum(m_prev, jnp.max(s, axis=-1, keepdims=True))
        alpha = jnp.exp(m_prev - m_new)                         # f32 EUP
        p = jnp.exp(s - m_new)                                  # (tq, tk) f32
        l_scr[h] = alpha * l_scr[h] + jnp.sum(p, axis=-1, keepdims=True)
        acc_scr[h] = alpha * acc_scr[h] + jnp.dot(
            p.astype(v.dtype), vh, preferred_element_type=jnp.float32)
        m_scr[h] = m_new

    @pl.when(ki == pl.num_programs(2) - 1)
    def _():
        # Normalize per head, merge heads, then ONE (tq, inner)@(inner, D) out-proj.
        parts = []
        for h in range(heads):
            inv = pl.reciprocal(l_scr[h], approx=True)          # EUP slot, ~free
            parts.append(acc_scr[h] * inv)
        attn = jnp.concatenate(parts, axis=-1).astype(wo_ref.dtype)   # (tq, inner) bf16
        out = jnp.dot(attn, wo_ref[...], preferred_element_type=jnp.float32)
        out = out + bo_ref[...] + res_ref[0].astype(jnp.float32)
        o_ref[0] = out.astype(o_ref.dtype)


def mha_out_residual(q, k, v, wo, bo, residual, heads, head_dim):
    # q: (B, Sq, inner) bf16; k/v: (B, Sk, inner) bf16; residual: (B, Sq, D) f32
    B, Sq, inner = q.shape
    Sk = k.shape[1]
    D = residual.shape[2]
    scale = float(head_dim) ** -0.5
    tq = _pick_seq_tile(Sq, preferred=256)
    tk = _pick_seq_tile(Sk, preferred=512)
    bo2 = bo.reshape(1, D).astype(jnp.float32)
    return pl.pallas_call(
        functools.partial(_flash_mha_kernel, heads=heads,
                          head_dim=head_dim, scale=scale),
        out_shape=jax.ShapeDtypeStruct((B, Sq, D), residual.dtype),
        grid=(B, Sq // tq, Sk // tk),
        in_specs=[
            pl.BlockSpec((1, tq, inner), lambda b, qi, ki: (b, qi, 0)),
            pl.BlockSpec((1, tk, inner), lambda b, qi, ki: (b, ki, 0)),
            pl.BlockSpec((1, tk, inner), lambda b, qi, ki: (b, ki, 0)),
            _const_spec((inner, D)),
            _const_spec((1, D)),
            pl.BlockSpec((1, tq, D), lambda b, qi, ki: (b, qi, 0)),
        ],
        out_specs=pl.BlockSpec((1, tq, D), lambda b, qi, ki: (b, qi, 0)),
        scratch_shapes=[
            pltpu.VMEM((heads, tq, 1), jnp.float32),          # m (running max)
            pltpu.VMEM((heads, tq, 1), jnp.float32),          # l (running denom)
            pltpu.VMEM((heads, tq, head_dim), jnp.float32),   # per-head acc
        ],
        compiler_params=_cparams("parallel", "parallel", "arbitrary"),
    )(q, k, v, wo, bo2, residual)


# ----------------------------------------------------------------------------
# Kernel 5: LayerNorm + GEGLU feed-forward + residual add, tiled over ff_inner (F)
#   grid = (row_tiles, F_tiles); F is the reduction axis for the FF-out matmul,
#   accumulated in an f32 scratch; LN is computed once per row tile (f == 0).
# ----------------------------------------------------------------------------
def _ln_geglu_ff_kernel(x_ref, g_ref, b_ref, wh_ref, bh_ref, wg_ref, bg_ref,
                        wo_ref, bo_ref, o_ref, xn_scr, acc_scr):
    f = pl.program_id(1)

    @pl.when(f == 0)
    def _():
        x = x_ref[...].astype(jnp.float32)
        xn = _layernorm_f32(x, g_ref[...], b_ref[...])
        xn_scr[...] = xn.astype(xn_scr.dtype)                 # bf16 MXU operand
        acc_scr[...] = jnp.zeros(acc_scr.shape, acc_scr.dtype)

    xn = xn_scr[...]
    hidden = jnp.dot(xn, wh_ref[...], preferred_element_type=jnp.float32) + bh_ref[...]
    gate = jnp.dot(xn, wg_ref[...], preferred_element_type=jnp.float32) + bg_ref[...]
    # exact (erf) GELU, matching torch.nn.functional.gelu default
    gelu_gate = 0.5 * gate * (1.0 + jax.lax.erf(gate * 0.7071067811865476))
    ff = (hidden * gelu_gate).astype(wo_ref.dtype)            # bf16 for MXU
    acc_scr[...] += jnp.dot(ff, wo_ref[...], preferred_element_type=jnp.float32)

    @pl.when(f == pl.num_programs(1) - 1)
    def _():
        out = acc_scr[...] + bo_ref[...] + x_ref[...].astype(jnp.float32)
        o_ref[...] = out.astype(o_ref.dtype)


def ln_ff_geglu_residual(x2d, gamma, beta, p_ff):
    M, D = x2d.shape
    F = p_ff["w_h"].shape[1]
    tm, pm = _row_tiling(M, preferred=256)
    tf = _pick_col_tile(F, preferred=1024)
    xp = _pad_rows(x2d, pm)
    g = gamma.reshape(1, D).astype(jnp.float32)
    b = beta.reshape(1, D).astype(jnp.float32)
    out = pl.pallas_call(
        _ln_geglu_ff_kernel,
        out_shape=jax.ShapeDtypeStruct((pm, D), x2d.dtype),
        grid=(pm // tm, F // tf),
        in_specs=[
            pl.BlockSpec((tm, D), lambda i, f: (i, 0)),
            _const_spec((1, D)), _const_spec((1, D)),
            pl.BlockSpec((D, tf), lambda i, f: (0, f)),
            pl.BlockSpec((1, tf), lambda i, f: (0, f)),
            pl.BlockSpec((D, tf), lambda i, f: (0, f)),
            pl.BlockSpec((1, tf), lambda i, f: (0, f)),
            pl.BlockSpec((tf, D), lambda i, f: (f, 0)),
            _const_spec((1, D)),
        ],
        out_specs=pl.BlockSpec((tm, D), lambda i, f: (i, 0)),
        scratch_shapes=[
            pltpu.VMEM((tm, D), _COMPUTE_DTYPE),   # normalized rows (reused across F tiles)
            pltpu.VMEM((tm, D), jnp.float32),      # FF-out accumulator
        ],
        compiler_params=_cparams("parallel", "arbitrary"),
    )(xp, g, b, p_ff["w_h"], p_ff["b_h"].reshape(1, F).astype(jnp.float32),
      p_ff["w_g"], p_ff["b_g"].reshape(1, F).astype(jnp.float32),
      p_ff["w_out"], p_ff["b_out"].reshape(1, D).astype(jnp.float32))
    return out if pm == M else out[:M]


# ----------------------------------------------------------------------------
# Block composition (only free reshapes at the JAX level)
# ----------------------------------------------------------------------------
def self_attention_block(x, norm_g, norm_b, p_attn, heads, head_dim):
    B, S, D = x.shape
    inner = heads * head_dim
    q, k, v = ln_qkv(x.reshape(B * S, D), norm_g, norm_b,
                     p_attn["wq"], p_attn["wk"], p_attn["wv"])
    q = q.reshape(B, S, inner)
    k = k.reshape(B, S, inner)
    v = v.reshape(B, S, inner)
    return mha_out_residual(q, k, v, p_attn["wo"], p_attn["bo"], x, heads, head_dim)


def cross_attention_block(x, enc, norm_g, norm_b, p_attn, heads, head_dim):
    B, S, D = x.shape
    Se, Cd = enc.shape[1], enc.shape[2]
    inner = heads * head_dim
    q = ln_matmul(x.reshape(B * S, D), norm_g, norm_b, p_attn["wq"])
    k, v = kv_proj(enc.reshape(B * Se, Cd), p_attn["wk"], p_attn["wv"])
    q = q.reshape(B, S, inner)
    k = k.reshape(B, Se, inner)
    v = v.reshape(B, Se, inner)
    return mha_out_residual(q, k, v, p_attn["wo"], p_attn["bo"], x, heads, head_dim)


def basic_transformer_block(x, enc, params, heads, head_dim):
    B, S, D = x.shape
    x = self_attention_block(x, params["norm1_g"], params["norm1_b"],
                             params["attn1"], heads, head_dim)
    x = cross_attention_block(x, enc, params["norm2_g"], params["norm2_b"],
                              params["attn2"], heads, head_dim)
    x = ln_ff_geglu_residual(x.reshape(B * S, D), params["norm3_g"],
                             params["norm3_b"], params["ff"]).reshape(B, S, D)
    return x


# ----------------------------------------------------------------------------
# Parameters (bf16 weights, f32 norms/biases) + pure-JAX reference for checking
# ----------------------------------------------------------------------------
def make_params(key, dim, heads, head_dim, cross_dim, ff_mult=4):
    inner = heads * head_dim
    ff_inner = dim * ff_mult
    ks = jax.random.split(key, 16)

    def w(k, shape, scale=0.02):
        return (scale * jax.random.normal(k, shape)).astype(_COMPUTE_DTYPE)

    def bvec(k, n, scale=0.02):
        return (scale * jax.random.normal(k, (n,))).astype(jnp.float32)

    return {
        "norm1_g": jnp.ones((dim,), jnp.float32),
        "norm1_b": jnp.zeros((dim,), jnp.float32),
        "norm2_g": jnp.ones((dim,), jnp.float32),
        "norm2_b": jnp.zeros((dim,), jnp.float32),
        "norm3_g": jnp.ones((dim,), jnp.float32),
        "norm3_b": jnp.zeros((dim,), jnp.float32),
        "attn1": {
            "wq": w(ks[0], (dim, inner)), "wk": w(ks[1], (dim, inner)),
            "wv": w(ks[2], (dim, inner)), "wo": w(ks[3], (inner, dim)),
            "bo": bvec(ks[11], dim),
        },
        "attn2": {
            "wq": w(ks[4], (dim, inner)), "wk": w(ks[5], (cross_dim, inner)),
            "wv": w(ks[6], (cross_dim, inner)), "wo": w(ks[7], (inner, dim)),
            "bo": bvec(ks[12], dim),
        },
        # GEGLU proj stored pre-split into (hidden | gate) halves == chunk(2, -1).
        "ff": {
            "w_h": w(ks[8], (dim, ff_inner)), "b_h": bvec(ks[13], ff_inner),
            "w_g": w(ks[9], (dim, ff_inner)), "b_g": bvec(ks[14], ff_inner),
            "w_out": w(ks[10], (ff_inner, dim)), "b_out": bvec(ks[15], dim),
        },
    }


def basic_transformer_block_ref(x, enc, params, heads, head_dim):
    """Pure-JAX f32 reference (same bf16-stored weights, f32 math)."""
    def ln(h, g, b):
        mu = jnp.mean(h, -1, keepdims=True)
        var = jnp.mean((h - mu) ** 2, -1, keepdims=True)
        return (h - mu) * jax.lax.rsqrt(var + _EPS) * g + b

    def attn(h_in, ctx, p):
        f32 = jnp.float32
        q = h_in @ p["wq"].astype(f32)
        k = ctx @ p["wk"].astype(f32)
        v = ctx @ p["wv"].astype(f32)
        B, Sq, inner = q.shape
        Sk = k.shape[1]
        q = q.reshape(B, Sq, heads, head_dim).transpose(0, 2, 1, 3)
        k = k.reshape(B, Sk, heads, head_dim).transpose(0, 2, 1, 3)
        v = v.reshape(B, Sk, heads, head_dim).transpose(0, 2, 1, 3)
        s = jnp.einsum("bhqd,bhkd->bhqk", q, k) * (float(head_dim) ** -0.5)
        pr = jax.nn.softmax(s, axis=-1)
        o = jnp.einsum("bhqk,bhkd->bhqd", pr, v)
        o = o.transpose(0, 2, 1, 3).reshape(B, Sq, inner)
        return o @ p["wo"].astype(f32) + p["bo"]

    h = ln(x, params["norm1_g"], params["norm1_b"])
    x = x + attn(h, h, params["attn1"])
    h = ln(x, params["norm2_g"], params["norm2_b"])
    x = x + attn(h, enc, params["attn2"])
    h = ln(x, params["norm3_g"], params["norm3_b"])
    ffp = params["ff"]
    hidden = h @ ffp["w_h"].astype(jnp.float32) + ffp["b_h"]
    gate = h @ ffp["w_g"].astype(jnp.float32) + ffp["b_g"]
    gelu = 0.5 * gate * (1.0 + jax.lax.erf(gate * 0.7071067811865476))
    return x + (hidden * gelu) @ ffp["w_out"].astype(jnp.float32) + ffp["b_out"]


# ----------------------------------------------------------------------------
# Main
# ----------------------------------------------------------------------------
if __name__ == "__main__":
    B = 2           # batch
    S = 16          # query sequence length (spatial tokens)
    S_enc = 8       # encoder (text) sequence length
    dim = 32        # channel dim
    heads = 4
    head_dim = 8    # heads * head_dim == dim
    cross_dim = 24  # encoder hidden size

    key = jax.random.PRNGKey(0)
    k_x, k_enc, k_p = jax.random.split(key, 3)
    x = jax.random.normal(k_x, (B, S, dim), dtype=jnp.float32)
    enc = jax.random.normal(k_enc, (B, S_enc, cross_dim), dtype=jnp.float32)
    params = make_params(k_p, dim, heads, head_dim, cross_dim)

    fwd = jax.jit(functools.partial(basic_transformer_block,
                                    heads=heads, head_dim=head_dim))
    out = fwd(x, enc, params)
    jax.block_until_ready(out)
    assert out.shape == (B, S, dim) and out.dtype == jnp.float32

    ref = basic_transformer_block_ref(x, enc, params, heads, head_dim)
    err = float(jnp.max(jnp.abs(out - ref)))
    assert jnp.all(jnp.isfinite(out)) and err < 5e-2, f"max abs err {err}"
    print("KERNEL_OK")
</pallas_src>

<mosaic_0001>
module attributes {stable_mosaic.version = 11 : i64} {
  func.func @_kv_proj_kernel(%arg0: i32, %arg1: memref<16x24xf32, #tpu.memory_space<vmem>>, %arg2: memref<24x32xbf16, #tpu.memory_space<vmem>>, %arg3: memref<24x32xbf16, #tpu.memory_space<vmem>>, %arg4: memref<16x32xbf16, #tpu.memory_space<vmem>>, %arg5: memref<16x32xbf16, #tpu.memory_space<vmem>>) attributes {dimension_semantics = [#tpu.dimension_semantics<parallel>], iteration_bounds = array<i64: 1>, scalar_prefetch = 0 : i64, scratch_operands = 0 : i64, tpu.core_type = #tpu.core_type<tc>, window_params = [{transform_indices = @transform_0, window_bounds = array<i64: 16, 24>}, {pipeline_mode = #tpu.pipeline_mode<synchronous>, transform_indices = @transform_1, window_bounds = array<i64: 24, 32>}, {pipeline_mode = #tpu.pipeline_mode<synchronous>, transform_indices = @transform_2, window_bounds = array<i64: 24, 32>}, {transform_indices = @transform_3, window_bounds = array<i64: 16, 32>}, {transform_indices = @transform_4, window_bounds = array<i64: 16, 32>}]} {
    %c0 = arith.constant 0 : index
    %c0_0 = arith.constant 0 : index
    %0 = vector.load %arg1[%c0, %c0_0] : memref<16x24xf32, #tpu.memory_space<vmem>>, vector<16x24xf32>
    %1 = arith.truncf %0 : vector<16x24xf32> to vector<16x24xbf16>
    %c0_1 = arith.constant 0 : index
    %c0_2 = arith.constant 0 : index
    %2 = vector.load %arg2[%c0_1, %c0_2] : memref<24x32xbf16, #tpu.memory_space<vmem>>, vector<24x32xbf16>
    %cst = arith.constant dense<0.000000e+00> : vector<16x32xf32>
    %3 = tpu.matmul %1, %2, %cst {dimension_numbers = #tpu.dot_dimension_numbers<[1], [0], [0], [1], [0, 0, 1, 1], [], []>} : vector<16x24xbf16>, vector<24x32xbf16>, vector<16x32xf32> -> vector<16x32xf32>
    %4 = arith.truncf %3 : vector<16x32xf32> to vector<16x32xbf16>
    %c0_3 = arith.constant 0 : index
    %c0_4 = arith.constant 0 : index
    %5 = vector.load %arg4[%c0_3, %c0_4] : memref<16x32xbf16, #tpu.memory_space<vmem>>, vector<16x32xbf16>
    tpu.vector_store %arg4[%c0_3, %c0_4], %4 {strides = array<i32>} : memref<16x32xbf16, #tpu.memory_space<vmem>>, vector<16x32xbf16>,
    %c0_5 = arith.constant 0 : index
    %c0_6 = arith.constant 0 : index
    %6 = vector.load %arg3[%c0_5, %c0_6] : memref<24x32xbf16, #tpu.memory_space<vmem>>, vector<24x32xbf16>
    %cst_7 = arith.constant dense<0.000000e+00> : vector<16x32xf32>
    %7 = tpu.matmul %1, %6, %cst_7 {dimension_numbers = #tpu.dot_dimension_numbers<[1], [0], [0], [1], [0, 0, 1, 1], [], []>} : vector<16x24xbf16>, vector<24x32xbf16>, vector<16x32xf32> -> vector<16x32xf32>
    %8 = arith.truncf %7 : vector<16x32xf32> to vector<16x32xbf16>
    %c0_8 = arith.constant 0 : index
    %c0_9 = arith.constant 0 : index
    %9 = vector.load %arg5[%c0_8, %c0_9] : memref<16x32xbf16, #tpu.memory_space<vmem>>, vector<16x32xbf16>
    tpu.vector_store %arg5[%c0_8, %c0_9], %8 {strides = array<i32>} : memref<16x32xbf16, #tpu.memory_space<vmem>>, vector<16x32xbf16>,
    return
  }
  func.func @transform_0(%arg0: i32) -> (i32, i32) {
    %c0_i32 = arith.constant 0 : i32
    %c0_i32_0 = arith.constant 0 : i32
    return %arg0, %c0_i32 : i32, i32
  }
  func.func @transform_1(%arg0: i32) -> (i32, i32) {
    %c0_i32 = arith.constant 0 : i32
    %c0_i32_0 = arith.constant 0 : i32
    %c0_i32_1 = arith.constant 0 : i32
    return %c0_i32, %c0_i32_0 : i32, i32
  }
  func.func @transform_2(%arg0: i32) -> (i32, i32) {
    %c0_i32 = arith.constant 0 : i32
    %c0_i32_0 = arith.constant 0 : i32
    %c0_i32_1 = arith.constant 0 : i32
    return %c0_i32, %c0_i32_0 : i32, i32
  }
  func.func @transform_3(%arg0: i32) -> (i32, i32) {
    %c0_i32 = arith.constant 0 : i32
    %c0_i32_0 = arith.constant 0 : i32
    return %arg0, %c0_i32 : i32, i32
  }
  func.func @transform_4(%arg0: i32) -> (i32, i32) {
    %c0_i32 = arith.constant 0 : i32
    %c0_i32_0 = arith.constant 0 : i32
    return %arg0, %c0_i32 : i32, i32
  }
}

module attributes {stable_mosaic.version = 11 : i64} {
  func.func @_ln_matmul_kernel(%arg0: i32, %arg1: memref<32x32xf32, #tpu.memory_space<vmem>>, %arg2: memref<1x32xf32, #tpu.memory_space<vmem>>, %arg3: memref<1x32xf32, #tpu.memory_space<vmem>>, %arg4: memref<32x32xbf16, #tpu.memory_space<vmem>>, %arg5: memref<32x32xbf16, #tpu.memory_space<vmem>>) attributes {dimension_semantics = [#tpu.dimension_semantics<parallel>], iteration_bounds = array<i64: 1>, scalar_prefetch = 0 : i64, scratch_operands = 0 : i64, tpu.core_type = #tpu.core_type<tc>, window_params = [{transform_indices = @transform_0, window_bounds = array<i64: 32, 32>}, {pipeline_mode = #tpu.pipeline_mode<synchronous>, transform_indices = @transform_1, window_bounds = array<i64: 1, 32>}, {pipeline_mode = #tpu.pipeline_mode<synchronous>, transform_indices = @transform_2, window_bounds = array<i64: 1, 32>}, {pipeline_mode = #tpu.pipeline_mode<synchronous>, transform_indices = @transform_3, window_bounds = array<i64: 32, 32>}, {transform_indices = @transform_4, window_bounds = array<i64: 32, 32>}]} {
    %c0 = arith.constant 0 : index
    %c0_0 = arith.constant 0 : index
    %0 = vector.load %arg1[%c0, %c0_0] : memref<32x32xf32, #tpu.memory_space<vmem>>, vector<32x32xf32>
    %c0_1 = arith.constant 0 : index
    %c0_2 = arith.constant 0 : index
    %1 = vector.load %arg2[%c0_1, %c0_2] : memref<1x32xf32, #tpu.memory_space<vmem>>, vector<1x32xf32>
    %c0_3 = arith.constant 0 : index
    %c0_4 = arith.constant 0 : index
    %2 = vector.load %arg3[%c0_3, %c0_4] : memref<1x32xf32, #tpu.memory_space<vmem>>, vector<1x32xf32>
    %cst = arith.constant dense<0.000000e+00> : vector<32xf32>
    %3 = vector.multi_reduction <add>, %0, %cst [1] : vector<32x32xf32> to vector<32xf32>
    %4 = vector.shape_cast %3 : vector<32xf32> to vector<32x1xf32>
    %cst_5 = arith.constant 3.200000e+01 : f32
    %5 = vector.broadcast %cst_5 : f32 to vector<32x1xf32>
    %6 = arith.divf %4, %5 : vector<32x1xf32>
    %7 = vector.broadcast %6 : vector<32x1xf32> to vector<32x32xf32>
    %8 = arith.subf %0, %7 : vector<32x32xf32>
    %9 = arith.mulf %8, %8 : vector<32x32xf32>
    %cst_6 = arith.constant dense<0.000000e+00> : vector<32xf32>
    %10 = vector.multi_reduction <add>, %9, %cst_6 [1] : vector<32x32xf32> to vector<32xf32>
    %11 = vector.shape_cast %10 : vector<32xf32> to vector<32x1xf32>
    %cst_7 = arith.constant 3.200000e+01 : f32
    %12 = vector.broadcast %cst_7 : f32 to vector<32x1xf32>
    %13 = arith.divf %11, %12 : vector<32x1xf32>
    %14 = vector.broadcast %6 : vector<32x1xf32> to vector<32x32xf32>
    %15 = arith.subf %0, %14 : vector<32x32xf32>
    %cst_8 = arith.constant 9.99999974E-6 : f32
    %16 = vector.broadcast %cst_8 : f32 to vector<32x1xf32>
    %17 = arith.addf %13, %16 : vector<32x1xf32>
    %18 = math.rsqrt %17 : vector<32x1xf32>
    %19 = vector.broadcast %18 : vector<32x1xf32> to vector<32x32xf32>
    %20 = arith.mulf %15, %19 : vector<32x32xf32>
    %21 = vector.broadcast %1 : vector<1x32xf32> to vector<32x32xf32>
    %22 = arith.mulf %20, %21 : vector<32x32xf32>
    %23 = vector.broadcast %2 : vector<1x32xf32> to vector<32x32xf32>
    %24 = arith.addf %22, %23 : vector<32x32xf32>
    %25 = arith.truncf %24 : vector<32x32xf32> to vector<32x32xbf16>
    %c0_9 = arith.constant 0 : index
    %c0_10 = arith.constant 0 : index
    %26 = vector.load %arg4[%c0_9, %c0_10] : memref<32x32xbf16, #tpu.memory_space<vmem>>, vector<32x32xbf16>
    %cst_11 = arith.constant dense<0.000000e+00> : vector<32x32xf32>
    %27 = tpu.matmul %25, %26, %cst_11 {dimension_numbers = #tpu.dot_dimension_numbers<[1], [0], [0], [1], [0, 0, 1, 1], [], []>} : vector<32x32xbf16>, vector<32x32xbf16>, vector<32x32xf32> -> vector<32x32xf32>
    %28 = arith.truncf %27 : vector<32x32xf32> to vector<32x32xbf16>
    %c0_12 = arith.constant 0 : index
    %c0_13 = arith.constant 0 : index
    %29 = vector.load %arg5[%c0_12, %c0_13] : memref<32x32xbf16, #tpu.memory_space<vmem>>, vector<32x32xbf16>
    tpu.vector_store %arg5[%c0_12, %c0_13], %28 {strides = array<i32>} : memref<32x32xbf16, #tpu.memory_space<vmem>>, vector<32x32xbf16>,
    return
  }
  func.func @transform_0(%arg0: i32) -> (i32, i32) {
    %c0_i32 = arith.constant 0 : i32
    %c0_i32_0 = arith.constant 0 : i32
    return %arg0, %c0_i32 : i32, i32
  }
  func.func @transform_1(%arg0: i32) -> (i32, i32) {
    %c0_i32 = arith.constant 0 : i32
    %c0_i32_0 = arith.constant 0 : i32
    %c0_i32_1 = arith.constant 0 : i32
    return %c0_i32, %c0_i32_0 : i32, i32
  }
  func.func @transform_2(%arg0: i32) -> (i32, i32) {
    %c0_i32 = arith.constant 0 : i32
    %c0_i32_0 = arith.constant 0 : i32
    %c0_i32_1 = arith.constant 0 : i32
    return %c0_i32, %c0_i32_0 : i32, i32
  }
  func.func @transform_3(%arg0: i32) -> (i32, i32) {
    %c0_i32 = arith.constant 0 : i32
    %c0_i32_0 = arith.constant 0 : i32
    %c0_i32_1 = arith.constant 0 : i32
    return %c0_i32, %c0_i32_0 : i32, i32
  }
  func.func @transform_4(%arg0: i32) -> (i32, i32) {
    %c0_i32 = arith.constant 0 : i32
    %c0_i32_0 = arith.constant 0 : i32
    return %arg0, %c0_i32 : i32, i32
  }
}

module attributes {stable_mosaic.version = 11 : i64} {
  func.func @_flash_mha_kernel(%arg0: i32, %arg1: i32, %arg2: i32, %arg3: memref<1x16x32xbf16, #tpu.memory_space<vmem>>, %arg4: memref<1x16x32xbf16, #tpu.memory_space<vmem>>, %arg5: memref<1x16x32xbf16, #tpu.memory_space<vmem>>, %arg6: memref<32x32xbf16, #tpu.memory_space<vmem>>, %arg7: memref<1x32xf32, #tpu.memory_space<vmem>>, %arg8: memref<1x16x32xf32, #tpu.memory_space<vmem>>, %arg9: memref<1x16x32xf32, #tpu.memory_space<vmem>>, %arg10: memref<4x16x1xf32, #tpu.memory_space<vmem>>, %arg11: memref<4x16x1xf32, #tpu.memory_space<vmem>>, %arg12: memref<4x16x8xf32, #tpu.memory_space<vmem>>) attributes {dimension_semantics = [#tpu.dimension_semantics<parallel>, #tpu.dimension_semantics<parallel>, #tpu.dimension_semantics<arbitrary>], iteration_bounds = array<i64: 2, 1, 1>, scalar_prefetch = 0 : i64, scratch_operands = 3 : i64, tpu.core_type = #tpu.core_type<tc>, window_params = [{transform_indices = @transform_0, window_bounds = array<i64: 1, 16, 32>}, {transform_indices = @transform_1, window_bounds = array<i64: 1, 16, 32>}, {transform_indices = @transform_2, window_bounds = array<i64: 1, 16, 32>}, {pipeline_mode = #tpu.pipeline_mode<synchronous>, transform_indices = @transform_3, window_bounds = array<i64: 32, 32>}, {pipeline_mode = #tpu.pipeline_mode<synchronous>, transform_indices = @transform_4, window_bounds = array<i64: 1, 32>}, {transform_indices = @transform_5, window_bounds = array<i64: 1, 16, 32>}, {transform_indices = @transform_6, window_bounds = array<i64: 1, 16, 32>}]} {
    %c0_i32 = arith.constant 0 : i32
    %0 = arith.cmpi eq, %arg2, %c0_i32 : i32
    %1 = arith.extui %0 : i1 to i32
    %c0_i32_0 = arith.constant 0 : i32
    %2 = arith.cmpi ne, %1, %c0_i32_0 : i32
    scf.if %2 {
      %cst_99 = arith.constant 0xFF800000 : f32
      %164 = vector.broadcast %cst_99 : f32 to vector<4x16x1xf32>
      %c0_100 = arith.constant 0 : index
      %c0_101 = arith.constant 0 : index
      %c0_102 = arith.constant 0 : index
      %165 = vector.load %arg10[%c0_100, %c0_101, %c0_102] : memref<4x16x1xf32, #tpu.memory_space<vmem>>, vector<4x16x1xf32>
      tpu.vector_store %arg10[%c0_100, %c0_101, %c0_102], %164 {strides = array<i32>} : memref<4x16x1xf32, #tpu.memory_space<vmem>>, vector<4x16x1xf32>,
      %cst_103 = arith.constant 0.000000e+00 : f32
      %166 = vector.broadcast %cst_103 : f32 to vector<4x16x1xf32>
      %c0_104 = arith.constant 0 : index
      %c0_105 = arith.constant 0 : index
      %c0_106 = arith.constant 0 : index
      %167 = vector.load %arg11[%c0_104, %c0_105, %c0_106] : memref<4x16x1xf32, #tpu.memory_space<vmem>>, vector<4x16x1xf32>
      tpu.vector_store %arg11[%c0_104, %c0_105, %c0_106], %166 {strides = array<i32>} : memref<4x16x1xf32, #tpu.memory_space<vmem>>, vector<4x16x1xf32>,
      %cst_107 = arith.constant 0.000000e+00 : f32
      %168 = vector.broadcast %cst_107 : f32 to vector<4x16x8xf32>
      %c0_108 = arith.constant 0 : index
      %c0_109 = arith.constant 0 : index
      %c0_110 = arith.constant 0 : index
      %169 = vector.load %arg12[%c0_108, %c0_109, %c0_110] : memref<4x16x8xf32, #tpu.memory_space<vmem>>, vector<4x16x8xf32>
      tpu.vector_store %arg12[%c0_108, %c0_109, %c0_110], %168 {strides = array<i32>} : memref<4x16x8xf32, #tpu.memory_space<vmem>>, vector<4x16x8xf32>,
    } else {
    }
    %c0 = arith.constant 0 : index
    %c0_1 = arith.constant 0 : index
    %c0_2 = arith.constant 0 : index
    %3 = vector.load %arg3[%c0, %c0_1, %c0_2] : memref<1x16x32xbf16, #tpu.memory_space<vmem>>, vector<1x16x32xbf16>
    %4 = vector.shape_cast %3 : vector<1x16x32xbf16> to vector<16x32xbf16>
    %c0_3 = arith.constant 0 : index
    %c0_4 = arith.constant 0 : index
    %c0_5 = arith.constant 0 : index
    %5 = vector.load %arg4[%c0_3, %c0_4, %c0_5] : memref<1x16x32xbf16, #tpu.memory_space<vmem>>, vector<1x16x32xbf16>
    %6 = vector.shape_cast %5 : vector<1x16x32xbf16> to vector<16x32xbf16>
    %c0_6 = arith.constant 0 : index
    %c0_7 = arith.constant 0 : index
    %c0_8 = arith.constant 0 : index
    %7 = vector.load %arg5[%c0_6, %c0_7, %c0_8] : memref<1x16x32xbf16, #tpu.memory_space<vmem>>, vector<1x16x32xbf16>
    %8 = vector.shape_cast %7 : vector<1x16x32xbf16> to vector<16x32xbf16>
    %9 = vector.extract_strided_slice %4 {offsets = [0, 0], sizes = [16, 8], strides = [1, 1]} : vector<16x32xbf16> to vector<16x8xbf16>
    %10 = vector.extract_strided_slice %6 {offsets = [0, 0], sizes = [16, 8], strides = [1, 1]} : vector<16x32xbf16> to vector<16x8xbf16>
    %11 = vector.extract_strided_slice %8 {offsets = [0, 0], sizes = [16, 8], strides = [1, 1]} : vector<16x32xbf16> to vector<16x8xbf16>
    %cst = arith.constant dense<0.000000e+00> : vector<16x16xf32>
    %12 = tpu.matmul %9, %10, %cst {dimension_numbers = #tpu.dot_dimension_numbers<[1], [1], [0], [0], [0, 0, 1, 0], [], []>} : vector<16x8xbf16>, vector<16x8xbf16>, vector<16x16xf32> -> vector<16x16xf32>
    %cst_9 = arith.constant 0.353553385 : f32
    %13 = vector.broadcast %cst_9 : f32 to vector<16x16xf32>
    %14 = arith.mulf %12, %13 : vector<16x16xf32>
    %c0_10 = arith.constant 0 : index
    %c0_11 = arith.constant 0 : index
    %c0_12 = arith.constant 0 : index
    %15 = vector.load %arg10[%c0_10, %c0_11, %c0_12] : memref<4x16x1xf32, #tpu.memory_space<vmem>>, vector<1x16x1xf32>
    %16 = vector.shape_cast %15 : vector<1x16x1xf32> to vector<16x1xf32>
    %cst_13 = arith.constant dense<0xFF800000> : vector<16xf32>
    %17 = vector.multi_reduction <maximumf>, %14, %cst_13 [1] : vector<16x16xf32> to vector<16xf32>
    %18 = vector.shape_cast %17 : vector<16xf32> to vector<16x1xf32>
    %19 = arith.maximumf %16, %18 : vector<16x1xf32>
    %20 = arith.subf %16, %19 : vector<16x1xf32>
    %21 = math.exp %20 : vector<16x1xf32>
    %22 = vector.broadcast %19 : vector<16x1xf32> to vector<16x16xf32>
    %23 = arith.subf %14, %22 : vector<16x16xf32>
    %24 = math.exp %23 : vector<16x16xf32>
    %c0_14 = arith.constant 0 : index
    %c0_15 = arith.constant 0 : index
    %c0_16 = arith.constant 0 : index
    %25 = vector.load %arg11[%c0_14, %c0_15, %c0_16] : memref<4x16x1xf32, #tpu.memory_space<vmem>>, vector<1x16x1xf32>
    %26 = vector.shape_cast %25 : vector<1x16x1xf32> to vector<16x1xf32>
    %27 = arith.mulf %21, %26 : vector<16x1xf32>
    %cst_17 = arith.constant dense<0.000000e+00> : vector<16xf32>
    %28 = vector.multi_reduction <add>, %24, %cst_17 [1] : vector<16x16xf32> to vector<16xf32>
    %29 = vector.shape_cast %28 : vector<16xf32> to vector<16x1xf32>
    %30 = arith.addf %27, %29 : vector<16x1xf32>
    %c0_18 = arith.constant 0 : index
    %c0_19 = arith.constant 0 : index
    %c0_20 = arith.constant 0 : index
    %31 = vector.load %arg11[%c0_18, %c0_19, %c0_20] : memref<4x16x1xf32, #tpu.memory_space<vmem>>, vector<1x16x1xf32>
    %32 = vector.shape_cast %31 : vector<1x16x1xf32> to vector<16x1xf32>
    %33 = vector.shape_cast %30 : vector<16x1xf32> to vector<1x16x1xf32>
    tpu.vector_store %arg11[%c0_18, %c0_19, %c0_20], %33 {strides = array<i32>} : memref<4x16x1xf32, #tpu.memory_space<vmem>>, vector<1x16x1xf32>,
    %c0_21 = arith.constant 0 : index
    %c0_22 = arith.constant 0 : index
    %c0_23 = arith.constant 0 : index
    %34 = vector.load %arg12[%c0_21, %c0_22, %c0_23] : memref<4x16x8xf32, #tpu.memory_space<vmem>>, vector<1x16x8xf32>
    %35 = vector.shape_cast %34 : vector<1x16x8xf32> to vector<16x8xf32>
    %36 = vector.broadcast %21 : vector<16x1xf32> to vector<16x8xf32>
    %37 = arith.mulf %36, %35 : vector<16x8xf32>
    %38 = arith.truncf %24 : vector<16x16xf32> to vector<16x16xbf16>
    %cst_24 = arith.constant dense<0.000000e+00> : vector<16x8xf32>
    %39 = tpu.matmul %38, %11, %cst_24 {dimension_numbers = #tpu.dot_dimension_numbers<[1], [0], [0], [1], [0, 0, 1, 1], [], []>} : vector<16x16xbf16>, vector<16x8xbf16>, vector<16x8xf32> -> vector<16x8xf32>
    %40 = arith.addf %37, %39 : vector<16x8xf32>
    %c0_25 = arith.constant 0 : index
    %c0_26 = arith.constant 0 : index
    %c0_27 = arith.constant 0 : index
    %41 = vector.load %arg12[%c0_25, %c0_26, %c0_27] : memref<4x16x8xf32, #tpu.memory_space<vmem>>, vector<1x16x8xf32>
    %42 = vector.shape_cast %41 : vector<1x16x8xf32> to vector<16x8xf32>
    %43 = vector.shape_cast %40 : vector<16x8xf32> to vector<1x16x8xf32>
    tpu.vector_store %arg12[%c0_25, %c0_26, %c0_27], %43 {strides = array<i32>} : memref<4x16x8xf32, #tpu.memory_space<vmem>>, vector<1x16x8xf32>,
    %c0_28 = arith.constant 0 : index
    %c0_29 = arith.constant 0 : index
    %c0_30 = arith.constant 0 : index
    %44 = vector.load %arg10[%c0_28, %c0_29, %c0_30] : memref<4x16x1xf32, #tpu.memory_space<vmem>>, vector<1x16x1xf32>
    %45 = vector.shape_cast %44 : vector<1x16x1xf32> to vector<16x1xf32>
    %46 = vector.shape_cast %19 : vector<16x1xf32> to vector<1x16x1xf32>
    tpu.vector_store %arg10[%c0_28, %c0_29, %c0_30], %46 {strides = array<i32>} : memref<4x16x1xf32, #tpu.memory_space<vmem>>, vector<1x16x1xf32>,
    %47 = vector.extract_strided_slice %4 {offsets = [0, 8], sizes = [16, 8], strides = [1, 1]} : vector<16x32xbf16> to vector<16x8xbf16>
    %48 = vector.extract_strided_slice %6 {offsets = [0, 8], sizes = [16, 8], strides = [1, 1]} : vector<16x32xbf16> to vector<16x8xbf16>
    %49 = vector.extract_strided_slice %8 {offsets = [0, 8], sizes = [16, 8], strides = [1, 1]} : vector<16x32xbf16> to vector<16x8xbf16>
    %cst_31 = arith.constant dense<0.000000e+00> : vector<16x16xf32>
    %50 = tpu.matmul %47, %48, %cst_31 {dimension_numbers = #tpu.dot_dimension_numbers<[1], [1], [0], [0], [0, 0, 1, 0], [], []>} : vector<16x8xbf16>, vector<16x8xbf16>, vector<16x16xf32> -> vector<16x16xf32>
    %cst_32 = arith.constant 0.353553385 : f32
    %51 = vector.broadcast %cst_32 : f32 to vector<16x16xf32>
    %52 = arith.mulf %50, %51 : vector<16x16xf32>
    %c1 = arith.constant 1 : index
    %c0_33 = arith.constant 0 : index
    %c0_34 = arith.constant 0 : index
    %53 = vector.load %arg10[%c1, %c0_33, %c0_34] : memref<4x16x1xf32, #tpu.memory_space<vmem>>, vector<1x16x1xf32>
    %54 = vector.shape_cast %53 : vector<1x16x1xf32> to vector<16x1xf32>
    %cst_35 = arith.constant dense<0xFF800000> : vector<16xf32>
    %55 = vector.multi_reduction <maximumf>, %52, %cst_35 [1] : vector<16x16xf32> to vector<16xf32>
    %56 = vector.shape_cast %55 : vector<16xf32> to vector<16x1xf32>
    %57 = arith.maximumf %54, %56 : vector<16x1xf32>
    %58 = arith.subf %54, %57 : vector<16x1xf32>
    %59 = math.exp %58 : vector<16x1xf32>
    %60 = vector.broadcast %57 : vector<16x1xf32> to vector<16x16xf32>
    %61 = arith.subf %52, %60 : vector<16x16xf32>
    %62 = math.exp %61 : vector<16x16xf32>
    %c1_36 = arith.constant 1 : index
    %c0_37 = arith.constant 0 : index
    %c0_38 = arith.constant 0 : index
    %63 = vector.load %arg11[%c1_36, %c0_37, %c0_38] : memref<4x16x1xf32, #tpu.memory_space<vmem>>, vector<1x16x1xf32>
    %64 = vector.shape_cast %63 : vector<1x16x1xf32> to vector<16x1xf32>
    %65 = arith.mulf %59, %64 : vector<16x1xf32>
    %cst_39 = arith.constant dense<0.000000e+00> : vector<16xf32>
    %66 = vector.multi_reduction <add>, %62, %cst_39 [1] : vector<16x16xf32> to vector<16xf32>
    %67 = vector.shape_cast %66 : vector<16xf32> to vector<16x1xf32>
    %68 = arith.addf %65, %67 : vector<16x1xf32>
    %c1_40 = arith.constant 1 : index
    %c0_41 = arith.constant 0 : index
    %c0_42 = arith.constant 0 : index
    %69 = vector.load %arg11[%c1_40, %c0_41, %c0_42] : memref<4x16x1xf32, #tpu.memory_space<vmem>>, vector<1x16x1xf32>
    %70 = vector.shape_cast %69 : vector<1x16x1xf32> to vector<16x1xf32>
    %71 = vector.shape_cast %68 : vector<16x1xf32> to vector<1x16x1xf32>
    tpu.vector_store %arg11[%c1_40, %c0_41, %c0_42], %71 {strides = array<i32>} : memref<4x16x1xf32, #tpu.memory_space<vmem>>, vector<1x16x1xf32>,
    %c1_43 = arith.constant 1 : index
    %c0_44 = arith.constant 0 : index
    %c0_45 = arith.constant 0 : index
    %72 = vector.load %arg12[%c1_43, %c0_44, %c0_45] : memref<4x16x8xf32, #tpu.memory_space<vmem>>, vector<1x16x8xf32>
    %73 = vector.shape_cast %72 : vector<1x16x8xf32> to vector<16x8xf32>
    %74 = vector.broadcast %59 : vector<16x1xf32> to vector<16x8xf32>
    %75 = arith.mulf %74, %73 : vector<16x8xf32>
    %76 = arith.truncf %62 : vector<16x16xf32> to vector<16x16xbf16>
    %cst_46 = arith.constant dense<0.000000e+00> : vector<16x8xf32>
    %77 = tpu.matmul %76, %49, %cst_46 {dimension_numbers = #tpu.dot_dimension_numbers<[1], [0], [0], [1], [0, 0, 1, 1], [], []>} : vector<16x16xbf16>, vector<16x8xbf16>, vector<16x8xf32> -> vector<16x8xf32>
    %78 = arith.addf %75, %77 : vector<16x8xf32>
    %c1_47 = arith.constant 1 : index
    %c0_48 = arith.constant 0 : index
    %c0_49 = arith.constant 0 : index
    %79 = vector.load %arg12[%c1_47, %c0_48, %c0_49] : memref<4x16x8xf32, #tpu.memory_space<vmem>>, vector<1x16x8xf32>
    %80 = vector.shape_cast %79 : vector<1x16x8xf32> to vector<16x8xf32>
    %81 = vector.shape_cast %78 : vector<16x8xf32> to vector<1x16x8xf32>
    tpu.vector_store %arg12[%c1_47, %c0_48, %c0_49], %81 {strides = array<i32>} : memref<4x16x8xf32, #tpu.memory_space<vmem>>, vector<1x16x8xf32>,
    %c1_50 = arith.constant 1 : index
    %c0_51 = arith.constant 0 : index
    %c0_52 = arith.constant 0 : index
    %82 = vector.load %arg10[%c1_50, %c0_51, %c0_52] : memref<4x16x1xf32, #tpu.memory_space<vmem>>, vector<1x16x1xf32>
    %83 = vector.shape_cast %82 : vector<1x16x1xf32> to vector<16x1xf32>
    %84 = vector.shape_cast %57 : vector<16x1xf32> to vector<1x16x1xf32>
    tpu.vector_store %arg10[%c1_50, %c0_51, %c0_52], %84 {strides = array<i32>} : memref<4x16x1xf32, #tpu.memory_space<vmem>>, vector<1x16x1xf32>,
    %85 = vector.extract_strided_slice %4 {offsets = [0, 16], sizes = [16, 8], strides = [1, 1]} : vector<16x32xbf16> to vector<16x8xbf16>
    %86 = vector.extract_strided_slice %6 {offsets = [0, 16], sizes = [16, 8], strides = [1, 1]} : vector<16x32xbf16> to vector<16x8xbf16>
    %87 = vector.extract_strided_slice %8 {offsets = [0, 16], sizes = [16, 8], strides = [1, 1]} : vector<16x32xbf16> to vector<16x8xbf16>
    %cst_53 = arith.constant dense<0.000000e+00> : vector<16x16xf32>
    %88 = tpu.matmul %85, %86, %cst_53 {dimension_numbers = #tpu.dot_dimension_numbers<[1], [1], [0], [0], [0, 0, 1, 0], [], []>} : vector<16x8xbf16>, vector<16x8xbf16>, vector<16x16xf32> -> vector<16x16xf32>
    %cst_54 = arith.constant 0.353553385 : f32
    %89 = vector.broadcast %cst_54 : f32 to vector<16x16xf32>
    %90 = arith.mulf %88, %89 : vector<16x16xf32>
    %c2 = arith.constant 2 : index
    %c0_55 = arith.constant 0 : index
    %c0_56 = arith.constant 0 : index
    %91 = vector.load %arg10[%c2, %c0_55, %c0_56] : memref<4x16x1xf32, #tpu.memory_space<vmem>>, vector<1x16x1xf32>
    %92 = vector.shape_cast %91 : vector<1x16x1xf32> to vector<16x1xf32>
    %cst_57 = arith.constant dense<0xFF800000> : vector<16xf32>
    %93 = vector.multi_reduction <maximumf>, %90, %cst_57 [1] : vector<16x16xf32> to vector<16xf32>
    %94 = vector.shape_cast %93 : vector<16xf32> to vector<16x1xf32>
    %95 = arith.maximumf %92, %94 : vector<16x1xf32>
    %96 = arith.subf %92, %95 : vector<16x1xf32>
    %97 = math.exp %96 : vector<16x1xf32>
    %98 = vector.broadcast %95 : vector<16x1xf32> to vector<16x16xf32>
    %99 = arith.subf %90, %98 : vector<16x16xf32>
    %100 = math.exp %99 : vector<16x16xf32>
    %c2_58 = arith.constant 2 : index
    %c0_59 = arith.constant 0 : index
    %c0_60 = arith.constant 0 : index
    %101 = vector.load %arg11[%c2_58, %c0_59, %c0_60] : memref<4x16x1xf32, #tpu.memory_space<vmem>>, vector<1x16x1xf32>
    %102 = vector.shape_cast %101 : vector<1x16x1xf32> to vector<16x1xf32>
    %103 = arith.mulf %97, %102 : vector<16x1xf32>
    %cst_61 = arith.constant dense<0.000000e+00> : vector<16xf32>
    %104 = vector.multi_reduction <add>, %100, %cst_61 [1] : vector<16x16xf32> to vector<16xf32>
    %105 = vector.shape_cast %104 : vector<16xf32> to vector<16x1xf32>
    %106 = arith.addf %103, %105 : vector<16x1xf32>
    %c2_62 = arith.constant 2 : index
    %c0_63 = arith.constant 0 : index
    %c0_64 = arith.constant 0 : index
    %107 = vector.load %arg11[%c2_62, %c0_63, %c0_64] : memref<4x16x1xf32, #tpu.memory_space<vmem>>, vector<1x16x1xf32>
    %108 = vector.shape_cast %107 : vector<1x16x1xf32> to vector<16x1xf32>
    %109 = vector.shape_cast %106 : vector<16x1xf32> to vector<1x16x1xf32>
    tpu.vector_store %arg11[%c2_62, %c0_63, %c0_64], %109 {strides = array<i32>} : memref<4x16x1xf32, #tpu.memory_space<vmem>>, vector<1x16x1xf32>,
    %c2_65 = arith.constant 2 : index
    %c0_66 = arith.constant 0 : index
    %c0_67 = arith.constant 0 : index
    %110 = vector.load %arg12[%c2_65, %c0_66, %c0_67] : memref<4x16x8xf32, #tpu.memory_space<vmem>>, vector<1x16x8xf32>
    %111 = vector.shape_cast %110 : vector<1x16x8xf32> to vector<16x8xf32>
    %112 = vector.broadcast %97 : vector<16x1xf32> to vector<16x8xf32>
    %113 = arith.mulf %112, %111 : vector<16x8xf32>
    %114 = arith.truncf %100 : vector<16x16xf32> to vector<16x16xbf16>
    %cst_68 = arith.constant dense<0.000000e+00> : vector<16x8xf32>
    %115 = tpu.matmul %114, %87, %cst_68 {dimension_numbers = #tpu.dot_dimension_numbers<[1], [0], [0], [1], [0, 0, 1, 1], [], []>} : vector<16x16xbf16>, vector<16x8xbf16>, vector<16x8xf32> -> vector<16x8xf32>
    %116 = arith.addf %113, %115 : vector<16x8xf32>
    %c2_69 = arith.constant 2 : index
    %c0_70 = arith.constant 0 : index
    %c0_71 = arith.constant 0 : index
    %117 = vector.load %arg12[%c2_69, %c0_70, %c0_71] : memref<4x16x8xf32, #tpu.memory_space<vmem>>, vector<1x16x8xf32>
    %118 = vector.shape_cast %117 : vector<1x16x8xf32> to vector<16x8xf32>
    %119 = vector.shape_cast %116 : vector<16x8xf32> to vector<1x16x8xf32>
    tpu.vector_store %arg12[%c2_69, %c0_70, %c0_71], %119 {strides = array<i32>} : memref<4x16x8xf32, #tpu.memory_space<vmem>>, vector<1x16x8xf32>,
    %c2_72 = arith.constant 2 : index
    %c0_73 = arith.constant 0 : index
    %c0_74 = arith.constant 0 : index
    %120 = vector.load %arg10[%c2_72, %c0_73, %c0_74] : memref<4x16x1xf32, #tpu.memory_space<vmem>>, vector<1x16x1xf32>
    %121 = vector.shape_cast %120 : vector<1x16x1xf32> to vector<16x1xf32>
    %122 = vector.shape_cast %95 : vector<16x1xf32> to vector<1x16x1xf32>
    tpu.vector_store %arg10[%c2_72, %c0_73, %c0_74], %122 {strides = array<i32>} : memref<4x16x1xf32, #tpu.memory_space<vmem>>, vector<1x16x1xf32>,
    %123 = vector.extract_strided_slice %4 {offsets = [0, 24], sizes = [16, 8], strides = [1, 1]} : vector<16x32xbf16> to vector<16x8xbf16>
    %124 = vector.extract_strided_slice %6 {offsets = [0, 24], sizes = [16, 8], strides = [1, 1]} : vector<16x32xbf16> to vector<16x8xbf16>
    %125 = vector.extract_strided_slice %8 {offsets = [0, 24], sizes = [16, 8], strides = [1, 1]} : vector<16x32xbf16> to vector<16x8xbf16>
    %cst_75 = arith.constant dense<0.000000e+00> : vector<16x16xf32>
    %126 = tpu.matmul %123, %124, %cst_75 {dimension_numbers = #tpu.dot_dimension_numbers<[1], [1], [0], [0], [0, 0, 1, 0], [], []>} : vector<16x8xbf16>, vector<16x8xbf16>, vector<16x16xf32> -> vector<16x16xf32>
    %cst_76 = arith.constant 0.353553385 : f32
    %127 = vector.broadcast %cst_76 : f32 to vector<16x16xf32>
    %128 = arith.mulf %126, %127 : vector<16x16xf32>
    %c3 = arith.constant 3 : index
    %c0_77 = arith.constant 0 : index
    %c0_78 = arith.constant 0 : index
    %129 = vector.load %arg10[%c3, %c0_77, %c0_78] : memref<4x16x1xf32, #tpu.memory_space<vmem>>, vector<1x16x1xf32>
    %130 = vector.shape_cast %129 : vector<1x16x1xf32> to vector<16x1xf32>
    %cst_79 = arith.constant dense<0xFF800000> : vector<16xf32>
    %131 = vector.multi_reduction <maximumf>, %128, %cst_79 [1] : vector<16x16xf32> to vector<16xf32>
    %132 = vector.shape_cast %131 : vector<16xf32> to vector<16x1xf32>
    %133 = arith.maximumf %130, %132 : vector<16x1xf32>
    %134 = arith.subf %130, %133 : vector<16x1xf32>
    %135 = math.exp %134 : vector<16x1xf32>
    %136 = vector.broadcast %133 : vector<16x1xf32> to vector<16x16xf32>
    %137 = arith.subf %128, %136 : vector<16x16xf32>
    %138 = math.exp %137 : vector<16x16xf32>
    %c3_80 = arith.constant 3 : index
    %c0_81 = arith.constant 0 : index
    %c0_82 = arith.constant 0 : index
    %139 = vector.load %arg11[%c3_80, %c0_81, %c0_82] : memref<4x16x1xf32, #tpu.memory_space<vmem>>, vector<1x16x1xf32>
    %140 = vector.shape_cast %139 : vector<1x16x1xf32> to vector<16x1xf32>
    %141 = arith.mulf %135, %140 : vector<16x1xf32>
    %cst_83 = arith.constant dense<0.000000e+00> : vector<16xf32>
    %142 = vector.multi_reduction <add>, %138, %cst_83 [1] : vector<16x16xf32> to vector<16xf32>
    %143 = vector.shape_cast %142 : vector<16xf32> to vector<16x1xf32>
    %144 = arith.addf %141, %143 : vector<16x1xf32>
    %c3_84 = arith.constant 3 : index
    %c0_85 = arith.constant 0 : index
    %c0_86 = arith.constant 0 : index
    %145 = vector.load %arg11[%c3_84, %c0_85, %c0_86] : memref<4x16x1xf32, #tpu.memory_space<vmem>>, vector<1x16x1xf32>
    %146 = vector.shape_cast %145 : vector<1x16x1xf32> to vector<16x1xf32>
    %147 = vector.shape_cast %144 : vector<16x1xf32> to vector<1x16x1xf32>
    tpu.vector_store %arg11[%c3_84, %c0_85, %c0_86], %147 {strides = array<i32>} : memref<4x16x1xf32, #tpu.memory_space<vmem>>, vector<1x16x1xf32>,
    %c3_87 = arith.constant 3 : index
    %c0_88 = arith.constant 0 : index
    %c0_89 = arith.constant 0 : index
    %148 = vector.load %arg12[%c3_87, %c0_88, %c0_89] : memref<4x16x8xf32, #tpu.memory_space<vmem>>, vector<1x16x8xf32>
    %149 = vector.shape_cast %148 : vector<1x16x8xf32> to vector<16x8xf32>
    %150 = vector.broadcast %135 : vector<16x1xf32> to vector<16x8xf32>
    %151 = arith.mulf %150, %149 : vector<16x8xf32>
    %152 = arith.truncf %138 : vector<16x16xf32> to vector<16x16xbf16>
    %cst_90 = arith.constant dense<0.000000e+00> : vector<16x8xf32>
    %153 = tpu.matmul %152, %125, %cst_90 {dimension_numbers = #tpu.dot_dimension_numbers<[1], [0], [0], [1], [0, 0, 1, 1], [], []>} : vector<16x16xbf16>, vector<16x8xbf16>, vector<16x8xf32> -> vector<16x8xf32>
    %154 = arith.addf %151, %153 : vector<16x8xf32>
    %c3_91 = arith.constant 3 : index
    %c0_92 = arith.constant 0 : index
    %c0_93 = arith.constant 0 : index
    %155 = vector.load %arg12[%c3_91, %c0_92, %c0_93] : memref<4x16x8xf32, #tpu.memory_space<vmem>>, vector<1x16x8xf32>
    %156 = vector.shape_cast %155 : vector<1x16x8xf32> to vector<16x8xf32>
    %157 = vector.shape_cast %154 : vector<16x8xf32> to vector<1x16x8xf32>
    tpu.vector_store %arg12[%c3_91, %c0_92, %c0_93], %157 {strides = array<i32>} : memref<4x16x8xf32, #tpu.memory_space<vmem>>, vector<1x16x8xf32>,
    %c3_94 = arith.constant 3 : index
    %c0_95 = arith.constant 0 : index
    %c0_96 = arith.constant 0 : index
    %158 = vector.load %arg10[%c3_94, %c0_95, %c0_96] : memref<4x16x1xf32, #tpu.memory_space<vmem>>, vector<1x16x1xf32>
    %159 = vector.shape_cast %158 : vector<1x16x1xf32> to vector<16x1xf32>
    %160 = vector.shape_cast %133 : vector<16x1xf32> to vector<1x16x1xf32>
    tpu.vector_store %arg10[%c3_94, %c0_95, %c0_96], %160 {strides = array<i32>} : memref<4x16x1xf32, #tpu.memory_space<vmem>>, vector<1x16x1xf32>,
    %c0_i32_97 = arith.constant 0 : i32
    %161 = arith.cmpi eq, %arg2, %c0_i32_97 : i32
    %162 = arith.extui %161 : i1 to i32
    %c0_i32_98 = arith.constant 0 : i32
    %163 = arith.cmpi ne, %162, %c0_i32_98 : i32
    scf.if %163 {
      %c0_99 = arith.constant 0 : index
      %c0_100 = arith.constant 0 : index
      %c0_101 = arith.constant 0 : index
      %164 = vector.load %arg11[%c0_99, %c0_100, %c0_101] : memref<4x16x1xf32, #tpu.memory_space<vmem>>, vector<1x16x1xf32>
      %165 = vector.shape_cast %164 : vector<1x16x1xf32> to vector<16x1xf32>
      %166 = tpu.reciprocal %165 {approx = true} : vector<16x1xf32> -> vector<16x1xf32>
      %c0_102 = arith.constant 0 : index
      %c0_103 = arith.constant 0 : index
      %c0_104 = arith.constant 0 : index
      %167 = vector.load %arg12[%c0_102, %c0_103, %c0_104] : memref<4x16x8xf32, #tpu.memory_space<vmem>>, vector<1x16x8xf32>
      %168 = vector.shape_cast %167 : vector<1x16x8xf32> to vector<16x8xf32>
      %169 = vector.broadcast %166 : vector<16x1xf32> to vector<16x8xf32>
      %170 = arith.mulf %168, %169 : vector<16x8xf32>
      %c1_105 = arith.constant 1 : index
      %c0_106 = arith.constant 0 : index
      %c0_107 = arith.constant 0 : index
      %171 = vector.load %arg11[%c1_105, %c0_106, %c0_107] : memref<4x16x1xf32, #tpu.memory_space<vmem>>, vector<1x16x1xf32>
      %172 = vector.shape_cast %171 : vector<1x16x1xf32> to vector<16x1xf32>
      %173 = tpu.reciprocal %172 {approx = true} : vector<16x1xf32> -> vector<16x1xf32>
      %c1_108 = arith.constant 1 : index
      %c0_109 = arith.constant 0 : index
      %c0_110 = arith.constant 0 : index
      %174 = vector.load %arg12[%c1_108, %c0_109, %c0_110] : memref<4x16x8xf32, #tpu.memory_space<vmem>>, vector<1x16x8xf32>
      %175 = vector.shape_cast %174 : vector<1x16x8xf32> to vector<16x8xf32>
      %176 = vector.broadcast %173 : vector<16x1xf32> to vector<16x8xf32>
      %177 = arith.mulf %175, %176 : vector<16x8xf32>
      %c2_111 = arith.constant 2 : index
      %c0_112 = arith.constant 0 : index
      %c0_113 = arith.constant 0 : index
      %178 = vector.load %arg11[%c2_111, %c0_112, %c0_113] : memref<4x16x1xf32, #tpu.memory_space<vmem>>, vector<1x16x1xf32>
      %179 = vector.shape_cast %178 : vector<1x16x1xf32> to vector<16x1xf32>
      %180 = tpu.reciprocal %179 {approx = true} : vector<16x1xf32> -> vector<16x1xf32>
      %c2_114 = arith.constant 2 : index
      %c0_115 = arith.constant 0 : index
      %c0_116 = arith.constant 0 : index
      %181 = vector.load %arg12[%c2_114, %c0_115, %c0_116] : memref<4x16x8xf32, #tpu.memory_space<vmem>>, vector<1x16x8xf32>
      %182 = vector.shape_cast %181 : vector<1x16x8xf32> to vector<16x8xf32>
      %183 = vector.broadcast %180 : vector<16x1xf32> to vector<16x8xf32>
      %184 = arith.mulf %182, %183 : vector<16x8xf32>
      %c3_117 = arith.constant 3 : index
      %c0_118 = arith.constant 0 : index
      %c0_119 = arith.constant 0 : index
      %185 = vector.load %arg11[%c3_117, %c0_118, %c0_119] : memref<4x16x1xf32, #tpu.memory_space<vmem>>, vector<1x16x1xf32>
      %186 = vector.shape_cast %185 : vector<1x16x1xf32> to vector<16x1xf32>
      %187 = tpu.reciprocal %186 {approx = true} : vector<16x1xf32> -> vector<16x1xf32>
      %c3_120 = arith.constant 3 : index
      %c0_121 = arith.constant 0 : index
      %c0_122 = arith.constant 0 : index
      %188 = vector.load %arg12[%c3_120, %c0_121, %c0_122] : memref<4x16x8xf32, #tpu.memory_space<vmem>>, vector<1x16x8xf32>
      %189 = vector.shape_cast %188 : vector<1x16x8xf32> to vector<16x8xf32>
      %190 = vector.broadcast %187 : vector<16x1xf32> to vector<16x8xf32>
      %191 = arith.mulf %189, %190 : vector<16x8xf32>
      %192 = tpu.concatenate %170, %177, %184, %191 in 1 : vector<16x8xf32>, vector<16x8xf32>, vector<16x8xf32>, vector<16x8xf32> -> vector<16x32xf32>
      %193 = arith.truncf %192 : vector<16x32xf32> to vector<16x32xbf16>
      %c0_123 = arith.constant 0 : index
      %c0_124 = arith.constant 0 : index
      %194 = vector.load %arg6[%c0_123, %c0_124] : memref<32x32xbf16, #tpu.memory_space<vmem>>, vector<32x32xbf16>
      %cst_125 = arith.constant dense<0.000000e+00> : vector<16x32xf32>
      %195 = tpu.matmul %193, %194, %cst_125 {dimension_numbers = #tpu.dot_dimension_numbers<[1], [0], [0], [1], [0, 0, 1, 1], [], []>} : vector<16x32xbf16>, vector<32x32xbf16>, vector<16x32xf32> -> vector<16x32xf32>
      %c0_126 = arith.constant 0 : index
      %c0_127 = arith.constant 0 : index
      %196 = vector.load %arg7[%c0_126, %c0_127] : memref<1x32xf32, #tpu.memory_space<vmem>>, vector<1x32xf32>
      %197 = vector.broadcast %196 : vector<1x32xf32> to vector<16x32xf32>
      %198 = arith.addf %195, %197 : vector<16x32xf32>
      %c0_128 = arith.constant 0 : index
      %c0_129 = arith.constant 0 : index
      %c0_130 = arith.constant 0 : index
      %199 = vector.load %arg8[%c0_128, %c0_129, %c0_130] : memref<1x16x32xf32, #tpu.memory_space<vmem>>, vector<1x16x32xf32>
      %200 = vector.shape_cast %199 : vector<1x16x32xf32> to vector<16x32xf32>
      %201 = arith.addf %198, %200 : vector<16x32xf32>
      %c0_131 = arith.constant 0 : index
      %c0_132 = arith.constant 0 : index
      %c0_133 = arith.constant 0 : index
      %202 = vector.load %arg9[%c0_131, %c0_132, %c0_133] : memref<1x16x32xf32, #tpu.memory_space<vmem>>, vector<1x16x32xf32>
      %203 = vector.shape_cast %202 : vector<1x16x32xf32> to vector<16x32xf32>
      %204 = vector.shape_cast %201 : vector<16x32xf32> to vector<1x16x32xf32>
      tpu.vector_store %arg9[%c0_131, %c0_132, %c0_133], %204 {strides = array<i32>} : memref<1x16x32xf32, #tpu.memory_space<vmem>>, vector<1x16x32xf32>,
    } else {
    }
    return
  }
  func.func @transform_0(%arg0: i32, %arg1: i32, %arg2: i32) -> (i32, i32, i32) {
    %c0_i32 = arith.constant 0 : i32
    %c0_i32_0 = arith.constant 0 : i32
    return %arg0, %arg1, %c0_i32 : i32, i32, i32
  }
  func.func @transform_1(%arg0: i32, %arg1: i32, %arg2: i32) -> (i32, i32, i32) {
    %c0_i32 = arith.constant 0 : i32
    %c0_i32_0 = arith.constant 0 : i32
    return %arg0, %arg2, %c0_i32 : i32, i32, i32
  }
  func.func @transform_2(%arg0: i32, %arg1: i32, %arg2: i32) -> (i32, i32, i32) {
    %c0_i32 = arith.constant 0 : i32
    %c0_i32_0 = arith.constant 0 : i32
    return %arg0, %arg2, %c0_i32 : i32, i32, i32
  }
  func.func @transform_3(%arg0: i32, %arg1: i32, %arg2: i32) -> (i32, i32) {
    %c0_i32 = arith.constant 0 : i32
    %c0_i32_0 = arith.constant 0 : i32
    %c0_i32_1 = arith.constant 0 : i32
    return %c0_i32, %c0_i32_0 : i32, i32
  }
  func.func @transform_4(%arg0: i32, %arg1: i32, %arg2: i32) -> (i32, i32) {
    %c0_i32 = arith.constant 0 : i32
    %c0_i32_0 = arith.constant 0 : i32
    %c0_i32_1 = arith.constant 0 : i32
    return %c0_i32, %c0_i32_0 : i32, i32
  }
  func.func @transform_5(%arg0: i32, %arg1: i32, %arg2: i32) -> (i32, i32, i32) {
    %c0_i32 = arith.constant 0 : i32
    %c0_i32_0 = arith.constant 0 : i32
    return %arg0, %arg1, %c0_i32 : i32, i32, i32
  }
  func.func @transform_6(%arg0: i32, %arg1: i32, %arg2: i32) -> (i32, i32, i32) {
    %c0_i32 = arith.constant 0 : i32
    %c0_i32_0 = arith.constant 0 : i32
    return %arg0, %arg1, %c0_i32 : i32, i32, i32
  }
}

module attributes {stable_mosaic.version = 11 : i64} {
  func.func @_ln_qkv_kernel(%arg0: i32, %arg1: memref<32x32xf32, #tpu.memory_space<vmem>>, %arg2: memref<1x32xf32, #tpu.memory_space<vmem>>, %arg3: memref<1x32xf32, #tpu.memory_space<vmem>>, %arg4: memref<32x32xbf16, #tpu.memory_space<vmem>>, %arg5: memref<32x32xbf16, #tpu.memory_space<vmem>>, %arg6: memref<32x32xbf16, #tpu.memory_space<vmem>>, %arg7: memref<32x32xbf16, #tpu.memory_space<vmem>>, %arg8: memref<32x32xbf16, #tpu.memory_space<vmem>>, %arg9: memref<32x32xbf16, #tpu.memory_space<vmem>>) attributes {dimension_semantics = [#tpu.dimension_semantics<parallel>], iteration_bounds = array<i64: 1>, scalar_prefetch = 0 : i64, scratch_operands = 0 : i64, tpu.core_type = #tpu.core_type<tc>, window_params = [{transform_indices = @transform_0, window_bounds = array<i64: 32, 32>}, {pipeline_mode = #tpu.pipeline_mode<synchronous>, transform_indices = @transform_1, window_bounds = array<i64: 1, 32>}, {pipeline_mode = #tpu.pipeline_mode<synchronous>, transform_indices = @transform_2, window_bounds = array<i64: 1, 32>}, {pipeline_mode = #tpu.pipeline_mode<synchronous>, transform_indices = @transform_3, window_bounds = array<i64: 32, 32>}, {pipeline_mode = #tpu.pipeline_mode<synchronous>, transform_indices = @transform_4, window_bounds = array<i64: 32, 32>}, {pipeline_mode = #tpu.pipeline_mode<synchronous>, transform_indices = @transform_5, window_bounds = array<i64: 32, 32>}, {transform_indices = @transform_6, window_bounds = array<i64: 32, 32>}, {transform_indices = @transform_7, window_bounds = array<i64: 32, 32>}, {transform_indices = @transform_8, window_bounds = array<i64: 32, 32>}]} {
    %c0 = arith.constant 0 : index
    %c0_0 = arith.constant 0 : index
    %0 = vector.load %arg1[%c0, %c0_0] : memref<32x32xf32, #tpu.memory_space<vmem>>, vector<32x32xf32>
    %c0_1 = arith.constant 0 : index
    %c0_2 = arith.constant 0 : index
    %1 = vector.load %arg2[%c0_1, %c0_2] : memref<1x32xf32, #tpu.memory_space<vmem>>, vector<1x32xf32>
    %c0_3 = arith.constant 0 : index
    %c0_4 = arith.constant 0 : index
    %2 = vector.load %arg3[%c0_3, %c0_4] : memref<1x32xf32, #tpu.memory_space<vmem>>, vector<1x32xf32>
    %cst = arith.constant dense<0.000000e+00> : vector<32xf32>
    %3 = vector.multi_reduction <add>, %0, %cst [1] : vector<32x32xf32> to vector<32xf32>
    %4 = vector.shape_cast %3 : vector<32xf32> to vector<32x1xf32>
    %cst_5 = arith.constant 3.200000e+01 : f32
    %5 = vector.broadcast %cst_5 : f32 to vector<32x1xf32>
    %6 = arith.divf %4, %5 : vector<32x1xf32>
    %7 = vector.broadcast %6 : vector<32x1xf32> to vector<32x32xf32>
    %8 = arith.subf %0, %7 : vector<32x32xf32>
    %9 = arith.mulf %8, %8 : vector<32x32xf32>
    %cst_6 = arith.constant dense<0.000000e+00> : vector<32xf32>
    %10 = vector.multi_reduction <add>, %9, %cst_6 [1] : vector<32x32xf32> to vector<32xf32>
    %11 = vector.shape_cast %10 : vector<32xf32> to vector<32x1xf32>
    %cst_7 = arith.constant 3.200000e+01 : f32
    %12 = vector.broadcast %cst_7 : f32 to vector<32x1xf32>
    %13 = arith.divf %11, %12 : vector<32x1xf32>
    %14 = vector.broadcast %6 : vector<32x1xf32> to vector<32x32xf32>
    %15 = arith.subf %0, %14 : vector<32x32xf32>
    %cst_8 = arith.constant 9.99999974E-6 : f32
    %16 = vector.broadcast %cst_8 : f32 to vector<32x1xf32>
    %17 = arith.addf %13, %16 : vector<32x1xf32>
    %18 = math.rsqrt %17 : vector<32x1xf32>
    %19 = vector.broadcast %18 : vector<32x1xf32> to vector<32x32xf32>
    %20 = arith.mulf %15, %19 : vector<32x32xf32>
    %21 = vector.broadcast %1 : vector<1x32xf32> to vector<32x32xf32>
    %22 = arith.mulf %20, %21 : vector<32x32xf32>
    %23 = vector.broadcast %2 : vector<1x32xf32> to vector<32x32xf32>
    %24 = arith.addf %22, %23 : vector<32x32xf32>
    %25 = arith.truncf %24 : vector<32x32xf32> to vector<32x32xbf16>
    %c0_9 = arith.constant 0 : index
    %c0_10 = arith.constant 0 : index
    %26 = vector.load %arg4[%c0_9, %c0_10] : memref<32x32xbf16, #tpu.memory_space<vmem>>, vector<32x32xbf16>
    %cst_11 = arith.constant dense<0.000000e+00> : vector<32x32xf32>
    %27 = tpu.matmul %25, %26, %cst_11 {dimension_numbers = #tpu.dot_dimension_numbers<[1], [0], [0], [1], [0, 0, 1, 1], [], []>} : vector<32x32xbf16>, vector<32x32xbf16>, vector<32x32xf32> -> vector<32x32xf32>
    %28 = arith.truncf %27 : vector<32x32xf32> to vector<32x32xbf16>
    %c0_12 = arith.constant 0 : index
    %c0_13 = arith.constant 0 : index
    %29 = vector.load %arg7[%c0_12, %c0_13] : memref<32x32xbf16, #tpu.memory_space<vmem>>, vector<32x32xbf16>
    tpu.vector_store %arg7[%c0_12, %c0_13], %28 {strides = array<i32>} : memref<32x32xbf16, #tpu.memory_space<vmem>>, vector<32x32xbf16>,
    %c0_14 = arith.constant 0 : index
    %c0_15 = arith.constant 0 : index
    %30 = vector.load %arg5[%c0_14, %c0_15] : memref<32x32xbf16, #tpu.memory_space<vmem>>, vector<32x32xbf16>
    %cst_16 = arith.constant dense<0.000000e+00> : vector<32x32xf32>
    %31 = tpu.matmul %25, %30, %cst_16 {dimension_numbers = #tpu.dot_dimension_numbers<[1], [0], [0], [1], [0, 0, 1, 1], [], []>} : vector<32x32xbf16>, vector<32x32xbf16>, vector<32x32xf32> -> vector<32x32xf32>
    %32 = arith.truncf %31 : vector<32x32xf32> to vector<32x32xbf16>
    %c0_17 = arith.constant 0 : index
    %c0_18 = arith.constant 0 : index
    %33 = vector.load %arg8[%c0_17, %c0_18] : memref<32x32xbf16, #tpu.memory_space<vmem>>, vector<32x32xbf16>
    tpu.vector_store %arg8[%c0_17, %c0_18], %32 {strides = array<i32>} : memref<32x32xbf16, #tpu.memory_space<vmem>>, vector<32x32xbf16>,
    %c0_19 = arith.constant 0 : index
    %c0_20 = arith.constant 0 : index
    %34 = vector.load %arg6[%c0_19, %c0_20] : memref<32x32xbf16, #tpu.memory_space<vmem>>, vector<32x32xbf16>
    %cst_21 = arith.constant dense<0.000000e+00> : vector<32x32xf32>
    %35 = tpu.matmul %25, %34, %cst_21 {dimension_numbers = #tpu.dot_dimension_numbers<[1], [0], [0], [1], [0, 0, 1, 1], [], []>} : vector<32x32xbf16>, vector<32x32xbf16>, vector<32x32xf32> -> vector<32x32xf32>
    %36 = arith.truncf %35 : vector<32x32xf32> to vector<32x32xbf16>
    %c0_22 = arith.constant 0 : index
    %c0_23 = arith.constant 0 : index
    %37 = vector.load %arg9[%c0_22, %c0_23] : memref<32x32xbf16, #tpu.memory_space<vmem>>, vector<32x32xbf16>
    tpu.vector_store %arg9[%c0_22, %c0_23], %36 {strides = array<i32>} : memref<32x32xbf16, #tpu.memory_space<vmem>>, vector<32x32xbf16>,
    return
  }
  func.func @transform_0(%arg0: i32) -> (i32, i32) {
    %c0_i32 = arith.constant 0 : i32
    %c0_i32_0 = arith.constant 0 : i32
    return %arg0, %c0_i32 : i32, i32
  }
  func.func @transform_1(%arg0: i32) -> (i32, i32) {
    %c0_i32 = arith.constant 0 : i32
    %c0_i32_0 = arith.constant 0 : i32
    %c0_i32_1 = arith.constant 0 : i32
    return %c0_i32, %c0_i32_0 : i32, i32
  }
  func.func @transform_2(%arg0: i32) -> (i32, i32) {
    %c0_i32 = arith.constant 0 : i32
    %c0_i32_0 = arith.constant 0 : i32
    %c0_i32_1 = arith.constant 0 : i32
    return %c0_i32, %c0_i32_0 : i32, i32
  }
  func.func @transform_3(%arg0: i32) -> (i32, i32) {
    %c0_i32 = arith.constant 0 : i32
    %c0_i32_0 = arith.constant 0 : i32
    %c0_i32_1 = arith.constant 0 : i32
    return %c0_i32, %c0_i32_0 : i32, i32
  }
  func.func @transform_4(%arg0: i32) -> (i32, i32) {
    %c0_i32 = arith.constant 0 : i32
    %c0_i32_0 = arith.constant 0 : i32
    %c0_i32_1 = arith.constant 0 : i32
    return %c0_i32, %c0_i32_0 : i32, i32
  }
  func.func @transform_5(%arg0: i32) -> (i32, i32) {
    %c0_i32 = arith.constant 0 : i32
    %c0_i32_0 = arith.constant 0 : i32
    %c0_i32_1 = arith.constant 0 : i32
    return %c0_i32, %c0_i32_0 : i32, i32
  }
  func.func @transform_6(%arg0: i32) -> (i32, i32) {
    %c0_i32 = arith.constant 0 : i32
    %c0_i32_0 = arith.constant 0 : i32
    return %arg0, %c0_i32 : i32, i32
  }
  func.func @transform_7(%arg0: i32) -> (i32, i32) {
    %c0_i32 = arith.constant 0 : i32
    %c0_i32_0 = arith.constant 0 : i32
    return %arg0, %c0_i32 : i32, i32
  }
  func.func @transform_8(%arg0: i32) -> (i32, i32) {
    %c0_i32 = arith.constant 0 : i32
    %c0_i32_0 = arith.constant 0 : i32
    return %arg0, %c0_i32 : i32, i32
  }
}

module attributes {stable_mosaic.version = 11 : i64} {
  func.func @_flash_mha_kernel(%arg0: i32, %arg1: i32, %arg2: i32, %arg3: memref<1x16x32xbf16, #tpu.memory_space<vmem>>, %arg4: memref<1x8x32xbf16, #tpu.memory_space<vmem>>, %arg5: memref<1x8x32xbf16, #tpu.memory_space<vmem>>, %arg6: memref<32x32xbf16, #tpu.memory_space<vmem>>, %arg7: memref<1x32xf32, #tpu.memory_space<vmem>>, %arg8: memref<1x16x32xf32, #tpu.memory_space<vmem>>, %arg9: memref<1x16x32xf32, #tpu.memory_space<vmem>>, %arg10: memref<4x16x1xf32, #tpu.memory_space<vmem>>, %arg11: memref<4x16x1xf32, #tpu.memory_space<vmem>>, %arg12: memref<4x16x8xf32, #tpu.memory_space<vmem>>) attributes {dimension_semantics = [#tpu.dimension_semantics<parallel>, #tpu.dimension_semantics<parallel>, #tpu.dimension_semantics<arbitrary>], iteration_bounds = array<i64: 2, 1, 1>, scalar_prefetch = 0 : i64, scratch_operands = 3 : i64, tpu.core_type = #tpu.core_type<tc>, window_params = [{transform_indices = @transform_0, window_bounds = array<i64: 1, 16, 32>}, {transform_indices = @transform_1, window_bounds = array<i64: 1, 8, 32>}, {transform_indices = @transform_2, window_bounds = array<i64: 1, 8, 32>}, {pipeline_mode = #tpu.pipeline_mode<synchronous>, transform_indices = @transform_3, window_bounds = array<i64: 32, 32>}, {pipeline_mode = #tpu.pipeline_mode<synchronous>, transform_indices = @transform_4, window_bounds = array<i64: 1, 32>}, {transform_indices = @transform_5, window_bounds = array<i64: 1, 16, 32>}, {transform_indices = @transform_6, window_bounds = array<i64: 1, 16, 32>}]} {
    %c0_i32 = arith.constant 0 : i32
    %0 = arith.cmpi eq, %arg2, %c0_i32 : i32
    %1 = arith.extui %0 : i1 to i32
    %c0_i32_0 = arith.constant 0 : i32
    %2 = arith.cmpi ne, %1, %c0_i32_0 : i32
    scf.if %2 {
      %cst_99 = arith.constant 0xFF800000 : f32
      %164 = vector.broadcast %cst_99 : f32 to vector<4x16x1xf32>
      %c0_100 = arith.constant 0 : index
      %c0_101 = arith.constant 0 : index
      %c0_102 = arith.constant 0 : index
      %165 = vector.load %arg10[%c0_100, %c0_101, %c0_102] : memref<4x16x1xf32, #tpu.memory_space<vmem>>, vector<4x16x1xf32>
      tpu.vector_store %arg10[%c0_100, %c0_101, %c0_102], %164 {strides = array<i32>} : memref<4x16x1xf32, #tpu.memory_space<vmem>>, vector<4x16x1xf32>,
      %cst_103 = arith.constant 0.000000e+00 : f32
      %166 = vector.broadcast %cst_103 : f32 to vector<4x16x1xf32>
      %c0_104 = arith.constant 0 : index
      %c0_105 = arith.constant 0 : index
      %c0_106 = arith.constant 0 : index
      %167 = vector.load %arg11[%c0_104, %c0_105, %c0_106] : memref<4x16x1xf32, #tpu.memory_space<vmem>>, vector<4x16x1xf32>
      tpu.vector_store %arg11[%c0_104, %c0_105, %c0_106], %166 {strides = array<i32>} : memref<4x16x1xf32, #tpu.memory_space<vmem>>, vector<4x16x1xf32>,
      %cst_107 = arith.constant 0.000000e+00 : f32
      %168 = vector.broadcast %cst_107 : f32 to vector<4x16x8xf32>
      %c0_108 = arith.constant 0 : index
      %c0_109 = arith.constant 0 : index
      %c0_110 = arith.constant 0 : index
      %169 = vector.load %arg12[%c0_108, %c0_109, %c0_110] : memref<4x16x8xf32, #tpu.memory_space<vmem>>, vector<4x16x8xf32>
      tpu.vector_store %arg12[%c0_108, %c0_109, %c0_110], %168 {strides = array<i32>} : memref<4x16x8xf32, #tpu.memory_space<vmem>>, vector<4x16x8xf32>,
    } else {
    }
    %c0 = arith.constant 0 : index
    %c0_1 = arith.constant 0 : index
    %c0_2 = arith.constant 0 : index
    %3 = vector.load %arg3[%c0, %c0_1, %c0_2] : memref<1x16x32xbf16, #tpu.memory_space<vmem>>, vector<1x16x32xbf16>
    %4 = vector.shape_cast %3 : vector<1x16x32xbf16> to vector<16x32xbf16>
    %c0_3 = arith.constant 0 : index
    %c0_4 = arith.constant 0 : index
    %c0_5 = arith.constant 0 : index
    %5 = vector.load %arg4[%c0_3, %c0_4, %c0_5] : memref<1x8x32xbf16, #tpu.memory_space<vmem>>, vector<1x8x32xbf16>
    %6 = vector.shape_cast %5 : vector<1x8x32xbf16> to vector<8x32xbf16>
    %c0_6 = arith.constant 0 : index
    %c0_7 = arith.constant 0 : index
    %c0_8 = arith.constant 0 : index
    %7 = vector.load %arg5[%c0_6, %c0_7, %c0_8] : memref<1x8x32xbf16, #tpu.memory_space<vmem>>, vector<1x8x32xbf16>
    %8 = vector.shape_cast %7 : vector<1x8x32xbf16> to vector<8x32xbf16>
    %9 = vector.extract_strided_slice %4 {offsets = [0, 0], sizes = [16, 8], strides = [1, 1]} : vector<16x32xbf16> to vector<16x8xbf16>
    %10 = vector.extract_strided_slice %6 {offsets = [0, 0], sizes = [8, 8], strides = [1, 1]} : vector<8x32xbf16> to vector<8x8xbf16>
    %11 = vector.extract_strided_slice %8 {offsets = [0, 0], sizes = [8, 8], strides = [1, 1]} : vector<8x32xbf16> to vector<8x8xbf16>
    %cst = arith.constant dense<0.000000e+00> : vector<16x8xf32>
    %12 = tpu.matmul %9, %10, %cst {dimension_numbers = #tpu.dot_dimension_numbers<[1], [1], [0], [0], [0, 0, 1, 0], [], []>} : vector<16x8xbf16>, vector<8x8xbf16>, vector<16x8xf32> -> vector<16x8xf32>
    %cst_9 = arith.constant 0.353553385 : f32
    %13 = vector.broadcast %cst_9 : f32 to vector<16x8xf32>
    %14 = arith.mulf %12, %13 : vector<16x8xf32>
    %c0_10 = arith.constant 0 : index
    %c0_11 = arith.constant 0 : index
    %c0_12 = arith.constant 0 : index
    %15 = vector.load %arg10[%c0_10, %c0_11, %c0_12] : memref<4x16x1xf32, #tpu.memory_space<vmem>>, vector<1x16x1xf32>
    %16 = vector.shape_cast %15 : vector<1x16x1xf32> to vector<16x1xf32>
    %cst_13 = arith.constant dense<0xFF800000> : vector<16xf32>
    %17 = vector.multi_reduction <maximumf>, %14, %cst_13 [1] : vector<16x8xf32> to vector<16xf32>
    %18 = vector.shape_cast %17 : vector<16xf32> to vector<16x1xf32>
    %19 = arith.maximumf %16, %18 : vector<16x1xf32>
    %20 = arith.subf %16, %19 : vector<16x1xf32>
    %21 = math.exp %20 : vector<16x1xf32>
    %22 = vector.broadcast %19 : vector<16x1xf32> to vector<16x8xf32>
    %23 = arith.subf %14, %22 : vector<16x8xf32>
    %24 = math.exp %23 : vector<16x8xf32>
    %c0_14 = arith.constant 0 : index
    %c0_15 = arith.constant 0 : index
    %c0_16 = arith.constant 0 : index
    %25 = vector.load %arg11[%c0_14, %c0_15, %c0_16] : memref<4x16x1xf32, #tpu.memory_space<vmem>>, vector<1x16x1xf32>
    %26 = vector.shape_cast %25 : vector<1x16x1xf32> to vector<16x1xf32>
    %27 = arith.mulf %21, %26 : vector<16x1xf32>
    %cst_17 = arith.constant dense<0.000000e+00> : vector<16xf32>
    %28 = vector.multi_reduction <add>, %24, %cst_17 [1] : vector<16x8xf32> to vector<16xf32>
    %29 = vector.shape_cast %28 : vector<16xf32> to vector<16x1xf32>
    %30 = arith.addf %27, %29 : vector<16x1xf32>
    %c0_18 = arith.constant 0 : index
    %c0_19 = arith.constant 0 : index
    %c0_20 = arith.constant 0 : index
    %31 = vector.load %arg11[%c0_18, %c0_19, %c0_20] : memref<4x16x1xf32, #tpu.memory_space<vmem>>, vector<1x16x1xf32>
    %32 = vector.shape_cast %31 : vector<1x16x1xf32> to vector<16x1xf32>
    %33 = vector.shape_cast %30 : vector<16x1xf32> to vector<1x16x1xf32>
    tpu.vector_store %arg11[%c0_18, %c0_19, %c0_20], %33 {strides = array<i32>} : memref<4x16x1xf32, #tpu.memory_space<vmem>>, vector<1x16x1xf32>,
    %c0_21 = arith.constant 0 : index
    %c0_22 = arith.constant 0 : index
    %c0_23 = arith.constant 0 : index
    %34 = vector.load %arg12[%c0_21, %c0_22, %c0_23] : memref<4x16x8xf32, #tpu.memory_space<vmem>>, vector<1x16x8xf32>
    %35 = vector.shape_cast %34 : vector<1x16x8xf32> to vector<16x8xf32>
    %36 = vector.broadcast %21 : vector<16x1xf32> to vector<16x8xf32>
    %37 = arith.mulf %36, %35 : vector<16x8xf32>
    %38 = arith.truncf %24 : vector<16x8xf32> to vector<16x8xbf16>
    %cst_24 = arith.constant dense<0.000000e+00> : vector<16x8xf32>
    %39 = tpu.matmul %38, %11, %cst_24 {dimension_numbers = #tpu.dot_dimension_numbers<[1], [0], [0], [1], [0, 0, 1, 1], [], []>} : vector<16x8xbf16>, vector<8x8xbf16>, vector<16x8xf32> -> vector<16x8xf32>
    %40 = arith.addf %37, %39 : vector<16x8xf32>
    %c0_25 = arith.constant 0 : index
    %c0_26 = arith.constant 0 : index
    %c0_27 = arith.constant 0 : index
    %41 = vector.load %arg12[%c0_25, %c0_26, %c0_27] : memref<4x16x8xf32, #tpu.memory_space<vmem>>, vector<1x16x8xf32>
    %42 = vector.shape_cast %41 : vector<1x16x8xf32> to vector<16x8xf32>
    %43 = vector.shape_cast %40 : vector<16x8xf32> to vector<1x16x8xf32>
    tpu.vector_store %arg12[%c0_25, %c0_26, %c0_27], %43 {strides = array<i32>} : memref<4x16x8xf32, #tpu.memory_space<vmem>>, vector<1x16x8xf32>,
    %c0_28 = arith.constant 0 : index
    %c0_29 = arith.constant 0 : index
    %c0_30 = arith.constant 0 : index
    %44 = vector.load %arg10[%c0_28, %c0_29, %c0_30] : memref<4x16x1xf32, #tpu.memory_space<vmem>>, vector<1x16x1xf32>
    %45 = vector.shape_cast %44 : vector<1x16x1xf32> to vector<16x1xf32>
    %46 = vector.shape_cast %19 : vector<16x1xf32> to vector<1x16x1xf32>
    tpu.vector_store %arg10[%c0_28, %c0_29, %c0_30], %46 {strides = array<i32>} : memref<4x16x1xf32, #tpu.memory_space<vmem>>, vector<1x16x1xf32>,
    %47 = vector.extract_strided_slice %4 {offsets = [0, 8], sizes = [16, 8], strides = [1, 1]} : vector<16x32xbf16> to vector<16x8xbf16>
    %48 = vector.extract_strided_slice %6 {offsets = [0, 8], sizes = [8, 8], strides = [1, 1]} : vector<8x32xbf16> to vector<8x8xbf16>
    %49 = vector.extract_strided_slice %8 {offsets = [0, 8], sizes = [8, 8], strides = [1, 1]} : vector<8x32xbf16> to vector<8x8xbf16>
    %cst_31 = arith.constant dense<0.000000e+00> : vector<16x8xf32>
    %50 = tpu.matmul %47, %48, %cst_31 {dimension_numbers = #tpu.dot_dimension_numbers<[1], [1], [0], [0], [0, 0, 1, 0], [], []>} : vector<16x8xbf16>, vector<8x8xbf16>, vector<16x8xf32> -> vector<16x8xf32>
    %cst_32 = arith.constant 0.353553385 : f32
    %51 = vector.broadcast %cst_32 : f32 to vector<16x8xf32>
    %52 = arith.mulf %50, %51 : vector<16x8xf32>
    %c1 = arith.constant 1 : index
    %c0_33 = arith.constant 0 : index
    %c0_34 = arith.constant 0 : index
    %53 = vector.load %arg10[%c1, %c0_33, %c0_34] : memref<4x16x1xf32, #tpu.memory_space<vmem>>, vector<1x16x1xf32>
    %54 = vector.shape_cast %53 : vector<1x16x1xf32> to vector<16x1xf32>
    %cst_35 = arith.constant dense<0xFF800000> : vector<16xf32>
    %55 = vector.multi_reduction <maximumf>, %52, %cst_35 [1] : vector<16x8xf32> to vector<16xf32>
    %56 = vector.shape_cast %55 : vector<16xf32> to vector<16x1xf32>
    %57 = arith.maximumf %54, %56 : vector<16x1xf32>
    %58 = arith.subf %54, %57 : vector<16x1xf32>
    %59 = math.exp %58 : vector<16x1xf32>
    %60 = vector.broadcast %57 : vector<16x1xf32> to vector<16x8xf32>
    %61 = arith.subf %52, %60 : vector<16x8xf32>
    %62 = math.exp %61 : vector<16x8xf32>
    %c1_36 = arith.constant 1 : index
    %c0_37 = arith.constant 0 : index
    %c0_38 = arith.constant 0 : index
    %63 = vector.load %arg11[%c1_36, %c0_37, %c0_38] : memref<4x16x1xf32, #tpu.memory_space<vmem>>, vector<1x16x1xf32>
    %64 = vector.shape_cast %63 : vector<1x16x1xf32> to vector<16x1xf32>
    %65 = arith.mulf %59, %64 : vector<16x1xf32>
    %cst_39 = arith.constant dense<0.000000e+00> : vector<16xf32>
    %66 = vector.multi_reduction <add>, %62, %cst_39 [1] : vector<16x8xf32> to vector<16xf32>
    %67 = vector.shape_cast %66 : vector<16xf32> to vector<16x1xf32>
    %68 = arith.addf %65, %67 : vector<16x1xf32>
    %c1_40 = arith.constant 1 : index
    %c0_41 = arith.constant 0 : index
    %c0_42 = arith.constant 0 : index
    %69 = vector.load %arg11[%c1_40, %c0_41, %c0_42] : memref<4x16x1xf32, #tpu.memory_space<vmem>>, vector<1x16x1xf32>
    %70 = vector.shape_cast %69 : vector<1x16x1xf32> to vector<16x1xf32>
    %71 = vector.shape_cast %68 : vector<16x1xf32> to vector<1x16x1xf32>
    tpu.vector_store %arg11[%c1_40, %c0_41, %c0_42], %71 {strides = array<i32>} : memref<4x16x1xf32, #tpu.memory_space<vmem>>, vector<1x16x1xf32>,
    %c1_43 = arith.constant 1 : index
    %c0_44 = arith.constant 0 : index
    %c0_45 = arith.constant 0 : index
    %72 = vector.load %arg12[%c1_43, %c0_44, %c0_45] : memref<4x16x8xf32, #tpu.memory_space<vmem>>, vector<1x16x8xf32>
    %73 = vector.shape_cast %72 : vector<1x16x8xf32> to vector<16x8xf32>
    %74 = vector.broadcast %59 : vector<16x1xf32> to vector<16x8xf32>
    %75 = arith.mulf %74, %73 : vector<16x8xf32>
    %76 = arith.truncf %62 : vector<16x8xf32> to vector<16x8xbf16>
    %cst_46 = arith.constant dense<0.000000e+00> : vector<16x8xf32>
    %77 = tpu.matmul %76, %49, %cst_46 {dimension_numbers = #tpu.dot_dimension_numbers<[1], [0], [0], [1], [0, 0, 1, 1], [], []>} : vector<16x8xbf16>, vector<8x8xbf16>, vector<16x8xf32> -> vector<16x8xf32>
    %78 = arith.addf %75, %77 : vector<16x8xf32>
    %c1_47 = arith.constant 1 : index
    %c0_48 = arith.constant 0 : index
    %c0_49 = arith.constant 0 : index
    %79 = vector.load %arg12[%c1_47, %c0_48, %c0_49] : memref<4x16x8xf32, #tpu.memory_space<vmem>>, vector<1x16x8xf32>
    %80 = vector.shape_cast %79 : vector<1x16x8xf32> to vector<16x8xf32>
    %81 = vector.shape_cast %78 : vector<16x8xf32> to vector<1x16x8xf32>
    tpu.vector_store %arg12[%c1_47, %c0_48, %c0_49], %81 {strides = array<i32>} : memref<4x16x8xf32, #tpu.memory_space<vmem>>, vector<1x16x8xf32>,
    %c1_50 = arith.constant 1 : index
    %c0_51 = arith.constant 0 : index
    %c0_52 = arith.constant 0 : index
    %82 = vector.load %arg10[%c1_50, %c0_51, %c0_52] : memref<4x16x1xf32, #tpu.memory_space<vmem>>, vector<1x16x1xf32>
    %83 = vector.shape_cast %82 : vector<1x16x1xf32> to vector<16x1xf32>
    %84 = vector.shape_cast %57 : vector<16x1xf32> to vector<1x16x1xf32>
    tpu.vector_store %arg10[%c1_50, %c0_51, %c0_52], %84 {strides = array<i32>} : memref<4x16x1xf32, #tpu.memory_space<vmem>>, vector<1x16x1xf32>,
    %85 = vector.extract_strided_slice %4 {offsets = [0, 16], sizes = [16, 8], strides = [1, 1]} : vector<16x32xbf16> to vector<16x8xbf16>
    %86 = vector.extract_strided_slice %6 {offsets = [0, 16], sizes = [8, 8], strides = [1, 1]} : vector<8x32xbf16> to vector<8x8xbf16>
    %87 = vector.extract_strided_slice %8 {offsets = [0, 16], sizes = [8, 8], strides = [1, 1]} : vector<8x32xbf16> to vector<8x8xbf16>
    %cst_53 = arith.constant dense<0.000000e+00> : vector<16x8xf32>
    %88 = tpu.matmul %85, %86, %cst_53 {dimension_numbers = #tpu.dot_dimension_numbers<[1], [1], [0], [0], [0, 0, 1, 0], [], []>} : vector<16x8xbf16>, vector<8x8xbf16>, vector<16x8xf32> -> vector<16x8xf32>
    %cst_54 = arith.constant 0.353553385 : f32
    %89 = vector.broadcast %cst_54 : f32 to vector<16x8xf32>
    %90 = arith.mulf %88, %89 : vector<16x8xf32>
    %c2 = arith.constant 2 : index
    %c0_55 = arith.constant 0 : index
    %c0_56 = arith.constant 0 : index
    %91 = vector.load %arg10[%c2, %c0_55, %c0_56] : memref<4x16x1xf32, #tpu.memory_space<vmem>>, vector<1x16x1xf32>
    %92 = vector.shape_cast %91 : vector<1x16x1xf32> to vector<16x1xf32>
    %cst_57 = arith.constant dense<0xFF800000> : vector<16xf32>
    %93 = vector.multi_reduction <maximumf>, %90, %cst_57 [1] : vector<16x8xf32> to vector<16xf32>
    %94 = vector.shape_cast %93 : vector<16xf32> to vector<16x1xf32>
    %95 = arith.maximumf %92, %94 : vector<16x1xf32>
    %96 = arith.subf %92, %95 : vector<16x1xf32>
    %97 = math.exp %96 : vector<16x1xf32>
    %98 = vector.broadcast %95 : vector<16x1xf32> to vector<16x8xf32>
    %99 = arith.subf %90, %98 : vector<16x8xf32>
    %100 = math.exp %99 : vector<16x8xf32>
    %c2_58 = arith.constant 2 : index
    %c0_59 = arith.constant 0 : index
    %c0_60 = arith.constant 0 : index
    %101 = vector.load %arg11[%c2_58, %c0_59, %c0_60] : memref<4x16x1xf32, #tpu.memory_space<vmem>>, vector<1x16x1xf32>
    %102 = vector.shape_cast %101 : vector<1x16x1xf32> to vector<16x1xf32>
    %103 = arith.mulf %97, %102 : vector<16x1xf32>
    %cst_61 = arith.constant dense<0.000000e+00> : vector<16xf32>
    %104 = vector.multi_reduction <add>, %100, %cst_61 [1] : vector<16x8xf32> to vector<16xf32>
    %105 = vector.shape_cast %104 : vector<16xf32> to vector<16x1xf32>
    %106 = arith.addf %103, %105 : vector<16x1xf32>
    %c2_62 = arith.constant 2 : index
    %c0_63 = arith.constant 0 : index
    %c0_64 = arith.constant 0 : index
    %107 = vector.load %arg11[%c2_62, %c0_63, %c0_64] : memref<4x16x1xf32, #tpu.memory_space<vmem>>, vector<1x16x1xf32>
    %108 = vector.shape_cast %107 : vector<1x16x1xf32> to vector<16x1xf32>
    %109 = vector.shape_cast %106 : vector<16x1xf32> to vector<1x16x1xf32>
    tpu.vector_store %arg11[%c2_62, %c0_63, %c0_64], %109 {strides = array<i32>} : memref<4x16x1xf32, #tpu.memory_space<vmem>>, vector<1x16x1xf32>,
    %c2_65 = arith.constant 2 : index
    %c0_66 = arith.constant 0 : index
    %c0_67 = arith.constant 0 : index
    %110 = vector.load %arg12[%c2_65, %c0_66, %c0_67] : memref<4x16x8xf32, #tpu.memory_space<vmem>>, vector<1x16x8xf32>
    %111 = vector.shape_cast %110 : vector<1x16x8xf32> to vector<16x8xf32>
    %112 = vector.broadcast %97 : vector<16x1xf32> to vector<16x8xf32>
    %113 = arith.mulf %112, %111 : vector<16x8xf32>
    %114 = arith.truncf %100 : vector<16x8xf32> to vector<16x8xbf16>
    %cst_68 = arith.constant dense<0.000000e+00> : vector<16x8xf32>
    %115 = tpu.matmul %114, %87, %cst_68 {dimension_numbers = #tpu.dot_dimension_numbers<[1], [0], [0], [1], [0, 0, 1, 1], [], []>} : vector<16x8xbf16>, vector<8x8xbf16>, vector<16x8xf32> -> vector<16x8xf32>
    %116 = arith.addf %113, %115 : vector<16x8xf32>
    %c2_69 = arith.constant 2 : index
    %c0_70 = arith.constant 0 : index
    %c0_71 = arith.constant 0 : index
    %117 = vector.load %arg12[%c2_69, %c0_70, %c0_71] : memref<4x16x8xf32, #tpu.memory_space<vmem>>, vector<1x16x8xf32>
    %118 = vector.shape_cast %117 : vector<1x16x8xf32> to vector<16x8xf32>
    %119 = vector.shape_cast %116 : vector<16x8xf32> to vector<1x16x8xf32>
    tpu.vector_store %arg12[%c2_69, %c0_70, %c0_71], %119 {strides = array<i32>} : memref<4x16x8xf32, #tpu.memory_space<vmem>>, vector<1x16x8xf32>,
    %c2_72 = arith.constant 2 : index
    %c0_73 = arith.constant 0 : index
    %c0_74 = arith.constant 0 : index
    %120 = vector.load %arg10[%c2_72, %c0_73, %c0_74] : memref<4x16x1xf32, #tpu.memory_space<vmem>>, vector<1x16x1xf32>
    %121 = vector.shape_cast %120 : vector<1x16x1xf32> to vector<16x1xf32>
    %122 = vector.shape_cast %95 : vector<16x1xf32> to vector<1x16x1xf32>
    tpu.vector_store %arg10[%c2_72, %c0_73, %c0_74], %122 {strides = array<i32>} : memref<4x16x1xf32, #tpu.memory_space<vmem>>, vector<1x16x1xf32>,
    %123 = vector.extract_strided_slice %4 {offsets = [0, 24], sizes = [16, 8], strides = [1, 1]} : vector<16x32xbf16> to vector<16x8xbf16>
    %124 = vector.extract_strided_slice %6 {offsets = [0, 24], sizes = [8, 8], strides = [1, 1]} : vector<8x32xbf16> to vector<8x8xbf16>
    %125 = vector.extract_strided_slice %8 {offsets = [0, 24], sizes = [8, 8], strides = [1, 1]} : vector<8x32xbf16> to vector<8x8xbf16>
    %cst_75 = arith.constant dense<0.000000e+00> : vector<16x8xf32>
    %126 = tpu.matmul %123, %124, %cst_75 {dimension_numbers = #tpu.dot_dimension_numbers<[1], [1], [0], [0], [0, 0, 1, 0], [], []>} : vector<16x8xbf16>, vector<8x8xbf16>, vector<16x8xf32> -> vector<16x8xf32>
    %cst_76 = arith.constant 0.353553385 : f32
    %127 = vector.broadcast %cst_76 : f32 to vector<16x8xf32>
    %128 = arith.mulf %126, %127 : vector<16x8xf32>
    %c3 = arith.constant 3 : index
    %c0_77 = arith.constant 0 : index
    %c0_78 = arith.constant 0 : index
    %129 = vector.load %arg10[%c3, %c0_77, %c0_78] : memref<4x16x1xf32, #tpu.memory_space<vmem>>, vector<1x16x1xf32>
    %130 = vector.shape_cast %129 : vector<1x16x1xf32> to vector<16x1xf32>
    %cst_79 = arith.constant dense<0xFF800000> : vector<16xf32>
    %131 = vector.multi_reduction <maximumf>, %128, %cst_79 [1] : vector<16x8xf32> to vector<16xf32>
    %132 = vector.shape_cast %131 : vector<16xf32> to vector<16x1xf32>
    %133 = arith.maximumf %130, %132 : vector<16x1xf32>
    %134 = arith.subf %130, %133 : vector<16x1xf32>
    %135 = math.exp %134 : vector<16x1xf32>
    %136 = vector.broadcast %133 : vector<16x1xf32> to vector<16x8xf32>
    %137 = arith.subf %128, %136 : vector<16x8xf32>
    %138 = math.exp %137 : vector<16x8xf32>
    %c3_80 = arith.constant 3 : index
    %c0_81 = arith.constant 0 : index
    %c0_82 = arith.constant 0 : index
    %139 = vector.load %arg11[%c3_80, %c0_81, %c0_82] : memref<4x16x1xf32, #tpu.memory_space<vmem>>, vector<1x16x1xf32>
    %140 = vector.shape_cast %139 : vector<1x16x1xf32> to vector<16x1xf32>
    %141 = arith.mulf %135, %140 : vector<16x1xf32>
    %cst_83 = arith.constant dense<0.000000e+00> : vector<16xf32>
    %142 = vector.multi_reduction <add>, %138, %cst_83 [1] : vector<16x8xf32> to vector<16xf32>
    %143 = vector.shape_cast %142 : vector<16xf32> to vector<16x1xf32>
    %144 = arith.addf %141, %143 : vector<16x1xf32>
    %c3_84 = arith.constant 3 : index
    %c0_85 = arith.constant 0 : index
    %c0_86 = arith.constant 0 : index
    %145 = vector.load %arg11[%c3_84, %c0_85, %c0_86] : memref<4x16x1xf32, #tpu.memory_space<vmem>>, vector<1x16x1xf32>
    %146 = vector.shape_cast %145 : vector<1x16x1xf32> to vector<16x1xf32>
    %147 = vector.shape_cast %144 : vector<16x1xf32> to vector<1x16x1xf32>
    tpu.vector_store %arg11[%c3_84, %c0_85, %c0_86], %147 {strides = array<i32>} : memref<4x16x1xf32, #tpu.memory_space<vmem>>, vector<1x16x1xf32>,
    %c3_87 = arith.constant 3 : index
    %c0_88 = arith.constant 0 : index
    %c0_89 = arith.constant 0 : index
    %148 = vector.load %arg12[%c3_87, %c0_88, %c0_89] : memref<4x16x8xf32, #tpu.memory_space<vmem>>, vector<1x16x8xf32>
    %149 = vector.shape_cast %148 : vector<1x16x8xf32> to vector<16x8xf32>
    %150 = vector.broadcast %135 : vector<16x1xf32> to vector<16x8xf32>
    %151 = arith.mulf %150, %149 : vector<16x8xf32>
    %152 = arith.truncf %138 : vector<16x8xf32> to vector<16x8xbf16>
    %cst_90 = arith.constant dense<0.000000e+00> : vector<16x8xf32>
    %153 = tpu.matmul %152, %125, %cst_90 {dimension_numbers = #tpu.dot_dimension_numbers<[1], [0], [0], [1], [0, 0, 1, 1], [], []>} : vector<16x8xbf16>, vector<8x8xbf16>, vector<16x8xf32> -> vector<16x8xf32>
    %154 = arith.addf %151, %153 : vector<16x8xf32>
    %c3_91 = arith.constant 3 : index
    %c0_92 = arith.constant 0 : index
    %c0_93 = arith.constant 0 : index
    %155 = vector.load %arg12[%c3_91, %c0_92, %c0_93] : memref<4x16x8xf32, #tpu.memory_space<vmem>>, vector<1x16x8xf32>
    %156 = vector.shape_cast %155 : vector<1x16x8xf32> to vector<16x8xf32>
    %157 = vector.shape_cast %154 : vector<16x8xf32> to vector<1x16x8xf32>
    tpu.vector_store %arg12[%c3_91, %c0_92, %c0_93], %157 {strides = array<i32>} : memref<4x16x8xf32, #tpu.memory_space<vmem>>, vector<1x16x8xf32>,
    %c3_94 = arith.constant 3 : index
    %c0_95 = arith.constant 0 : index
    %c0_96 = arith.constant 0 : index
    %158 = vector.load %arg10[%c3_94, %c0_95, %c0_96] : memref<4x16x1xf32, #tpu.memory_space<vmem>>, vector<1x16x1xf32>
    %159 = vector.shape_cast %158 : vector<1x16x1xf32> to vector<16x1xf32>
    %160 = vector.shape_cast %133 : vector<16x1xf32> to vector<1x16x1xf32>
    tpu.vector_store %arg10[%c3_94, %c0_95, %c0_96], %160 {strides = array<i32>} : memref<4x16x1xf32, #tpu.memory_space<vmem>>, vector<1x16x1xf32>,
    %c0_i32_97 = arith.constant 0 : i32
    %161 = arith.cmpi eq, %arg2, %c0_i32_97 : i32
    %162 = arith.extui %161 : i1 to i32
    %c0_i32_98 = arith.constant 0 : i32
    %163 = arith.cmpi ne, %162, %c0_i32_98 : i32
    scf.if %163 {
      %c0_99 = arith.constant 0 : index
      %c0_100 = arith.constant 0 : index
      %c0_101 = arith.constant 0 : index
      %164 = vector.load %arg11[%c0_99, %c0_100, %c0_101] : memref<4x16x1xf32, #tpu.memory_space<vmem>>, vector<1x16x1xf32>
      %165 = vector.shape_cast %164 : vector<1x16x1xf32> to vector<16x1xf32>
      %166 = tpu.reciprocal %165 {approx = true} : vector<16x1xf32> -> vector<16x1xf32>
      %c0_102 = arith.constant 0 : index
      %c0_103 = arith.constant 0 : index
      %c0_104 = arith.constant 0 : index
      %167 = vector.load %arg12[%c0_102, %c0_103, %c0_104] : memref<4x16x8xf32, #tpu.memory_space<vmem>>, vector<1x16x8xf32>
      %168 = vector.shape_cast %167 : vector<1x16x8xf32> to vector<16x8xf32>
      %169 = vector.broadcast %166 : vector<16x1xf32> to vector<16x8xf32>
      %170 = arith.mulf %168, %169 : vector<16x8xf32>
      %c1_105 = arith.constant 1 : index
      %c0_106 = arith.constant 0 : index
      %c0_107 = arith.constant 0 : index
      %171 = vector.load %arg11[%c1_105, %c0_106, %c0_107] : memref<4x16x1xf32, #tpu.memory_space<vmem>>, vector<1x16x1xf32>
      %172 = vector.shape_cast %171 : vector<1x16x1xf32> to vector<16x1xf32>
      %173 = tpu.reciprocal %172 {approx = true} : vector<16x1xf32> -> vector<16x1xf32>
      %c1_108 = arith.constant 1 : index
      %c0_109 = arith.constant 0 : index
      %c0_110 = arith.constant 0 : index
      %174 = vector.load %arg12[%c1_108, %c0_109, %c0_110] : memref<4x16x8xf32, #tpu.memory_space<vmem>>, vector<1x16x8xf32>
      %175 = vector.shape_cast %174 : vector<1x16x8xf32> to vector<16x8xf32>
      %176 = vector.broadcast %173 : vector<16x1xf32> to vector<16x8xf32>
      %177 = arith.mulf %175, %176 : vector<16x8xf32>
      %c2_111 = arith.constant 2 : index
      %c0_112 = arith.constant 0 : index
      %c0_113 = arith.constant 0 : index
      %178 = vector.load %arg11[%c2_111, %c0_112, %c0_113] : memref<4x16x1xf32, #tpu.memory_space<vmem>>, vector<1x16x1xf32>
      %179 = vector.shape_cast %178 : vector<1x16x1xf32> to vector<16x1xf32>
      %180 = tpu.reciprocal %179 {approx = true} : vector<16x1xf32> -> vector<16x1xf32>
      %c2_114 = arith.constant 2 : index
      %c0_115 = arith.constant 0 : index
      %c0_116 = arith.constant 0 : index
      %181 = vector.load %arg12[%c2_114, %c0_115, %c0_116] : memref<4x16x8xf32, #tpu.memory_space<vmem>>, vector<1x16x8xf32>
      %182 = vector.shape_cast %181 : vector<1x16x8xf32> to vector<16x8xf32>
      %183 = vector.broadcast %180 : vector<16x1xf32> to vector<16x8xf32>
      %184 = arith.mulf %182, %183 : vector<16x8xf32>
      %c3_117 = arith.constant 3 : index
      %c0_118 = arith.constant 0 : index
      %c0_119 = arith.constant 0 : index
      %185 = vector.load %arg11[%c3_117, %c0_118, %c0_119] : memref<4x16x1xf32, #tpu.memory_space<vmem>>, vector<1x16x1xf32>
      %186 = vector.shape_cast %185 : vector<1x16x1xf32> to vector<16x1xf32>
      %187 = tpu.reciprocal %186 {approx = true} : vector<16x1xf32> -> vector<16x1xf32>
      %c3_120 = arith.constant 3 : index
      %c0_121 = arith.constant 0 : index
      %c0_122 = arith.constant 0 : index
      %188 = vector.load %arg12[%c3_120, %c0_121, %c0_122] : memref<4x16x8xf32, #tpu.memory_space<vmem>>, vector<1x16x8xf32>
      %189 = vector.shape_cast %188 : vector<1x16x8xf32> to vector<16x8xf32>
      %190 = vector.broadcast %187 : vector<16x1xf32> to vector<16x8xf32>
      %191 = arith.mulf %189, %190 : vector<16x8xf32>
      %192 = tpu.concatenate %170, %177, %184, %191 in 1 : vector<16x8xf32>, vector<16x8xf32>, vector<16x8xf32>, vector<16x8xf32> -> vector<16x32xf32>
      %193 = arith.truncf %192 : vector<16x32xf32> to vector<16x32xbf16>
      %c0_123 = arith.constant 0 : index
      %c0_124 = arith.constant 0 : index
      %194 = vector.load %arg6[%c0_123, %c0_124] : memref<32x32xbf16, #tpu.memory_space<vmem>>, vector<32x32xbf16>
      %cst_125 = arith.constant dense<0.000000e+00> : vector<16x32xf32>
      %195 = tpu.matmul %193, %194, %cst_125 {dimension_numbers = #tpu.dot_dimension_numbers<[1], [0], [0], [1], [0, 0, 1, 1], [], []>} : vector<16x32xbf16>, vector<32x32xbf16>, vector<16x32xf32> -> vector<16x32xf32>
      %c0_126 = arith.constant 0 : index
      %c0_127 = arith.constant 0 : index
      %196 = vector.load %arg7[%c0_126, %c0_127] : memref<1x32xf32, #tpu.memory_space<vmem>>, vector<1x32xf32>
      %197 = vector.broadcast %196 : vector<1x32xf32> to vector<16x32xf32>
      %198 = arith.addf %195, %197 : vector<16x32xf32>
      %c0_128 = arith.constant 0 : index
      %c0_129 = arith.constant 0 : index
      %c0_130 = arith.constant 0 : index
      %199 = vector.load %arg8[%c0_128, %c0_129, %c0_130] : memref<1x16x32xf32, #tpu.memory_space<vmem>>, vector<1x16x32xf32>
      %200 = vector.shape_cast %199 : vector<1x16x32xf32> to vector<16x32xf32>
      %201 = arith.addf %198, %200 : vector<16x32xf32>
      %c0_131 = arith.constant 0 : index
      %c0_132 = arith.constant 0 : index
      %c0_133 = arith.constant 0 : index
      %202 = vector.load %arg9[%c0_131, %c0_132, %c0_133] : memref<1x16x32xf32, #tpu.memory_space<vmem>>, vector<1x16x32xf32>
      %203 = vector.shape_cast %202 : vector<1x16x32xf32> to vector<16x32xf32>
      %204 = vector.shape_cast %201 : vector<16x32xf32> to vector<1x16x32xf32>
      tpu.vector_store %arg9[%c0_131, %c0_132, %c0_133], %204 {strides = array<i32>} : memref<1x16x32xf32, #tpu.memory_space<vmem>>, vector<1x16x32xf32>,
    } else {
    }
    return
  }
  func.func @transform_0(%arg0: i32, %arg1: i32, %arg2: i32) -> (i32, i32, i32) {
    %c0_i32 = arith.constant 0 : i32
    %c0_i32_0 = arith.constant 0 : i32
    return %arg0, %arg1, %c0_i32 : i32, i32, i32
  }
  func.func @transform_1(%arg0: i32, %arg1: i32, %arg2: i32) -> (i32, i32, i32) {
    %c0_i32 = arith.constant 0 : i32
    %c0_i32_0 = arith.constant 0 : i32
    return %arg0, %arg2, %c0_i32 : i32, i32, i32
  }
  func.func @transform_2(%arg0: i32, %arg1: i32, %arg2: i32) -> (i32, i32, i32) {
    %c0_i32 = arith.constant 0 : i32
    %c0_i32_0 = arith.constant 0 : i32
    return %arg0, %arg2, %c0_i32 : i32, i32, i32
  }
  func.func @transform_3(%arg0: i32, %arg1: i32, %arg2: i32) -> (i32, i32) {
    %c0_i32 = arith.constant 0 : i32
    %c0_i32_0 = arith.constant 0 : i32
    %c0_i32_1 = arith.constant 0 : i32
    return %c0_i32, %c0_i32_0 : i32, i32
  }
  func.func @transform_4(%arg0: i32, %arg1: i32, %arg2: i32) -> (i32, i32) {
    %c0_i32 = arith.constant 0 : i32
    %c0_i32_0 = arith.constant 0 : i32
    %c0_i32_1 = arith.constant 0 : i32
    return %c0_i32, %c0_i32_0 : i32, i32
  }
  func.func @transform_5(%arg0: i32, %arg1: i32, %arg2: i32) -> (i32, i32, i32) {
    %c0_i32 = arith.constant 0 : i32
    %c0_i32_0 = arith.constant 0 : i32
    return %arg0, %arg1, %c0_i32 : i32, i32, i32
  }
  func.func @transform_6(%arg0: i32, %arg1: i32, %arg2: i32) -> (i32, i32, i32) {
    %c0_i32 = arith.constant 0 : i32
    %c0_i32_0 = arith.constant 0 : i32
    return %arg0, %arg1, %c0_i32 : i32, i32, i32
  }
}

module attributes {stable_mosaic.version = 11 : i64} {
  func.func @_ln_geglu_ff_kernel(%arg0: i32, %arg1: i32, %arg2: memref<32x32xf32, #tpu.memory_space<vmem>>, %arg3: memref<1x32xf32, #tpu.memory_space<vmem>>, %arg4: memref<1x32xf32, #tpu.memory_space<vmem>>, %arg5: memref<32x128xbf16, #tpu.memory_space<vmem>>, %arg6: memref<1x128xf32, #tpu.memory_space<vmem>>, %arg7: memref<32x128xbf16, #tpu.memory_space<vmem>>, %arg8: memref<1x128xf32, #tpu.memory_space<vmem>>, %arg9: memref<128x32xbf16, #tpu.memory_space<vmem>>, %arg10: memref<1x32xf32, #tpu.memory_space<vmem>>, %arg11: memref<32x32xf32, #tpu.memory_space<vmem>>, %arg12: memref<32x32xbf16, #tpu.memory_space<vmem>>, %arg13: memref<32x32xf32, #tpu.memory_space<vmem>>) attributes {dimension_semantics = [#tpu.dimension_semantics<parallel>, #tpu.dimension_semantics<arbitrary>], iteration_bounds = array<i64: 1, 1>, scalar_prefetch = 0 : i64, scratch_operands = 2 : i64, tpu.core_type = #tpu.core_type<tc>, window_params = [{transform_indices = @transform_0, window_bounds = array<i64: 32, 32>}, {pipeline_mode = #tpu.pipeline_mode<synchronous>, transform_indices = @transform_1, window_bounds = array<i64: 1, 32>}, {pipeline_mode = #tpu.pipeline_mode<synchronous>, transform_indices = @transform_2, window_bounds = array<i64: 1, 32>}, {transform_indices = @transform_3, window_bounds = array<i64: 32, 128>}, {transform_indices = @transform_4, window_bounds = array<i64: 1, 128>}, {transform_indices = @transform_5, window_bounds = array<i64: 32, 128>}, {transform_indices = @transform_6, window_bounds = array<i64: 1, 128>}, {transform_indices = @transform_7, window_bounds = array<i64: 128, 32>}, {pipeline_mode = #tpu.pipeline_mode<synchronous>, transform_indices = @transform_8, window_bounds = array<i64: 1, 32>}, {transform_indices = @transform_9, window_bounds = array<i64: 32, 32>}]} {
    %c0_i32 = arith.constant 0 : i32
    %0 = arith.cmpi eq, %arg1, %c0_i32 : i32
    %1 = arith.extui %0 : i1 to i32
    %c0_i32_0 = arith.constant 0 : i32
    %2 = arith.cmpi ne, %1, %c0_i32_0 : i32
    scf.if %2 {
      %c0_23 = arith.constant 0 : index
      %c0_24 = arith.constant 0 : index
      %32 = vector.load %arg2[%c0_23, %c0_24] : memref<32x32xf32, #tpu.memory_space<vmem>>, vector<32x32xf32>
      %c0_25 = arith.constant 0 : index
      %c0_26 = arith.constant 0 : index
      %33 = vector.load %arg3[%c0_25, %c0_26] : memref<1x32xf32, #tpu.memory_space<vmem>>, vector<1x32xf32>
      %c0_27 = arith.constant 0 : index
      %c0_28 = arith.constant 0 : index
      %34 = vector.load %arg4[%c0_27, %c0_28] : memref<1x32xf32, #tpu.memory_space<vmem>>, vector<1x32xf32>
      %cst_29 = arith.constant dense<0.000000e+00> : vector<32xf32>
      %35 = vector.multi_reduction <add>, %32, %cst_29 [1] : vector<32x32xf32> to vector<32xf32>
      %36 = vector.shape_cast %35 : vector<32xf32> to vector<32x1xf32>
      %cst_30 = arith.constant 3.200000e+01 : f32
      %37 = vector.broadcast %cst_30 : f32 to vector<32x1xf32>
      %38 = arith.divf %36, %37 : vector<32x1xf32>
      %39 = vector.broadcast %38 : vector<32x1xf32> to vector<32x32xf32>
      %40 = arith.subf %32, %39 : vector<32x32xf32>
      %41 = arith.mulf %40, %40 : vector<32x32xf32>
      %cst_31 = arith.constant dense<0.000000e+00> : vector<32xf32>
      %42 = vector.multi_reduction <add>, %41, %cst_31 [1] : vector<32x32xf32> to vector<32xf32>
      %43 = vector.shape_cast %42 : vector<32xf32> to vector<32x1xf32>
      %cst_32 = arith.constant 3.200000e+01 : f32
      %44 = vector.broadcast %cst_32 : f32 to vector<32x1xf32>
      %45 = arith.divf %43, %44 : vector<32x1xf32>
      %46 = vector.broadcast %38 : vector<32x1xf32> to vector<32x32xf32>
      %47 = arith.subf %32, %46 : vector<32x32xf32>
      %cst_33 = arith.constant 9.99999974E-6 : f32
      %48 = vector.broadcast %cst_33 : f32 to vector<32x1xf32>
      %49 = arith.addf %45, %48 : vector<32x1xf32>
      %50 = math.rsqrt %49 : vector<32x1xf32>
      %51 = vector.broadcast %50 : vector<32x1xf32> to vector<32x32xf32>
      %52 = arith.mulf %47, %51 : vector<32x32xf32>
      %53 = vector.broadcast %33 : vector<1x32xf32> to vector<32x32xf32>
      %54 = arith.mulf %52, %53 : vector<32x32xf32>
      %55 = vector.broadcast %34 : vector<1x32xf32> to vector<32x32xf32>
      %56 = arith.addf %54, %55 : vector<32x32xf32>
      %57 = arith.truncf %56 : vector<32x32xf32> to vector<32x32xbf16>
      %c0_34 = arith.constant 0 : index
      %c0_35 = arith.constant 0 : index
      %58 = vector.load %arg12[%c0_34, %c0_35] : memref<32x32xbf16, #tpu.memory_space<vmem>>, vector<32x32xbf16>
      tpu.vector_store %arg12[%c0_34, %c0_35], %57 {strides = array<i32>} : memref<32x32xbf16, #tpu.memory_space<vmem>>, vector<32x32xbf16>,
      %cst_36 = arith.constant 0.000000e+00 : f32
      %59 = vector.broadcast %cst_36 : f32 to vector<32x32xf32>
      %c0_37 = arith.constant 0 : index
      %c0_38 = arith.constant 0 : index
      %60 = vector.load %arg13[%c0_37, %c0_38] : memref<32x32xf32, #tpu.memory_space<vmem>>, vector<32x32xf32>
      tpu.vector_store %arg13[%c0_37, %c0_38], %59 {strides = array<i32>} : memref<32x32xf32, #tpu.memory_space<vmem>>, vector<32x32xf32>,
    } else {
    }
    %c0 = arith.constant 0 : index
    %c0_1 = arith.constant 0 : index
    %3 = vector.load %arg12[%c0, %c0_1] : memref<32x32xbf16, #tpu.memory_space<vmem>>, vector<32x32xbf16>
    %c0_2 = arith.constant 0 : index
    %c0_3 = arith.constant 0 : index
    %4 = vector.load %arg5[%c0_2, %c0_3] : memref<32x128xbf16, #tpu.memory_space<vmem>>, vector<32x128xbf16>
    %cst = arith.constant dense<0.000000e+00> : vector<32x128xf32>
    %5 = tpu.matmul %3, %4, %cst {dimension_numbers = #tpu.dot_dimension_numbers<[1], [0], [0], [1], [0, 0, 1, 1], [], []>} : vector<32x32xbf16>, vector<32x128xbf16>, vector<32x128xf32> -> vector<32x128xf32>
    %c0_4 = arith.constant 0 : index
    %c0_5 = arith.constant 0 : index
    %6 = vector.load %arg6[%c0_4, %c0_5] : memref<1x128xf32, #tpu.memory_space<vmem>>, vector<1x128xf32>
    %7 = vector.broadcast %6 : vector<1x128xf32> to vector<32x128xf32>
    %8 = arith.addf %5, %7 : vector<32x128xf32>
    %c0_6 = arith.constant 0 : index
    %c0_7 = arith.constant 0 : index
    %9 = vector.load %arg7[%c0_6, %c0_7] : memref<32x128xbf16, #tpu.memory_space<vmem>>, vector<32x128xbf16>
    %cst_8 = arith.constant dense<0.000000e+00> : vector<32x128xf32>
    %10 = tpu.matmul %3, %9, %cst_8 {dimension_numbers = #tpu.dot_dimension_numbers<[1], [0], [0], [1], [0, 0, 1, 1], [], []>} : vector<32x32xbf16>, vector<32x128xbf16>, vector<32x128xf32> -> vector<32x128xf32>
    %c0_9 = arith.constant 0 : index
    %c0_10 = arith.constant 0 : index
    %11 = vector.load %arg8[%c0_9, %c0_10] : memref<1x128xf32, #tpu.memory_space<vmem>>, vector<1x128xf32>
    %12 = vector.broadcast %11 : vector<1x128xf32> to vector<32x128xf32>
    %13 = arith.addf %10, %12 : vector<32x128xf32>
    %cst_11 = arith.constant 5.000000e-01 : f32
    %14 = vector.broadcast %cst_11 : f32 to vector<32x128xf32>
    %15 = arith.mulf %14, %13 : vector<32x128xf32>
    %cst_12 = arith.constant 0.707106769 : f32
    %16 = vector.broadcast %cst_12 : f32 to vector<32x128xf32>
    %17 = arith.mulf %13, %16 : vector<32x128xf32>
    %18 = math.erf %17 : vector<32x128xf32>
    %cst_13 = arith.constant 1.000000e+00 : f32
    %19 = vector.broadcast %cst_13 : f32 to vector<32x128xf32>
    %20 = arith.addf %19, %18 : vector<32x128xf32>
    %21 = arith.mulf %15, %20 : vector<32x128xf32>
    %22 = arith.mulf %8, %21 : vector<32x128xf32>
    %23 = arith.truncf %22 : vector<32x128xf32> to vector<32x128xbf16>
    %c0_14 = arith.constant 0 : index
    %c0_15 = arith.constant 0 : index
    %24 = vector.load %arg13[%c0_14, %c0_15] : memref<32x32xf32, #tpu.memory_space<vmem>>, vector<32x32xf32>
    %c0_16 = arith.constant 0 : index
    %c0_17 = arith.constant 0 : index
    %25 = vector.load %arg9[%c0_16, %c0_17] : memref<128x32xbf16, #tpu.memory_space<vmem>>, vector<128x32xbf16>
    %cst_18 = arith.constant dense<0.000000e+00> : vector<32x32xf32>
    %26 = tpu.matmul %23, %25, %cst_18 {dimension_numbers = #tpu.dot_dimension_numbers<[1], [0], [0], [1], [0, 0, 1, 1], [], []>} : vector<32x128xbf16>, vector<128x32xbf16>, vector<32x32xf32> -> vector<32x32xf32>
    %27 = arith.addf %24, %26 : vector<32x32xf32>
    %c0_19 = arith.constant 0 : index
    %c0_20 = arith.constant 0 : index
    %28 = vector.load %arg13[%c0_19, %c0_20] : memref<32x32xf32, #tpu.memory_space<vmem>>, vector<32x32xf32>
    tpu.vector_store %arg13[%c0_19, %c0_20], %27 {strides = array<i32>} : memref<32x32xf32, #tpu.memory_space<vmem>>, vector<32x32xf32>,
    %c0_i32_21 = arith.constant 0 : i32
    %29 = arith.cmpi eq, %arg1, %c0_i32_21 : i32
    %30 = arith.extui %29 : i1 to i32
    %c0_i32_22 = arith.constant 0 : i32
    %31 = arith.cmpi ne, %30, %c0_i32_22 : i32
    scf.if %31 {
      %c0_23 = arith.constant 0 : index
      %c0_24 = arith.constant 0 : index
      %32 = vector.load %arg13[%c0_23, %c0_24] : memref<32x32xf32, #tpu.memory_space<vmem>>, vector<32x32xf32>
      %c0_25 = arith.constant 0 : index
      %c0_26 = arith.constant 0 : index
      %33 = vector.load %arg10[%c0_25, %c0_26] : memref<1x32xf32, #tpu.memory_space<vmem>>, vector<1x32xf32>
      %34 = vector.broadcast %33 : vector<1x32xf32> to vector<32x32xf32>
      %35 = arith.addf %32, %34 : vector<32x32xf32>
      %c0_27 = arith.constant 0 : index
      %c0_28 = arith.constant 0 : index
      %36 = vector.load %arg2[%c0_27, %c0_28] : memref<32x32xf32, #tpu.memory_space<vmem>>, vector<32x32xf32>
      %37 = arith.addf %35, %36 : vector<32x32xf32>
      %c0_29 = arith.constant 0 : index
      %c0_30 = arith.constant 0 : index
      %38 = vector.load %arg11[%c0_29, %c0_30] : memref<32x32xf32, #tpu.memory_space<vmem>>, vector<32x32xf32>
      tpu.vector_store %arg11[%c0_29, %c0_30], %37 {strides = array<i32>} : memref<32x32xf32, #tpu.memory_space<vmem>>, vector<32x32xf32>,
    } else {
    }
    return
  }
  func.func @transform_0(%arg0: i32, %arg1: i32) -> (i32, i32) {
    %c0_i32 = arith.constant 0 : i32
    %c0_i32_0 = arith.constant 0 : i32
    return %arg0, %c0_i32 : i32, i32
  }
  func.func @transform_1(%arg0: i32, %arg1: i32) -> (i32, i32) {
    %c0_i32 = arith.constant 0 : i32
    %c0_i32_0 = arith.constant 0 : i32
    %c0_i32_1 = arith.constant 0 : i32
    return %c0_i32, %c0_i32_0 : i32, i32
  }
  func.func @transform_2(%arg0: i32, %arg1: i32) -> (i32, i32) {
    %c0_i32 = arith.constant 0 : i32
    %c0_i32_0 = arith.constant 0 : i32
    %c0_i32_1 = arith.constant 0 : i32
    return %c0_i32, %c0_i32_0 : i32, i32
  }
  func.func @transform_3(%arg0: i32, %arg1: i32) -> (i32, i32) {
    %c0_i32 = arith.constant 0 : i32
    %c0_i32_0 = arith.constant 0 : i32
    return %c0_i32, %arg1 : i32, i32
  }
  func.func @transform_4(%arg0: i32, %arg1: i32) -> (i32, i32) {
    %c0_i32 = arith.constant 0 : i32
    %c0_i32_0 = arith.constant 0 : i32
    return %c0_i32, %arg1 : i32, i32
  }
  func.func @transform_5(%arg0: i32, %arg1: i32) -> (i32, i32) {
    %c0_i32 = arith.constant 0 : i32
    %c0_i32_0 = arith.constant 0 : i32
    return %c0_i32, %arg1 : i32, i32
  }
  func.func @transform_6(%arg0: i32, %arg1: i32) -> (i32, i32) {
    %c0_i32 = arith.constant 0 : i32
    %c0_i32_0 = arith.constant 0 : i32
    return %c0_i32, %arg1 : i32, i32
  }
  func.func @transform_7(%arg0: i32, %arg1: i32) -> (i32, i32) {
    %c0_i32 = arith.constant 0 : i32
    %c0_i32_0 = arith.constant 0 : i32
    return %arg1, %c0_i32 : i32, i32
  }
  func.func @transform_8(%arg0: i32, %arg1: i32) -> (i32, i32) {
    %c0_i32 = arith.constant 0 : i32
    %c0_i32_0 = arith.constant 0 : i32
    %c0_i32_1 = arith.constant 0 : i32
    return %c0_i32, %c0_i32_0 : i32, i32
  }
  func.func @transform_9(%arg0: i32, %arg1: i32) -> (i32, i32) {
    %c0_i32 = arith.constant 0 : i32
    %c0_i32_0 = arith.constant 0 : i32
    return %arg0, %c0_i32 : i32, i32
  }
}

</mosaic_0001>

<bundles_post_ra>
// kernel: basic_transformer_block.9
= control target key start
LH: loop header
LB: loop body
LE: loop exit
PB: predicated region body
PF: predicated region fallthrough
CT: control target
= control target key end

     0   :  { %10 = vsyncpa [#allocation3], 0  ;;  %s297_s0 = inlined_call_operand.hbm [shape: f32[16,24], index: 0, kind: input, shape index: {}]   ;;  %s298_s1 = inlined_call_operand.hbm [shape: bf16[24,32], index: 1, kind: input, shape index: {}]   ;;  %s299_s2 = inlined_call_operand.hbm [shape: bf16[24,32], index: 2, kind: input, shape index: {}]   ;;  %s300_s3 = inlined_call_operand.vmem [shape: bf16[16,32], index: 3, kind: output, shape index: {0}]   ;;  %s301_s4 = inlined_call_operand.vmem [shape: bf16[16,32], index: 4, kind: output, shape index: {1}]  }
   0x1   :  { %11 = vsyncpa [#allocation5], 0  ;;  %s29_s17 = sshll.u32 %s298_s1, 4  ;;  %s244_s18 = smov [#allocation4]   ;;  %s30_s17 = int_to_ptr.hbm [resolvable:$true] %s29_s17 }
   0x2   :  { %s31_s19 = sshll.u32 %s244_s18, 4  ;;  %s16_s22 = sshll.u32 %s297_s0, 4  ;;  %s32_s19 = int_to_ptr.vmem [resolvable:$true] %s31_s19  ;;  %s17_s22 = int_to_ptr.hbm [resolvable:$true] %s16_s22 }
   0x3   :  { %s245_s23 = smov 64   ;;  %s246_s24 = smov 4  }
   0x4   :  { %37 = dma.hbm_to_vmem [thread:$0]  %s30_s17, 192, %s32_s19, [#allocation5], %s245_s23, %s245_s23, %s246_s24  }
   0x5   :  { %s247_s25 = smov [#allocation2]   ;;  %s248_s27 = smov 128  }
   0x6   :  { %s18_s26 = sshll.u32 %s247_s25, 4  ;;  %s249_s28 = smov 8   ;;  %s19_s26 = int_to_ptr.vmem [resolvable:$true] %s18_s26 }
   0x7   :  { %24 = dma.hbm_to_vmem [thread:$0]  %s17_s22, 256, %s19_s26, [#allocation3], %s248_s27, %s248_s27, %s249_s28  }
   0x8   :  { %s42_s30 = sshll.u32 %s299_s2, 4  ;;  %s250_s5 = smov [#allocation6]   ;;  %s43_s30 = int_to_ptr.hbm [resolvable:$true] %s42_s30 }
   0x9   :  { %s44_s6 = sshll.u32 %s250_s5, 4  ;;  %s45_s6 = int_to_ptr.vmem [resolvable:$true] %s44_s6 }
   0xa   :  { %50 = dma.hbm_to_vmem [thread:$0]  %s43_s30, 192, %s45_s6, [#allocation5], %s245_s23, %s245_s23, %s246_s24  }
   0xb   :  { %240 = dma.done.wait [#allocation3], 256  }
   0xc   :  { %241 = vsyncadd [#allocation3], 4294967040 }
   0xd   :  { %242 = dma.done.wait [#allocation5], 384  }
   0xe   :  { %243 = vsyncadd [#allocation5], 4294966912  ;;  %v69_v0 = vld [vmem:[#allocation4 + $0x8] sm:$0xf]  ;;  %v108_v1 = vld [vmem:[#allocation6 + $0x8] sm:$0xf] }
   0xf   :  { %v75_v2 = vunpack.c.l.b16 %v69_v0  ;;  %v114_v3 = vunpack.c.l.b16 %v108_v1  ;;  %vm83_vm0 = vcmask 1043456   ;;  %v159_v8 = vld [vmem:[#allocation4] sm:$0xff]  ;;  %v160_v9 = vld [vmem:[#allocation6] sm:$0xff]  ;;  %v65_v11 = vld [vmem:[#allocation2 + $0x8] sm:$0xff]  ;;  %vm79_vm1 = vcmask 195584  }
  0x10   :  { %v64_v10 = vld [vmem:[#allocation2] sm:$0xff]  ;;  %vm103_vm2 = vcmask 257024  }
  0x11   :  { %v77_v4 = vpack.c.b16 %v75_v2, %v75_v2  ;;  %v116_v5 = vpack.c.b16 %v114_v3, %v114_v3  ;;  %v66_v12 = vpack.c.bf16 %v65_v11, %v64_v10 }
  0x13   :  { %v85_v6 = vsel %vm83_vm0, %v77_v4, 0  ;;  %v119_v7 = vsel %vm83_vm0, %v116_v5, 0 }
  0x14   :  { %93 = vmatpush.bf16.msra.mxu0 %v85_v6  ;;  %127 = vmatpush.bf16.msra.mxu1 %v119_v7 }
  0x18   :  { %94 = vmatpush.bf16.msra.mxu0 %v159_v8  ;;  %128 = vmatpush.bf16.msra.mxu1 %v160_v9 }
  0x1b   :  { %153 = vmatmul.msk.bf16.vlgmr.msra.gmra.mxu0 %vm79_vm1, %v66_v12  ;;  %158 = vmatmul.msk.bf16.vlgmr.msra.gmra.mxu1 %vm79_vm1, %v66_v12 }
  0x98   :  { %v96_v13 = vpop.f32.mrf.mxu0  ;;  %v130_v14 = vpop.f32.mrf.mxu1 }
  0x99   :  { %v101_v15 = vpack.c.bf16 %v96_v13, %v96_v13  ;;  %v135_v16 = vpack.c.bf16 %v130_v14, %v130_v14 }
  0x9b   :  { %104 = vst.msk [vmem:[%s300_s3] sm:$0xf] %vm103_vm2, %v101_v15 }
  0x9c   :  { %137 = vst.msk [vmem:[%s301_s4] sm:$0xf] %vm103_vm2, %v135_v16 }
  0xa0   :  { %v98_v17 = vpop.f32.mrf.mxu0  ;;  %v132_v18 = vpop.f32.mrf.mxu1 }
  0xa1   :  { %v102_v19 = vpack.c.bf16 %v98_v17, %v98_v17  ;;  %v136_v20 = vpack.c.bf16 %v132_v18, %v132_v18 }
  0xa3   :  { %105 = vst.msk [vmem:[%s300_s3 + $0x4] sm:$0xf] %vm103_vm2, %v102_v19 }
  0xa4   :  { %138 = vst.msk [vmem:[%s301_s4 + $0x4] sm:$0xf] %vm103_vm2, %v136_v20 }
  0xa5   :  { %147 = vsyncpa [#allocation3], 1 }
  0xa6   :  { %148 = vsyncpa [#allocation5], 1 }

// kernel: basic_transformer_block.8
= control target key start
LH: loop header
LB: loop body
LE: loop exit
PB: predicated region body
PF: predicated region fallthrough
CT: control target
= control target key end

     0   :  { %9 = vsyncpa [#allocation3], 0  ;;  %s398_s0 = inlined_call_operand.vmem [shape: f32[32,32], index: 0, kind: input, shape index: {}]   ;;  %s399_s1 = inlined_call_operand.vmem [shape: f32[1,32], index: 1, kind: input, shape index: {}]   ;;  %s400_s2 = inlined_call_operand.hbm [shape: f32[1,32], index: 2, kind: input, shape index: {}]   ;;  %s401_s3 = inlined_call_operand.hbm [shape: bf16[32,32], index: 3, kind: input, shape index: {}]   ;;  %s402_s4 = inlined_call_operand.vmem [shape: bf16[32,32], index: 4, kind: output, shape index: {}]  }
   0x1   :  { %s20_s17 = sshll.u32 %s400_s2, 4  ;;  %s21_s17 = int_to_ptr.hbm [resolvable:$true] %s20_s17 }
   0x2   :  { %10 = vsyncpa [#allocation5], 0  ;;  %s305_s18 = smov [#allocation2]   ;;  %s30_s22 = sshll.u32 %s401_s3, 4  ;;  %s31_s22 = int_to_ptr.hbm [resolvable:$true] %s30_s22 }
   0x3   :  { %s22_s19 = sshll.u32 %s305_s18, 4  ;;  %s306_s23 = smov [#allocation4]   ;;  %s23_s19 = int_to_ptr.vmem [resolvable:$true] %s22_s19 }
   0x4   :  { %25 = dma.hbm_to_vmem [thread:$0]  %s21_s17, 16, %s23_s19, [#allocation3]  }
   0x5   :  { %s32_s24 = sshll.u32 %s306_s23, 4  ;;  %s307_s25 = smov 64   ;;  %s33_s24 = int_to_ptr.vmem [resolvable:$true] %s32_s24 }
   0x6   :  { %s308_s26 = smov 4  }
   0x7   :  { %38 = dma.hbm_to_vmem [thread:$0]  %s31_s22, 256, %s33_s24, [#allocation5], %s307_s25, %s307_s25, %s308_s26  }
   0x8   :  { %301 = dma.done.wait [#allocation3], 16  }
   0x9   :  { %302 = vsyncadd [#allocation3], 4294967280 }
   0xa   :  { %303 = dma.done.wait [#allocation5], 256  }
   0xb   :  { %304 = vsyncadd [#allocation5], 4294967040  ;;  %vm54_vm0 = vcmask 261120   ;;  %v50_v0 = vld [vmem:[%s398_s0 + $0x10] sm:$0xff]  ;;  %v48_v1 = vld [vmem:[%s398_s0] sm:$0xff]  ;;  %v309_v8 = vmov 32.0  }
   0xc   :  { %v61_v2 = vsel %vm54_vm0, %v50_v0, 0.0  ;;  %v55_v3 = vsel %vm54_vm0, %v48_v1, 0.0  ;;  %v51_v4 = vld [vmem:[%s398_s0 + $0x18] sm:$0xff]  ;;  %v49_v5 = vld [vmem:[%s398_s0 + $0x8] sm:$0xff]  ;;  %243 = vrcp.f32 %v309_v8  ;;  %vm211_vm14 = vcmask 257024  }
   0xd   :  { %62 = vadd.xlane.f32.xlu1 %v61_v2  ;;  %56 = vadd.xlane.f32.xlu0 %v55_v3  ;;  %v64_v6 = vsel %vm54_vm0, %v51_v4, 0.0  ;;  %v58_v7 = vsel %vm54_vm0, %v49_v5, 0.0  ;;  %v233_v35 = vld [vmem:[#allocation4 + $0x8] sm:$0xff]  ;;  %v232_v40 = vld [vmem:[#allocation4] sm:$0xff] }
   0xe   :  { %194 = vmatpush.bf16.msra.mxu0 %v233_v35  ;;  %234 = vmatpush.bf16.msra.mxu1 %v233_v35 }
  0x12   :  { %v244_v9 = vpop.eup %243  ;;  %195 = vmatpush.bf16.msra.mxu0 %v232_v40  ;;  %235 = vmatpush.bf16.msra.mxu1 %v232_v40 }
  0x13   :  { %v68_v10 = vmul.f32 32.0, %v244_v9  ;;  %vm72_vm1 = vweird.f32 %v244_v9 }
  0x15   :  { %65 = vadd.xlane.f32.xlu1 %v64_v6  ;;  %59 = vadd.xlane.f32.xlu0 %v58_v7  ;;  %v69_v11 = vsub.f32 1.0, %v68_v10  ;;  %v241_v10 = vld [vmem:[%s399_s1] ss:$0 sm:$0xff] }
  0x17   :  { %v70_v12 = vmul.f32 %v244_v9, %v69_v11 }
  0x19   :  { %v71_v13 = vadd.f32 %v244_v9, %v70_v12 }
  0x1b   :  { %v73_v14 = vsel %vm72_vm1, %v244_v9, %v71_v13 }
  0x80   :  { %v63_v15 = vpop.xlane.xlu1 %62  ;;  %v57_v16 = vpop.xlane.xlu0 %56 }
  0x81   :  { %v76_v17 = vmul.f32 %v73_v14, %v63_v15  ;;  %v74_v18 = vmul.f32 %v73_v14, %v57_v16 }
  0x83   :  { %v357_v19 = vsub.f32 %v50_v0, %v76_v17  ;;  %v359_v20 = vsub.f32 %v48_v1, %v74_v18  ;;  %v242_v17 = vld [vmem:[#allocation2] ss:$0 sm:$0xff] }
  0x85   :  { %v84_v21 = vmul.f32 %v357_v19, %v357_v19  ;;  %v82_v22 = vmul.f32 %v359_v20, %v359_v20 }
  0x87   :  { %v92_v23 = vsel %vm54_vm0, %v84_v21, 0.0  ;;  %v86_v24 = vsel %vm54_vm0, %v82_v22, 0.0 }
  0x88   :  { %v66_v25 = vpop.xlane.xlu1 %65  ;;  %93 = vadd.xlane.f32.xlu0 %v92_v23  ;;  %87 = vadd.xlane.f32.xlu2 %v86_v24  ;;  %v60_v26 = vpop.xlane.xlu0 %59 }
  0x89   :  { %v77_v27 = vmul.f32 %v73_v14, %v66_v25  ;;  %v75_v28 = vmul.f32 %v73_v14, %v60_v26 }
  0x8b   :  { %v367_v29 = vsub.f32 %v51_v4, %v77_v27  ;;  %v369_v30 = vsub.f32 %v49_v5, %v75_v28 }
  0x8d   :  { %v85_v31 = vmul.f32 %v367_v29, %v367_v29  ;;  %v83_v32 = vmul.f32 %v369_v30, %v369_v30 }
  0x8f   :  { %v95_v33 = vsel %vm54_vm0, %v85_v31, 0.0  ;;  %v89_v34 = vsel %vm54_vm0, %v83_v32, 0.0 }
  0x90   :  { %96 = vadd.xlane.f32.xlu1 %v95_v33  ;;  %90 = vadd.xlane.f32.xlu2 %v89_v34 }
  0xfb   :  { %v88_v36 = vpop.xlane.xlu2 %87  ;;  %v94_v37 = vpop.xlane.xlu0 %93 }
  0xfc   :  { %v98_v38 = vmul.f32 %v88_v36, %v73_v14  ;;  %v100_v39 = vmul.f32 %v94_v37, %v73_v14 }
  0xfe   :  { %v102_v41 = vadd.f32 1e-05, %v98_v38  ;;  %v104_v42 = vadd.f32 1e-05, %v100_v39 }
 0x100   :  { %245 = vrsqrt.f32 %v102_v41  ;;  %vm132_vm4 = vweird.f32 %v104_v42  ;;  %vm112_vm5 = vweird.f32 %v102_v41 }
 0x101   :  { %247 = vrsqrt.f32 %v104_v42 }
 0x103   :  { %v97_v43 = vpop.xlane.xlu1 %96  ;;  %v91_v44 = vpop.xlane.xlu2 %90 }
 0x104   :  { %v101_v45 = vmul.f32 %v97_v43, %v73_v14  ;;  %v99_v46 = vmul.f32 %v91_v44, %v73_v14 }
 0x106   :  { %v246_v47 = vpop.eup %245  ;;  %v105_v48 = vadd.f32 1e-05, %v101_v45  ;;  %v103_v49 = vadd.f32 1e-05, %v99_v46 }
 0x107   :  { %v248_v50 = vpop.eup %247  ;;  %v107_v51 = vmul.f32 %v246_v47, %v102_v41  ;;  %vm113_vm3 = vweird.f32 %v246_v47 }
 0x108   :  { %v127_v52 = vmul.f32 %v248_v50, %v104_v42  ;;  %249 = vrsqrt.f32 %v105_v48  ;;  %vm133_vm2 = vweird.f32 %v248_v50  ;;  %vm114_vm7 = vmor %vm112_vm5, %vm113_vm3  ;;  %vm142_vm10 = vweird.f32 %v105_v48 }
 0x109   :  { %v108_v53 = vmul.f32 %v246_v47, %v107_v51  ;;  %251 = vrsqrt.f32 %v103_v49  ;;  %vm134_vm6 = vmor %vm132_vm4, %vm133_vm2  ;;  %vm122_vm12 = vweird.f32 %v103_v49 }
 0x10a   :  { %v128_v54 = vmul.f32 %v248_v50, %v127_v52 }
 0x10b   :  { %v109_v55 = vmul.f32 0.5, %v108_v53 }
 0x10c   :  { %v129_v56 = vmul.f32 0.5, %v128_v54 }
 0x10d   :  { %v110_v57 = vsub.f32 1.5, %v109_v55 }
 0x10e   :  { %v250_v58 = vpop.eup %249  ;;  %v130_v59 = vsub.f32 1.5, %v129_v56 }
 0x10f   :  { %v252_v60 = vpop.eup %251  ;;  %v137_v61 = vmul.f32 %v250_v58, %v105_v48  ;;  %v111_v62 = vmul.f32 %v246_v47, %v110_v57  ;;  %vm143_vm8 = vweird.f32 %v250_v58 }
 0x110   :  { %v131_v63 = vmul.f32 %v248_v50, %v130_v59  ;;  %v117_v0 = vmul.f32 %v252_v60, %v103_v49  ;;  %vm123_vm9 = vweird.f32 %v252_v60  ;;  %vm144_vm11 = vmor %vm142_vm10, %vm143_vm8 }
 0x111   :  { %v138_v1 = vmul.f32 %v250_v58, %v137_v61  ;;  %v115_v5 = vsel %vm114_vm7, %v246_v47, %v111_v62  ;;  %vm124_vm13 = vmor %vm122_vm12, %vm123_vm9 }
 0x112   :  { %v118_v2 = vmul.f32 %v252_v60, %v117_v0  ;;  %v135_v3 = vsel %vm134_vm6, %v248_v50, %v131_v63  ;;  %v146_v11 = vmul.f32 %v115_v5, %v359_v20 }
 0x113   :  { %v139_v4 = vmul.f32 0.5, %v138_v1  ;;  %v148_v8 = vmul.f32 %v135_v3, %v357_v19 }
 0x114   :  { %v119_v6 = vmul.f32 0.5, %v118_v2  ;;  %v153_v21 = vmul.f32 %v241_v10, %v146_v11 }
 0x115   :  { %v140_v7 = vsub.f32 1.5, %v139_v4  ;;  %v155_v18 = vmul.f32 %v241_v10, %v148_v8 }
 0x116   :  { %v120_v9 = vsub.f32 1.5, %v119_v6  ;;  %v160_v20 = vadd.f32 %v242_v17, %v153_v21 }
 0x117   :  { %v141_v12 = vmul.f32 %v250_v58, %v140_v7  ;;  %v162_v24 = vadd.f32 %v242_v17, %v155_v18 }
 0x118   :  { %v121_v13 = vmul.f32 %v252_v60, %v120_v9 }
 0x119   :  { %v145_v14 = vsel %vm144_vm11, %v250_v58, %v141_v12 }
 0x11a   :  { %v149_v15 = vmul.f32 %v145_v14, %v367_v29  ;;  %v125_v16 = vsel %vm124_vm13, %v252_v60, %v121_v13 }
 0x11b   :  { %v147_v19 = vmul.f32 %v125_v16, %v369_v30 }
 0x11c   :  { %v156_v22 = vmul.f32 %v241_v10, %v149_v15 }
 0x11d   :  { %v154_v23 = vmul.f32 %v241_v10, %v147_v19 }
 0x11e   :  { %v163_v25 = vadd.f32 %v242_v17, %v156_v22 }
 0x11f   :  { %v161_v26 = vadd.f32 %v242_v17, %v154_v23 }
 0x120   :  { %v165_v27 = vpack.c.bf16 %v163_v25, %v162_v24 }
 0x121   :  { %v164_v28 = vpack.c.bf16 %v161_v26, %v160_v20 }
 0x122   :  { %231 = vmatmul.msk.bf16.vlgmr.msra.gmra.mxu1 %vm54_vm0, %v165_v27 }
 0x123   :  { %230 = vmatmul.msk.bf16.vlgmr.msra.gmra.mxu0 %vm54_vm0, %v164_v28 }
 0x19f   :  { %v202_v29 = vpop.f32.mrf.mxu1 }
 0x1a0   :  { %v197_v31 = vpop.f32.mrf.mxu0  ;;  %v209_v32 = vpack.c.bf16 %v202_v29, %v202_v29 }
 0x1a1   :  { %v207_v33 = vpack.c.bf16 %v197_v31, %v197_v31 }
 0x1a2   :  { %214 = vst.msk [vmem:[%s402_s4 + $0x8] sm:$0xf] %vm211_vm14, %v209_v32 }
 0x1a3   :  { %212 = vst.msk [vmem:[%s402_s4] sm:$0xf] %vm211_vm14, %v207_v33 }
 0x1a7   :  { %v204_v30 = vpop.f32.mrf.mxu1 }
 0x1a8   :  { %v199_v34 = vpop.f32.mrf.mxu0  ;;  %v210_v35 = vpack.c.bf16 %v204_v30, %v204_v30 }
 0x1a9   :  { %v208_v36 = vpack.c.bf16 %v199_v34, %v199_v34 }
 0x1aa   :  { %215 = vst.msk [vmem:[%s402_s4 + $0xc] sm:$0xf] %vm211_vm14, %v210_v35 }
 0x1ab   :  { %213 = vst.msk [vmem:[%s402_s4 + $0x4] sm:$0xf] %vm211_vm14, %v208_v36 }
 0x1ac   :  { %220 = vsyncpa [#allocation3], 1 }
 0x1ad   :  { %221 = vsyncpa [#allocation5], 1 }

// kernel: basic_transformer_block.6
= control target key start
LH: loop header
LB: loop body
LE: loop exit
PB: predicated region body
PF: predicated region fallthrough
CT: control target
= control target key end

     0   :  { %14 = vsyncpa [#allocation3], 0  ;;  %s634_s0 = inlined_call_operand.vmem [shape: f32[32,32], index: 0, kind: input, shape index: {}]   ;;  %s635_s1 = inlined_call_operand.vmem [shape: f32[1,32], index: 1, kind: input, shape index: {}]   ;;  %s636_s2 = inlined_call_operand.vmem [shape: f32[1,32], index: 2, kind: input, shape index: {}]   ;;  %s637_s3 = inlined_call_operand.hbm [shape: bf16[32,32], index: 3, kind: input, shape index: {}]   ;;  %s638_s4 = inlined_call_operand.hbm [shape: bf16[32,32], index: 4, kind: input, shape index: {}]   ;;  %s639_s5 = inlined_call_operand.hbm [shape: bf16[32,32], index: 5, kind: input, shape index: {}]   ;;  %s640_s6 = inlined_call_operand.vmem [shape: bf16[32,32], index: 6, kind: output, shape index: {0}]   ;;  %s641_s7 = inlined_call_operand.vmem [shape: bf16[32,32], index: 7, kind: output, shape index: {1}]   ;;  %s642_s8 = inlined_call_operand.vmem [shape: bf16[32,32], index: 8, kind: output, shape index: {2}]  }
   0x1   :  { %15 = vsyncpa [#allocation5], 0  ;;  %s39_s29 = sshll.u32 %s638_s4, 4  ;;  %s474_s30 = smov [#allocation4]   ;;  %s40_s29 = int_to_ptr.hbm [resolvable:$true] %s39_s29 }
   0x2   :  { %s41_s9 = sshll.u32 %s474_s30, 4  ;;  %s26_s12 = sshll.u32 %s637_s3, 4  ;;  %s42_s9 = int_to_ptr.vmem [resolvable:$true] %s41_s9  ;;  %s27_s12 = int_to_ptr.hbm [resolvable:$true] %s26_s12 }
   0x3   :  { %s475_s13 = smov 64   ;;  %s476_s14 = smov 4  }
   0x4   :  { %47 = dma.hbm_to_vmem [thread:$0]  %s40_s29, 256, %s42_s9, [#allocation5], %s475_s13, %s475_s13, %s476_s14  }
   0x5   :  { %s477_s15 = smov [#allocation2]   ;;  %s52_s19 = sshll.u32 %s639_s5, 4  ;;  %s53_s19 = int_to_ptr.hbm [resolvable:$true] %s52_s19 }
   0x6   :  { %s28_s16 = sshll.u32 %s477_s15, 4  ;;  %s478_s4 = smov [#allocation6]   ;;  %s29_s16 = int_to_ptr.vmem [resolvable:$true] %s28_s16 }
   0x7   :  { %34 = dma.hbm_to_vmem [thread:$0]  %s27_s12, 256, %s29_s16, [#allocation3], %s475_s13, %s475_s13, %s476_s14  }
   0x8   :  { %s54_s20 = sshll.u32 %s478_s4, 4  ;;  %s55_s20 = int_to_ptr.vmem [resolvable:$true] %s54_s20 }
   0x9   :  { %60 = dma.hbm_to_vmem [thread:$0]  %s53_s19, 256, %s55_s20, [#allocation5], %s475_s13, %s475_s13, %s476_s14  }
   0xa   :  { %470 = dma.done.wait [#allocation3], 256  }
   0xb   :  { %471 = vsyncadd [#allocation3], 4294967040 }
   0xc   :  { %472 = dma.done.wait [#allocation5], 512  }
   0xd   :  { %473 = vsyncadd [#allocation5], 4294966784  ;;  %vm80_vm0 = vcmask 261120   ;;  %v76_v0 = vld [vmem:[%s634_s0 + $0x10] sm:$0xff]  ;;  %v74_v1 = vld [vmem:[%s634_s0] sm:$0xff]  ;;  %v479_v8 = vmov 32.0  }
   0xe   :  { %v87_v2 = vsel %vm80_vm0, %v76_v0, 0.0  ;;  %v81_v3 = vsel %vm80_vm0, %v74_v1, 0.0  ;;  %v77_v4 = vld [vmem:[%s634_s0 + $0x18] sm:$0xff]  ;;  %v75_v5 = vld [vmem:[%s634_s0 + $0x8] sm:$0xff]  ;;  %388 = vrcp.f32 %v479_v8  ;;  %v372_v42 = vld [vmem:[#allocation2] sm:$0xff]  ;;  %vm237_vm14 = vcmask 257024  }
   0xf   :  { %88 = vadd.xlane.f32.xlu1 %v87_v2  ;;  %82 = vadd.xlane.f32.xlu0 %v81_v3  ;;  %v90_v6 = vsel %vm80_vm0, %v77_v4, 0.0  ;;  %v84_v7 = vsel %vm80_vm0, %v75_v5, 0.0  ;;  %v373_v35 = vld [vmem:[#allocation2 + $0x8] sm:$0xff]  ;;  %v375_v36 = vld [vmem:[#allocation4 + $0x8] sm:$0xff]  ;;  %v374_v43 = vld [vmem:[#allocation4] sm:$0xff] }
  0x10   :  { %v377_v37 = vld [vmem:[#allocation6 + $0x8] sm:$0xff]  ;;  %220 = vmatpush.bf16.msra.mxu0 %v373_v35  ;;  %378 = vmatpush.bf16.msra.mxu3 %v373_v35  ;;  %v376_v44 = vld [vmem:[#allocation6] sm:$0xff] }
  0x11   :  { %264 = vmatpush.bf16.msra.mxu1 %v375_v36  ;;  %307 = vmatpush.bf16.msra.mxu2 %v377_v37 }
  0x14   :  { %v389_v9 = vpop.eup %388  ;;  %221 = vmatpush.bf16.msra.mxu0 %v372_v42  ;;  %379 = vmatpush.bf16.msra.mxu3 %v372_v42 }
  0x15   :  { %v94_v10 = vmul.f32 32.0, %v389_v9  ;;  %vm98_vm1 = vweird.f32 %v389_v9  ;;  %265 = vmatpush.bf16.msra.mxu1 %v374_v43  ;;  %308 = vmatpush.bf16.msra.mxu2 %v376_v44 }
  0x17   :  { %91 = vadd.xlane.f32.xlu1 %v90_v6  ;;  %85 = vadd.xlane.f32.xlu0 %v84_v7  ;;  %v95_v11 = vsub.f32 1.0, %v94_v10 }
  0x19   :  { %v96_v12 = vmul.f32 %v389_v9, %v95_v11 }
  0x1b   :  { %v97_v13 = vadd.f32 %v389_v9, %v96_v12 }
  0x1d   :  { %v99_v14 = vsel %vm98_vm1, %v389_v9, %v97_v13 }
  0x82   :  { %v89_v15 = vpop.xlane.xlu1 %88  ;;  %v83_v16 = vpop.xlane.xlu0 %82 }
  0x83   :  { %v102_v17 = vmul.f32 %v99_v14, %v89_v15  ;;  %v100_v18 = vmul.f32 %v99_v14, %v83_v16 }
  0x85   :  { %v550_v19 = vsub.f32 %v76_v0, %v102_v17  ;;  %v552_v20 = vsub.f32 %v74_v1, %v100_v18 }
  0x87   :  { %v110_v21 = vmul.f32 %v550_v19, %v550_v19  ;;  %v108_v22 = vmul.f32 %v552_v20, %v552_v20 }
  0x89   :  { %v118_v23 = vsel %vm80_vm0, %v110_v21, 0.0  ;;  %v112_v24 = vsel %vm80_vm0, %v108_v22, 0.0 }
  0x8a   :  { %v92_v25 = vpop.xlane.xlu1 %91  ;;  %119 = vadd.xlane.f32.xlu0 %v118_v23  ;;  %113 = vadd.xlane.f32.xlu2 %v112_v24  ;;  %v86_v26 = vpop.xlane.xlu0 %85 }
  0x8b   :  { %v103_v27 = vmul.f32 %v99_v14, %v92_v25  ;;  %v101_v28 = vmul.f32 %v99_v14, %v86_v26 }
  0x8d   :  { %v560_v29 = vsub.f32 %v77_v4, %v103_v27  ;;  %v562_v30 = vsub.f32 %v75_v5, %v101_v28 }
  0x8f   :  { %v111_v31 = vmul.f32 %v560_v29, %v560_v29  ;;  %v109_v32 = vmul.f32 %v562_v30, %v562_v30 }
  0x91   :  { %v121_v33 = vsel %vm80_vm0, %v111_v31, 0.0  ;;  %v115_v34 = vsel %vm80_vm0, %v109_v32, 0.0 }
  0x92   :  { %122 = vadd.xlane.f32.xlu1 %v121_v33  ;;  %116 = vadd.xlane.f32.xlu2 %v115_v34 }
  0xfd   :  { %v114_v38 = vpop.xlane.xlu2 %113  ;;  %v120_v39 = vpop.xlane.xlu0 %119 }
  0xfe   :  { %v124_v40 = vmul.f32 %v114_v38, %v99_v14  ;;  %v126_v41 = vmul.f32 %v120_v39, %v99_v14 }
 0x100   :  { %v128_v45 = vadd.f32 1e-05, %v124_v40  ;;  %v130_v46 = vadd.f32 1e-05, %v126_v41 }
 0x102   :  { %390 = vrsqrt.f32 %v128_v45  ;;  %vm158_vm2 = vweird.f32 %v130_v46  ;;  %vm138_vm6 = vweird.f32 %v128_v45 }
 0x103   :  { %392 = vrsqrt.f32 %v130_v46 }
 0x105   :  { %v123_v47 = vpop.xlane.xlu1 %122  ;;  %v117_v48 = vpop.xlane.xlu2 %116 }
 0x106   :  { %v127_v49 = vmul.f32 %v123_v47, %v99_v14  ;;  %v125_v50 = vmul.f32 %v117_v48, %v99_v14  ;;  %v386_v14 = vld [vmem:[%s635_s1] ss:$0 sm:$0xff] }
 0x108   :  { %v391_v51 = vpop.eup %390  ;;  %v131_v52 = vadd.f32 1e-05, %v127_v49  ;;  %v129_v53 = vadd.f32 1e-05, %v125_v50 }
 0x109   :  { %v393_v54 = vpop.eup %392  ;;  %v133_v55 = vmul.f32 %v391_v51, %v128_v45  ;;  %vm139_vm4 = vweird.f32 %v391_v51 }
 0x10a   :  { %v153_v56 = vmul.f32 %v393_v54, %v130_v46  ;;  %394 = vrsqrt.f32 %v131_v52  ;;  %vm159_vm3 = vweird.f32 %v393_v54  ;;  %vm140_vm7 = vmor %vm138_vm6, %vm139_vm4  ;;  %vm168_vm8 = vweird.f32 %v131_v52 }
 0x10b   :  { %v134_v57 = vmul.f32 %v391_v51, %v133_v55  ;;  %396 = vrsqrt.f32 %v129_v53  ;;  %vm160_vm5 = vmor %vm158_vm2, %vm159_vm3  ;;  %vm148_vm12 = vweird.f32 %v129_v53 }
 0x10c   :  { %v154_v58 = vmul.f32 %v393_v54, %v153_v56 }
 0x10d   :  { %v135_v59 = vmul.f32 0.5, %v134_v57 }
 0x10e   :  { %v155_v60 = vmul.f32 0.5, %v154_v58 }
 0x10f   :  { %v136_v61 = vsub.f32 1.5, %v135_v59 }
 0x110   :  { %v395_v62 = vpop.eup %394  ;;  %v156_v63 = vsub.f32 1.5, %v155_v60 }
 0x111   :  { %v397_v0 = vpop.eup %396  ;;  %v163_v1 = vmul.f32 %v395_v62, %v131_v52  ;;  %v137_v2 = vmul.f32 %v391_v51, %v136_v61  ;;  %vm169_vm9 = vweird.f32 %v395_v62 }
 0x112   :  { %v157_v3 = vmul.f32 %v393_v54, %v156_v63  ;;  %v143_v4 = vmul.f32 %v397_v0, %v129_v53  ;;  %vm170_vm10 = vmor %vm168_vm8, %vm169_vm9  ;;  %vm149_vm11 = vweird.f32 %v397_v0 }
 0x113   :  { %v164_v5 = vmul.f32 %v395_v62, %v163_v1  ;;  %v141_v9 = vsel %vm140_vm7, %v391_v51, %v137_v2  ;;  %vm150_vm13 = vmor %vm148_vm12, %vm149_vm11 }
 0x114   :  { %v144_v6 = vmul.f32 %v397_v0, %v143_v4  ;;  %v161_v7 = vsel %vm160_vm5, %v393_v54, %v157_v3  ;;  %v172_v15 = vmul.f32 %v141_v9, %v552_v20 }
 0x115   :  { %v165_v8 = vmul.f32 0.5, %v164_v5  ;;  %v174_v12 = vmul.f32 %v161_v7, %v550_v19  ;;  %v387_v19 = vld [vmem:[%s636_s2] ss:$0 sm:$0xff] }
 0x116   :  { %v145_v10 = vmul.f32 0.5, %v144_v6  ;;  %v179_v25 = vmul.f32 %v386_v14, %v172_v15 }
 0x117   :  { %v166_v11 = vsub.f32 1.5, %v165_v8  ;;  %v181_v23 = vmul.f32 %v386_v14, %v174_v12 }
 0x118   :  { %v146_v13 = vsub.f32 1.5, %v145_v10  ;;  %v186_v31 = vadd.f32 %v387_v19, %v179_v25 }
 0x119   :  { %v167_v16 = vmul.f32 %v395_v62, %v166_v11  ;;  %v188_v28 = vadd.f32 %v387_v19, %v181_v23 }
 0x11a   :  { %v147_v17 = vmul.f32 %v397_v0, %v146_v13 }
 0x11b   :  { %v171_v18 = vsel %vm170_vm10, %v395_v62, %v167_v16 }
 0x11c   :  { %v175_v21 = vmul.f32 %v171_v18, %v560_v29  ;;  %v151_v22 = vsel %vm150_vm13, %v397_v0, %v147_v17 }
 0x11d   :  { %v173_v24 = vmul.f32 %v151_v22, %v562_v30 }
 0x11e   :  { %v182_v26 = vmul.f32 %v386_v14, %v175_v21 }
 0x11f   :  { %v180_v27 = vmul.f32 %v386_v14, %v173_v24 }
 0x120   :  { %v189_v20 = vadd.f32 %v387_v19, %v182_v26 }
 0x121   :  { %v187_v32 = vadd.f32 %v387_v19, %v180_v27 }
 0x122   :  { %v191_v33 = vpack.c.bf16 %v189_v20, %v188_v28 }
 0x123   :  { %v190_v34 = vpack.c.bf16 %v187_v32, %v186_v31 }
 0x124   :  { %351 = vmatmul.msk.bf16.vlgmr.msra.gmra.mxu3 %vm80_vm0, %v191_v33 }
 0x125   :  { %350 = vmatmul.msk.bf16.vlgmr.msra.gmra.mxu0 %vm80_vm0, %v190_v34  ;;  %360 = vmatmul.msk.bf16.vlgmr.msra.gmra.mxu1 %vm80_vm0, %v190_v34 }
 0x126   :  { %370 = vmatmul.msk.bf16.vlgmr.msra.gmra.mxu2 %vm80_vm0, %v190_v34 }
 0x135   :  { %361 = vmatmul.msk.bf16.gmra.mxu1 %vm80_vm0, %v191_v33 }
 0x136   :  { %371 = vmatmul.msk.bf16.gmra.mxu2 %vm80_vm0, %v191_v33 }
 0x1a2   :  { %v223_v29 = vpop.f32.mrf.mxu0  ;;  %v267_v30 = vpop.f32.mrf.mxu1 }
 0x1a3   :  { %v233_v35 = vpack.c.bf16 %v223_v29, %v223_v29  ;;  %v277_v36 = vpack.c.bf16 %v267_v30, %v267_v30 }
 0x1a5   :  { %238 = vst.msk [vmem:[%s640_s6] sm:$0xf] %vm237_vm14, %v233_v35 }
 0x1a6   :  { %281 = vst.msk [vmem:[%s641_s7] sm:$0xf] %vm237_vm14, %v277_v36 }
 0x1a7   :  { %v228_v37 = vpop.f32.mrf.mxu3 }
 0x1a8   :  { %v235_v38 = vpack.c.bf16 %v228_v37, %v228_v37 }
 0x1a9   :  { %v310_v39 = vpop.f32.mrf.mxu2 }
 0x1aa   :  { %240 = vst.msk [vmem:[%s640_s6 + $0x8] sm:$0xf] %vm237_vm14, %v235_v38  ;;  %v320_v40 = vpack.c.bf16 %v310_v39, %v310_v39  ;;  %v225_v41 = vpop.f32.mrf.mxu0  ;;  %v269_v42 = vpop.f32.mrf.mxu1 }
 0x1ab   :  { %v234_v43 = vpack.c.bf16 %v225_v41, %v225_v41  ;;  %v278_v44 = vpack.c.bf16 %v269_v42, %v269_v42 }
 0x1ac   :  { %324 = vst.msk [vmem:[%s642_s8] sm:$0xf] %vm237_vm14, %v320_v40 }
 0x1ad   :  { %239 = vst.msk [vmem:[%s640_s6 + $0x4] sm:$0xf] %vm237_vm14, %v234_v43 }
 0x1ae   :  { %282 = vst.msk [vmem:[%s641_s7 + $0x4] sm:$0xf] %vm237_vm14, %v278_v44 }
 0x1af   :  { %v230_v45 = vpop.f32.mrf.mxu3 }
 0x1b0   :  { %v236_v46 = vpack.c.bf16 %v230_v45, %v230_v45 }
 0x1b1   :  { %v312_v47 = vpop.f32.mrf.mxu2 }
 0x1b2   :  { %241 = vst.msk [vmem:[%s640_s6 + $0xc] sm:$0xf] %vm237_vm14, %v236_v46  ;;  %v321_v48 = vpack.c.bf16 %v312_v47, %v312_v47  ;;  %v272_v49 = vpop.f32.mrf.mxu1 }
 0x1b3   :  { %v279_v50 = vpack.c.bf16 %v272_v49, %v272_v49 }
 0x1b4   :  { %325 = vst.msk [vmem:[%s642_s8 + $0x4] sm:$0xf] %vm237_vm14, %v321_v48 }
 0x1b5   :  { %283 = vst.msk [vmem:[%s641_s7 + $0x8] sm:$0xf] %vm237_vm14, %v279_v50 }
 0x1b9   :  { %v315_v51 = vpop.f32.mrf.mxu2 }
 0x1ba   :  { %v322_v52 = vpack.c.bf16 %v315_v51, %v315_v51  ;;  %v274_v53 = vpop.f32.mrf.mxu1 }
 0x1bb   :  { %v280_v54 = vpack.c.bf16 %v274_v53, %v274_v53 }
 0x1bc   :  { %326 = vst.msk [vmem:[%s642_s8 + $0x8] sm:$0xf] %vm237_vm14, %v322_v52 }
 0x1bd   :  { %284 = vst.msk [vmem:[%s641_s7 + $0xc] sm:$0xf] %vm237_vm14, %v280_v54 }
 0x1c1   :  { %v317_v55 = vpop.f32.mrf.mxu2 }
 0x1c2   :  { %v323_v56 = vpack.c.bf16 %v317_v55, %v317_v55 }
 0x1c4   :  { %327 = vst.msk [vmem:[%s642_s8 + $0xc] sm:$0xf] %vm237_vm14, %v323_v56 }
 0x1c5   :  { %340 = vsyncpa [#allocation3], 1 }
 0x1c6   :  { %341 = vsyncpa [#allocation5], 1 }

// kernel: basic_transformer_block.7
= control target key start
LH: loop header
LB: loop body
LE: loop exit
PB: predicated region body
PF: predicated region fallthrough
CT: control target
= control target key end

     0   :  { %11 = vsyncpa [#allocation6], 0  ;;  %s1873_s0 = inlined_call_operand.vmem [shape: bf16[2,16,32], index: 0, kind: input, shape index: {}]   ;;  %s1874_s1 = inlined_call_operand.vmem [shape: bf16[2,16,32], index: 1, kind: input, shape index: {}]   ;;  %s1875_s2 = inlined_call_operand.vmem [shape: bf16[2,16,32], index: 2, kind: input, shape index: {}]   ;;  %s1876_s3 = inlined_call_operand.hbm [shape: bf16[32,32], index: 3, kind: input, shape index: {}]   ;;  %s1877_s4 = inlined_call_operand.hbm [shape: f32[1,32], index: 4, kind: input, shape index: {}]   ;;  %s1878_s5 = inlined_call_operand.vmem [shape: f32[2,16,32], index: 5, kind: input, shape index: {}]   ;;  %s1879_s6 = inlined_call_operand.vmem [shape: f32[2,16,32], index: 6, kind: output, shape index: {}]  }
   0x1   :  { %12 = vsyncpa [#allocation8], 0  ;;  %s1588_s21 = smov 0   ;;  %s1590_s22 = smov 0  }
   0x2   :  { %s1592_s23 = smov 0  }
   0x3 LB: > { %s1265_s24 = sadd.s32 4294967295, %s1538_s23   ;;  %s37_s25 = sadd.s32 1, %s1534_s22  ;;  %s1538_s23 = sphi %s1592_s23, %s18_s23   ;;  %s1534_s22 = sphi %s1590_s22, %s1883_s22   ;;  %s1530_s21 = sphi %s1588_s21, %s1882_s21  }
   0x4   : > { %p39_p0 = scmp.ge.s32.totalorder %s37_s25, 2  ;;  %p1267_p1 = scmp.ge.s32.totalorder %s1538_s23, 1 }
   0x5   : > { %p224_p2 = scmp.lt.s32.totalorder %s1538_s23, 3  ;;  %p1613_p4 = scmp.eq.s32.totalorder %s1265_s24, 0 }
   0x6   : > { %s1885_s25 = smov (%p39_p0, %s37_s25), 0  ;;  %s235_s30 = sshll.u32 %s1876_s3, 4  ;;  %s236_s30 = int_to_ptr.hbm [resolvable:$true] %s235_s30 }
   0x7   : > { %p1609_p3 = pnand %p1267_p1, %p224_p2  ;;  %s1540_s7 = smov [#allocation5]  }
   0x8   : > { %s237_s8 = sshll.u32 %s1540_s7, 4  ;;  %s250_s11 = sshll.u32 %s1877_s4, 4  ;;  %s238_s8 = int_to_ptr.vmem [resolvable:$true] %s237_s8  ;;  %s251_s11 = int_to_ptr.hbm [resolvable:$true] %s250_s11 }
   0x9   : > { %p1333_p5 = pneg %p1609_p3  ;;  %s1541_s12 = smov 64  }
   0xa   : > { %s1542_s13 = smov 4   ;;  %s1543_s14 = smov [#allocation7]  }
   0xb   : > { %p1334_p6 = pnand %p1613_p4, %p1333_p5  ;;  %s252_s15 = sshll.u32 %s1543_s14, 4  ;;  %s253_s15 = int_to_ptr.vmem [resolvable:$true] %s252_s15 }
   0xc   : > { %317 = sbr.rel (%p1609_p3) target bundleno = 1520 (0x5f0), region = 44 }
   0xd   : > { %1336 = dma.hbm_to_vmem [thread:$0]  (!%p1334_p6), %s236_s30, 256, %s238_s8, [#allocation6], %s1541_s12, %s1541_s12, %s1542_s13  }
   0xe   : > { %1339 = dma.hbm_to_vmem [thread:$0]  (!%p1334_p6), %s251_s11, 16, %s253_s15, [#allocation8]  }
  0x11   : > { %1521 = dma.done.wait (%p1613_p4), [#allocation6], 256  }
  0x12   : > { %1523 = vsyncadd (%p1613_p4), [#allocation6], 4294967040 }
  0x13   : > { %1525 = dma.done.wait (%p1613_p4), [#allocation8], 16  }
  0x14   : > { %1527 = vsyncadd (%p1613_p4), [#allocation8], 4294967280  ;;  %p389_p7 = scmp.lt.s32.totalorder %s1530_s21, 1  ;;  %vm460_vm0 = vcmask 64512   ;;  %s1544_s27 = smov 120   ;;  %vm443_vm1 = vcmask 7168  }
  0x15   : > { %v1545_v3 = vmov -inf   ;;  %vm510_vm2 = vcmask 130048   ;;  %s1546_s28 = smov 112   ;;  %v1547_v10 = vmov 0   ;;  %v1548_v11 = vmov 0.0   ;;  %s1549_s29 = smov 104  }
  0x16   : > { %s1887_s21 = smov (!%p389_p7, %s1530_s21), 1  ;;  %444 = vst.msk [vmem:[#allocation2] sm:$0xff] %vm443_vm1, %v1545_v3  ;;  %1381 = vset.pattern.permute.xlu1 %v1547_v10  ;;  %1382 = vset.pattern.permute.xlu2 %v1547_v10  ;;  %s1550_s9 = smov 8   ;;  %vm1051_vm3 = vcmask 195584   ;;  %vm1075_vm4 = vcmask 261120  }
  0x17   : > { %s1642_s16 = sshll.u32 %s1887_s21, 3  ;;  %445 = vst.msk [vmem:[#allocation2 + $0x8] sm:$0xff] %vm443_vm1, %v1545_v3  ;;  %1383 = vset.pattern.permute.xlu0 %v1547_v10  ;;  %s1551_s10 = smov 16  }
  0x18   : > { %s406_s19 = scalar_lea.vmem %s1874_s1, %s1642_s16  ;;  %s396_s26 = scalar_lea.vmem %s1873_s0, %s1642_s16  ;;  %446 = vst.msk [vmem:[#allocation2 + $0x10] sm:$0xff] %vm443_vm1, %v1545_v3 }
  0x19   : > { %v1321_v0 = vld [vmem:[%s406_s19] sm:$0xff]  ;;  %447 = vst.msk [vmem:[#allocation2 + $0x18] sm:$0xff] %vm443_vm1, %v1545_v3  ;;  %s416_s8 = scalar_lea.vmem %s1875_s2, %s1642_s16  ;;  %s1552_s11 = smov 24  }
  0x1a   : > { %v490_v1 = vsel %vm460_vm0, %v1321_v0, 0  ;;  %v1320_v2 = vld [vmem:[%s396_s26] sm:$0xff]  ;;  %602 = vrot.lane.b32.xlu1 %v1321_v0, %s1544_s27  ;;  %448 = vst.msk [vmem:[#allocation2 + $0x20] sm:$0xff] %vm443_vm1, %v1545_v3  ;;  %s1318_s12 = sshll.u32 %s1887_s21, 4 }
  0x1b   : > { %499 = vmatpush.bf16.xpose.msra.mxu0 %v490_v1  ;;  %449 = vst.msk [vmem:[#allocation2 + $0x28] sm:$0xff] %vm443_vm1, %v1545_v3  ;;  %v1714_v22 = vld [vmem:[%s416_s8] sm:$0xff]  ;;  %s426_s15 = scalar_lea.vmem %s1878_s5, %s1318_s12  ;;  %s436_s18 = scalar_lea.vmem %s1879_s6, %s1318_s12 }
  0x1c   : > { %450 = vst.msk [vmem:[#allocation2 + $0x30] sm:$0xff] %vm443_vm1, %v1545_v3  ;;  %587 = vmatpush.bf16.msra.mxu1 %v1714_v22 }
  0x1d   : > { %451 = vst.msk [vmem:[#allocation2 + $0x38] sm:$0xff] %vm443_vm1, %v1545_v3  ;;  %v1685_v12 = vld [vmem:[#allocation2] sm:$0xff] }
  0x1e   : > { %455 = vst.msk [vmem:[#allocation3 + $0x18] sm:$0xff] %vm443_vm1, %v1548_v11  ;;  %v1695_v16 = vld [vmem:[#allocation2 + $0x8] sm:$0xff] }
  0x1f   : > { %452 = vst.msk [vmem:[#allocation3] sm:$0xff] %vm443_vm1, %v1548_v11  ;;  %v1753_v56 = vld [vmem:[#allocation2 + $0x10] sm:$0xff] }
  0x20   : > { %453 = vst.msk [vmem:[#allocation3 + $0x8] sm:$0xff] %vm443_vm1, %v1548_v11  ;;  %v1763_v60 = vld [vmem:[#allocation2 + $0x18] sm:$0xff] }
  0x21   : > { %454 = vst.msk [vmem:[#allocation3 + $0x10] sm:$0xff] %vm443_vm1, %v1548_v11 }
  0x22   : > { %1292 = vmatmul.msk.bf16.vlgmr.msra.gmra.mxu0 %vm460_vm0, %v1320_v2  ;;  %456 = vst.msk [vmem:[#allocation3 + $0x20] sm:$0xff] %vm443_vm1, %v1548_v11 }
  0x23   : > { %457 = vst.msk [vmem:[#allocation3 + $0x28] sm:$0xff] %vm443_vm1, %v1548_v11 }
  0x24   : > { %458 = vst.msk [vmem:[#allocation3 + $0x30] sm:$0xff] %vm443_vm1, %v1548_v11 }
  0x25   : > { %459 = vst.msk [vmem:[#allocation3 + $0x38] sm:$0xff] %vm443_vm1, %v1548_v11 }
  0x26   : > { %461 = vst.msk [vmem:[#allocation4] sm:$0xff] %vm460_vm0, %v1548_v11 }
  0x27   : > { %462 = vst.msk [vmem:[#allocation4 + $0x8] sm:$0xff] %vm460_vm0, %v1548_v11 }
  0x28   : > { %463 = vst.msk [vmem:[#allocation4 + $0x10] sm:$0xff] %vm460_vm0, %v1548_v11 }
  0x29   : > { %464 = vst.msk [vmem:[#allocation4 + $0x18] sm:$0xff] %vm460_vm0, %v1548_v11 }
  0x2a   : > { %465 = vst.msk [vmem:[#allocation4 + $0x20] sm:$0xff] %vm460_vm0, %v1548_v11 }
  0x2b   : > { %466 = vst.msk [vmem:[#allocation4 + $0x28] sm:$0xff] %vm460_vm0, %v1548_v11 }
  0x2c   : > { %467 = vst.msk [vmem:[#allocation4 + $0x30] sm:$0xff] %vm460_vm0, %v1548_v11 }
  0x2d   : > { %468 = vst.msk [vmem:[#allocation4 + $0x38] sm:$0xff] %vm460_vm0, %v1548_v11  ;;  %v1776_v11 = vld [vmem:[#allocation2 + $0x38] sm:$0xff] }
  0x8c   : > { %v603_v20 = vpop.permute.xlu1 %602 }
  0x8d   : > { %v608_v21 = vsel %vm460_vm0, %v603_v20, 0 }
  0x8e   : > { %617 = vmatpush.bf16.xpose.msra.mxu2 %v608_v21 }
  0x9f   : > { %v501_v4 = vpop.f32.mrf.mxu0 }
  0xa0   : > { %v1663_v5 = vmul.f32 0.35355338, %v501_v4 }
  0xa2   : > { %v511_v6 = vsel %vm510_vm2, %v1663_v5, -inf }
  0xa3   : > { %512 = vmax.xlane.f32.xlu0 %v511_v6 }
  0xa7   : > { %v503_v7 = vpop.f32.mrf.mxu0 }
  0xa8   : > { %v507_v8 = vmul.f32 0.35355338, %v503_v7 }
  0xaa   : > { %v514_v9 = vsel %vm510_vm2, %v507_v8, -inf }
  0xab   : > { %515 = vmax.xlane.f32.xlu0 %v514_v9 }
  0xbf   : > { %718 = vrot.lane.b32.xlu0 %v1321_v0, %s1546_s28 }
 0x116   : > { %v513_v13 = vpop.xlane.xlu0 %512 }
 0x117   : > { %v1688_v14 = vmax.f32 %v1685_v12, %v513_v13 }
 0x119   : > { %v519_v15 = vsub.f32 %v1685_v12, %v1688_v14  ;;  %598 = vst.msk [vmem:[#allocation2] sm:$0xff] %vm443_vm1, %v1688_v14  ;;  %527 = vperm.xlu1 %1381, %v1688_v14   ;;  %v676_v12 = vld [vmem:[#allocation4 + $0x18] sm:$0xff] }
 0x11e   : > { %v516_v17 = vpop.xlane.xlu0 %515 }
 0x11f   : > { %v1698_v18 = vmax.f32 %v1695_v16, %v516_v17 }
 0x121   : > { %v520_v19 = vsub.f32 %v1695_v16, %v1698_v18  ;;  %599 = vst.msk [vmem:[#allocation2 + $0x8] sm:$0xff] %vm443_vm1, %v1698_v18  ;;  %532 = vperm.xlu2 %1382, %v1698_v18   ;;  %834 = vrot.lane.b32.xlu1 %v1321_v0, %s1549_s29  ;;  %v743_v0 = vld [vmem:[#allocation2 + $0x20] sm:$0xff] }
 0x129   : > { %600 = vrot.lane.b32.xlu2 %v1320_v2, %s1544_s27  ;;  %832 = vrot.lane.b32.xlu1 %v1320_v2, %s1549_s29 }
 0x131   : > { %716 = vrot.lane.b32.xlu2 %v1320_v2, %s1546_s28  ;;  %v719_v23 = vpop.permute.xlu0 %718 }
 0x132   : > { %v724_v24 = vsel %vm460_vm0, %v719_v23, 0 }
 0x133   : > { %733 = vmatpush.bf16.xpose.msrb.mxu1 %v724_v24 }
 0x17b   : > { %v533_v25 = vpop.permute.xlu2 %532 }
 0x17c   : > { %v536_v27 = vsub.f32 %v507_v8, %v533_v25 }
 0x17e   : > { %v539_v28 = vmul.f32 1.442695, %v536_v27 }
 0x180   : > { %1400 = vpow2.f32 %v539_v28 }
 0x183   : > { %v601_v26 = vpop.permute.xlu2 %600 }
 0x184   : > { %1298 = vmatmul.msk.bf16.vlgmr.msra.gmra.mxu2 %vm460_vm0, %v601_v26 }
 0x186   : > { %v1721_v34 = vpop.eup %1400 }
 0x18b   : > { %v528_v29 = vpop.permute.xlu1 %527  ;;  %v717_v38 = vpop.permute.xlu2 %716 }
 0x18c   : > { %v535_v30 = vsub.f32 %v1663_v5, %v528_v29  ;;  %v859_v5 = vld [vmem:[#allocation2 + $0x30] sm:$0xff] }
 0x18e   : > { %v537_v31 = vmul.f32 1.442695, %v535_v30 }
 0x190   : > { %1402 = vpow2.f32 %v537_v31 }
 0x193   : > { %v835_v32 = vpop.permute.xlu1 %834 }
 0x194   : > { %v840_v33 = vsel %vm460_vm0, %v835_v32, 0  ;;  %v1788_v32 = vld [vmem:[#allocation2 + $0x28] sm:$0xff] }
 0x195   : > { %849 = vmatpush.bf16.xpose.msrb.mxu0 %v840_v33 }
 0x196   : > { %v1723_v35 = vpop.eup %1402 }
 0x197   : > { %v570_v36 = vpack.c.bf16 %v1721_v34, %v1723_v35 }
 0x199   : > { %1297 = vmatmul.msk.bf16.vlgmr.msra.gmra.mxu1 %vm510_vm2, %v570_v36 }
 0x19b   : > { %v833_v37 = vpop.permute.xlu1 %832 }
 0x19c   : > { %1302 = vmatmul.msk.bf16.vlgmr.msrb.gmra.mxu0 %vm460_vm0, %v833_v37 }
 0x1a9   : > { %1300 = vmatmul.msk.bf16.vlgmr.msrb.gmra.mxu1 %vm460_vm0, %v717_v38 }
 0x207   : > { %v619_v39 = vpop.f32.mrf.mxu2 }
 0x208   : > { %v1730_v40 = vmul.f32 0.35355338, %v619_v39 }
 0x20a   : > { %v629_v41 = vsel %vm510_vm2, %v1730_v40, -inf }
 0x20b   : > { %630 = vmax.xlane.f32.xlu2 %v629_v41 }
 0x20f   : > { %v621_v42 = vpop.f32.mrf.mxu2 }
 0x210   : > { %v625_v43 = vmul.f32 0.35355338, %v621_v42 }
 0x212   : > { %v632_v44 = vsel %vm510_vm2, %v625_v43, -inf }
 0x213   : > { %633 = vmax.xlane.f32.xlu1 %v632_v44  ;;  %v548_v44 = vsel %vm510_vm2, %v1721_v34, 0.0 }
 0x216   : > { %v1735_v45 = vpop.f32.mrf.mxu1 }
 0x219   : > { %v851_v46 = vpop.f32.mrf.mxu0 }
 0x21a   : > { %v1737_v47 = vmul.f32 0.35355338, %v851_v46 }
 0x21c   : > { %v861_v48 = vsel %vm510_vm2, %v1737_v47, -inf }
 0x21d   : > { %862 = vmax.xlane.f32.xlu2 %v861_v48 }
 0x21e   : > { %v1741_v49 = vpop.f32.mrf.mxu1 }
 0x221   : > { %v853_v50 = vpop.f32.mrf.mxu0 }
 0x222   : > { %v1743_v51 = vmul.f32 0.35355338, %v853_v50 }
 0x224   : > { %v864_v52 = vsel %vm510_vm2, %v1743_v51, -inf }
 0x225   : > { %865 = vmax.xlane.f32.xlu1 %v864_v52 }
 0x226   : > { %v735_v53 = vpop.f32.mrf.mxu1 }
 0x227   : > { %v1747_v54 = vmul.f32 0.35355338, %v735_v53 }
 0x229   : > { %v745_v55 = vsel %vm510_vm2, %v1747_v54, -inf }
 0x22a   : > { %746 = vmax.xlane.f32.xlu0 %v745_v55  ;;  %v661_v55 = vld [vmem:[#allocation3 + $0x18] sm:$0xff] }
 0x22e   : > { %v737_v4 = vpop.f32.mrf.mxu1 }
 0x22f   : > { %v1771_v8 = vmul.f32 0.35355338, %v737_v4 }
 0x231   : > { %v748_v10 = vsel %vm510_vm2, %v1771_v8, -inf }
 0x23e   : > { %690 = vrot.lane.b32.xlu1 %v1714_v22, %s1544_s27 }
 0x27e   : > { %v631_v57 = vpop.xlane.xlu2 %630 }
 0x27f   : > { %v1756_v58 = vmax.f32 %v1753_v56, %v631_v57  ;;  %v545_v57 = vsel %vm510_vm2, %v1723_v35, 0.0 }
 0x281   : > { %v637_v59 = vsub.f32 %v1753_v56, %v1756_v58  ;;  %714 = vst.msk [vmem:[#allocation2 + $0x10] sm:$0xff] %vm443_vm1, %v1756_v58  ;;  %645 = vperm.xlu0 %1383, %v1756_v58   ;;  %v660_v56 = vld [vmem:[#allocation3 + $0x10] sm:$0xff] }
 0x283   : > { %v639_v16 = vmul.f32 1.442695, %v637_v59 }
 0x286   : > { %v634_v61 = vpop.xlane.xlu1 %633 }
 0x287   : > { %v636_v62 = vmax.f32 %v1763_v60, %v634_v61 }
 0x289   : > { %v638_v63 = vsub.f32 %v1763_v60, %v636_v62  ;;  %715 = vst.msk [vmem:[#allocation2 + $0x18] sm:$0xff] %vm443_vm1, %v636_v62  ;;  %650 = vperm.xlu2 %1382, %v636_v62   ;;  %806 = vrot.lane.b32.xlu0 %v1714_v22, %s1546_s28 }
 0x28b   : > { %v641_v48 = vmul.f32 1.442695, %v638_v63 }
 0x290   : > { %v863_v6 = vpop.xlane.xlu2 %862 }
 0x291   : > { %v867_v7 = vmax.f32 %v859_v5, %v863_v6 }
 0x293   : > { %v869_v9 = vsub.f32 %v859_v5, %v867_v7  ;;  %946 = vst.msk [vmem:[#allocation2 + $0x30] sm:$0xff] %vm443_vm1, %v867_v7 }
 0x298   : > { %v866_v13 = vpop.xlane.xlu1 %865 }
 0x299   : > { %v1779_v17 = vmax.f32 %v1776_v11, %v866_v13 }
 0x29b   : > { %947 = vst.msk [vmem:[#allocation2 + $0x38] sm:$0xff] %vm443_vm1, %v1779_v17 }
 0x29d   : > { %v747_v1 = vpop.xlane.xlu0 %746 }
 0x29e   : > { %v751_v2 = vmax.f32 %v743_v0, %v747_v1 }
 0x2a0   : > { %v753_v3 = vsub.f32 %v743_v0, %v751_v2  ;;  %830 = vst.msk [vmem:[#allocation2 + $0x20] sm:$0xff] %vm443_vm1, %v751_v2 }
 0x2a2   : > { %v755_v46 = vmul.f32 1.442695, %v753_v3 }
 0x2b0   : > { %v691_v20 = vpop.permute.xlu1 %690 }
 0x2b1   : > { %703 = vmatpush.bf16.msra.mxu3 %v691_v20 }
 0x2b2   : > { %749 = vmax.xlane.f32.xlu2 %v748_v10 }
 0x2ca   : > { %761 = vperm.xlu2 %1382, %v751_v2  }
 0x2d2   : > { %877 = vperm.xlu2 %1382, %v867_v7  }
 0x2da   : > { %922 = vrot.lane.b32.xlu2 %v1714_v22, %s1549_s29 }
 0x2e3   : > { %v651_v21 = vpop.permute.xlu2 %650 }
 0x2e4   : > { %v654_v23 = vsub.f32 %v625_v43, %v651_v21 }
 0x2e6   : > { %v657_v24 = vmul.f32 1.442695, %v654_v23 }
 0x2e8   : > { %1404 = vpow2.f32 %v657_v24  ;;  %v523_v24 = vmul.f32 1.442695, %v520_v19 }
 0x2ee   : > { %v1405_v25 = vpop.eup %1404 }
 0x2ef   : > { %v667_v26 = vsel %vm510_vm2, %v1405_v25, 0.0 }
 0x2f0   : > { %668 = vadd.xlane.f32.xlu0 %v667_v26 }
 0x2f3   : > { %v646_v27 = vpop.permute.xlu0 %645 }
 0x2f4   : > { %v653_v28 = vsub.f32 %v1730_v40, %v646_v27 }
 0x2f6   : > { %v655_v29 = vmul.f32 1.442695, %v653_v28 }
 0x2f8   : > { %1406 = vpow2.f32 %v655_v29 }
 0x2fb   : > { %v807_v41 = vpop.permute.xlu0 %806 }
 0x2fc   : > { %819 = vmatpush.bf16.msrb.mxu3 %v807_v41 }
 0x2fe   : > { %v1407_v30 = vpop.eup %1406 }
 0x2ff   : > { %v689_v31 = vpack.c.bf16 %v1405_v25, %v1407_v30  ;;  %v664_v50 = vsel %vm510_vm2, %v1407_v30, 0.0  ;;  %v892_v25 = vld [vmem:[#allocation3 + $0x30] sm:$0xff] }
 0x301   : > { %1299 = vmatmul.msk.bf16.vlgmr.msra.gmra.mxu3 %vm510_vm2, %v689_v31  ;;  %v542_v31 = vld [vmem:[#allocation3 + $0x8] sm:$0xff] }
 0x325   : > { %v750_v22 = vpop.xlane.xlu2 %749 }
 0x326   : > { %v1791_v33 = vmax.f32 %v1788_v32, %v750_v22 }
 0x328   : > { %v754_v36 = vsub.f32 %v1788_v32, %v1791_v33  ;;  %831 = vst.msk [vmem:[#allocation2 + $0x28] sm:$0xff] %vm443_vm1, %v1791_v33  ;;  %766 = vperm.xlu1 %1381, %v1791_v33   ;;  %v791_v33 = vld [vmem:[#allocation4 + $0x20] sm:$0xff] }
 0x32d   : > { %v762_v37 = vpop.permute.xlu2 %761 }
 0x32e   : > { %v769_v2 = vsub.f32 %v1747_v54, %v762_v37 }
 0x330   : > { %882 = vperm.xlu1 %1381, %v1779_v17   ;;  %v771_v3 = vmul.f32 1.442695, %v769_v2 }
 0x335   : > { %v878_v38 = vpop.permute.xlu2 %877 }
 0x336   : > { %v885_v39 = vsub.f32 %v1737_v47, %v878_v38  ;;  %v871_v47 = vmul.f32 1.442695, %v869_v9 }
 0x338   : > { %v887_v40 = vmul.f32 1.442695, %v885_v39  ;;  %v521_v39 = vmul.f32 1.442695, %v519_v15 }
 0x33a   : > { %1408 = vpow2.f32 %v887_v40 }
 0x33b   : > { %1410 = vpow2.f32 %v755_v46 }
 0x33c   : > { %1412 = vpow2.f32 %v641_v48 }
 0x33d   : > { %1414 = vpow2.f32 %v871_v47  ;;  %v923_v1 = vpop.permute.xlu2 %922 }
 0x33e   : > { %935 = vmatpush.bf16.msrb.mxu2 %v923_v1  ;;  %v893_v1 = vld [vmem:[#allocation3 + $0x38] sm:$0xff] }
 0x340   : > { %v1409_v42 = vpop.eup %1408 }
 0x341   : > { %v896_v43 = vsel %vm510_vm2, %v1409_v42, 0.0  ;;  %v1804_v52 = vpop.eup %1410 }
 0x342   : > { %897 = vadd.xlane.f32.xlu0 %v896_v43  ;;  %v1413_v53 = vpop.eup %1412 }
 0x343   : > { %v663_v34 = vmul.f32 %v1413_v53, %v661_v55  ;;  %v1415_v62 = vpop.eup %1414  ;;  %v757_v55 = vmul.f32 1.442695, %v754_v36  ;;  %v675_v36 = vld [vmem:[#allocation4 + $0x10] sm:$0xff] }
 0x344   : > { %v894_v26 = vmul.f32 %v1415_v62, %v892_v25 }
 0x34a   : > { %549 = vadd.xlane.f32.xlu0 %v548_v44 }
 0x35a   : > { %665 = vadd.xlane.f32.xlu1 %v664_v50 }
 0x35e   : > { %795 = vperm.xlu0 %1383, %v1804_v52  }
 0x362   : > { %546 = vadd.xlane.f32.xlu1 %v545_v57 }
 0x363   : > { %v669_v60 = vpop.xlane.xlu0 %668 }
 0x364   : > { %v671_v61 = vadd.f32 %v669_v60, %v663_v34 }
 0x366   : > { %673 = vst.msk [vmem:[#allocation3 + $0x18] sm:$0xff] %vm443_vm1, %v671_v61  ;;  %911 = vperm.xlu0 %1383, %v1415_v62   ;;  %v777_v61 = vld [vmem:[#allocation3 + $0x28] sm:$0xff] }
 0x36d   : > { %v970_v63 = vld [vmem:[#allocation3 + $0x18] sm:$0xff] }
 0x36e   : > { %1416 = vrcp.f32 %v970_v63 }
 0x36f   : > { %1418 = vpow2.f32 %v771_v3 }
 0x374   : > { %v1417_v0 = vpop.eup %1416 }
 0x375   : > { %982 = vperm.xlu0 %1383, %v1417_v0   ;;  %v1419_v9 = vpop.eup %1418 }
 0x376   : > { %v780_v47 = vsel %vm510_vm2, %v1419_v9, 0.0 }
 0x37b   : > { %684 = vperm.xlu1 %1381, %v1413_v53  }
 0x384   : > { %v705_v48 = vpop.f32.mrf.mxu3 }
 0x38c   : > { %v707_v50 = vpop.f32.mrf.mxu3 }
 0x39a   : > { %v767_v4 = vpop.permute.xlu1 %766 }
 0x39b   : > { %v770_v35 = vsub.f32 %v1771_v8, %v767_v4 }
 0x39d   : > { %v773_v5 = vmul.f32 1.442695, %v770_v35 }
 0x39f   : > { %1420 = vpow2.f32 %v773_v5 }
 0x3a2   : > { %v883_v6 = vpop.permute.xlu1 %882 }
 0x3a3   : > { %v886_v7 = vsub.f32 %v1743_v51, %v883_v6  ;;  %v870_v51 = vsub.f32 %v1776_v11, %v1779_v17 }
 0x3a5   : > { %v1421_v10 = vpop.eup %1420  ;;  %v889_v13 = vmul.f32 1.442695, %v886_v7  ;;  %v873_v27 = vmul.f32 1.442695, %v870_v51 }
 0x3a6   : > { %v783_v20 = vsel %vm510_vm2, %v1421_v10, 0.0  ;;  %v805_v21 = vpack.c.bf16 %v1421_v10, %v1419_v9 }
 0x3a7   : > { %1422 = vpow2.f32 %v889_v13  ;;  %784 = vadd.xlane.f32.xlu1 %v783_v20 }
 0x3a8   : > { %1301 = vmatmul.msk.bf16.vlgmr.msrb.gmra.mxu3 %vm510_vm2, %v805_v21  ;;  %1424 = vpow2.f32 %v523_v24 }
 0x3a9   : > { %1426 = vpow2.f32 %v873_v27 }
 0x3aa   : > { %1428 = vpow2.f32 %v639_v16 }
 0x3ad   : > { %v1423_v54 = vpop.eup %1422 }
 0x3ae   : > { %v899_v23 = vsel %vm510_vm2, %v1423_v54, 0.0  ;;  %v921_v8 = vpack.c.bf16 %v1423_v54, %v1409_v42  ;;  %v1425_v30 = vpop.eup %1424  ;;  %v541_v42 = vld [vmem:[#allocation3] sm:$0xff]  ;;  %v907_v54 = vld [vmem:[#allocation4 + $0x30] sm:$0xff] }
 0x3af   : > { %900 = vadd.xlane.f32.xlu2 %v899_v23  ;;  %v544_v18 = vmul.f32 %v1425_v30, %v542_v31  ;;  %v1427_v37 = vpop.eup %1426 }
 0x3b0   : > { %1303 = vmatmul.msk.bf16.vlgmr.msrb.gmra.mxu2 %vm510_vm2, %v921_v8  ;;  %v1429_v17 = vpop.eup %1428  ;;  %v895_v3 = vmul.f32 %v1427_v37, %v893_v1 }
 0x3b1   : > { %v662_v58 = vmul.f32 %v1429_v17, %v660_v56  ;;  %v792_v56 = vld [vmem:[#allocation4 + $0x28] sm:$0xff] }
 0x3b5   : > { %v898_v28 = vpop.xlane.xlu0 %897 }
 0x3b6   : > { %v902_v29 = vadd.f32 %v898_v28, %v894_v26  ;;  %v908_v26 = vld [vmem:[#allocation4 + $0x38] sm:$0xff] }
 0x3b8   : > { %904 = vst.msk [vmem:[#allocation3 + $0x30] sm:$0xff] %vm443_vm1, %v902_v29 }
 0x3bd   : > { %v550_v19 = vpop.xlane.xlu0 %549 }
 0x3be   : > { %v552_v22 = vadd.f32 %v550_v19, %v544_v18  ;;  %v557_v18 = vld [vmem:[#allocation4 + $0x8] sm:$0xff] }
 0x3bf   : > { %v1005_v11 = vld [vmem:[#allocation3 + $0x30] sm:$0xff] }
 0x3c0   : > { %555 = vst.msk [vmem:[#allocation3 + $0x8] sm:$0xff] %vm443_vm1, %v552_v22  ;;  %916 = vperm.xlu1 %1381, %v1427_v37   ;;  %1430 = vrcp.f32 %v1005_v11  ;;  %v776_v11 = vld [vmem:[#allocation3 + $0x20] sm:$0xff] }
 0x3c1   : > { %1432 = vpow2.f32 %v521_v39 }
 0x3c2   : > { %1434 = vpow2.f32 %v757_v55  ;;  %v556_v55 = vld [vmem:[#allocation4] sm:$0xff] }
 0x3c6   : > { %v1431_v38 = vpop.eup %1430 }
 0x3c7   : > { %1013 = vperm.xlu0 %1383, %v1431_v38   ;;  %679 = vperm.xlu2 %1382, %v1429_v17   ;;  %v1433_v41 = vpop.eup %1432  ;;  %v952_v24 = vld [vmem:[#allocation3 + $0x8] sm:$0xff]  ;;  %v778_v17 = vmul.f32 %v1804_v52, %v776_v11  ;;  %v1093_v11 = vld [vmem:[%s426_s15] sm:$0xff] }
 0x3c8   : > { %v543_v43 = vmul.f32 %v1433_v41, %v541_v42  ;;  %v1435_v34 = vpop.eup %1434 }
 0x3c9   : > { %v779_v62 = vmul.f32 %v1435_v34, %v777_v61 }
 0x3cd   : > { %v666_v59 = vpop.xlane.xlu1 %665 }
 0x3ce   : > { %v670_v40 = vadd.f32 %v666_v59, %v662_v58 }
 0x3cf   : > { %565 = vperm.xlu0 %1383, %v1425_v30  }
 0x3d0   : > { %672 = vst.msk [vmem:[#allocation3 + $0x10] sm:$0xff] %vm443_vm1, %v670_v40  ;;  %v796_v2 = vpop.permute.xlu0 %795 }
 0x3d1   : > { %v803_v6 = vmul.f32 %v796_v2, %v791_v33 }
 0x3d5   : > { %v547_v44 = vpop.xlane.xlu1 %546 }
 0x3d6   : > { %v551_v46 = vadd.f32 %v547_v44, %v543_v43 }
 0x3d7   : > { %v969_v57 = vld [vmem:[#allocation3 + $0x10] sm:$0xff] }
 0x3d8   : > { %554 = vst.msk [vmem:[#allocation3] sm:$0xff] %vm443_vm1, %v551_v46  ;;  %1436 = vrcp.f32 %v969_v57  ;;  %v912_v5 = vpop.permute.xlu0 %911 }
 0x3d9   : > { %v919_v8 = vmul.f32 %v912_v5, %v907_v54  ;;  %v1324_v5 = vld [vmem:[#allocation5 + $0x8] sm:$0xff] }
 0x3da   : > { %1085 = vmatpush.bf16.msra.mxu1 %v1324_v5 }
 0x3de   : > { %v1437_v60 = vpop.eup %1436 }
 0x3e7   : > { %v983_v23 = vpop.permute.xlu0 %982 }
 0x3ed   : > { %v685_v14 = vpop.permute.xlu1 %684 }
 0x3ee   : > { %v688_v15 = vmul.f32 %v685_v14, %v676_v12 }
 0x3f0   : > { %v711_v53 = vadd.f32 %v707_v50, %v688_v15  ;;  %781 = vadd.xlane.f32.xlu2 %v780_v47  ;;  %v951_v15 = vld [vmem:[#allocation3] sm:$0xff] }
 0x3f2   : > { %713 = vst.msk [vmem:[#allocation4 + $0x18] sm:$0xff] %vm460_vm0, %v711_v53 }
 0x3f9   : > { %v974_v43 = vld [vmem:[#allocation4 + $0x18] sm:$0xff] }
 0x3fa   : > { %v986_v52 = vmul.f32 %v983_v23, %v974_v43 }
 0x408   : > { %800 = vperm.xlu2 %1382, %v1435_v34  }
 0x410   : > { %977 = vperm.xlu2 %1382, %v1437_v60  }
 0x41a   : > { %v785_v63 = vpop.xlane.xlu1 %784 }
 0x41b   : > { %v787_v0 = vadd.f32 %v785_v63, %v779_v62 }
 0x41d   : > { %789 = vst.msk [vmem:[#allocation3 + $0x28] sm:$0xff] %vm443_vm1, %v787_v0 }
 0x422   : > { %v901_v4 = vpop.xlane.xlu2 %900 }
 0x423   : > { %v903_v35 = vadd.f32 %v901_v4, %v895_v3 }
 0x424   : > { %v988_v32 = vld [vmem:[#allocation3 + $0x28] sm:$0xff] }
 0x425   : > { %905 = vst.msk [vmem:[#allocation3 + $0x38] sm:$0xff] %vm443_vm1, %v903_v35  ;;  %1438 = vrcp.f32 %v988_v32 }
 0x426   : > { %1440 = vrcp.f32 %v952_v24 }
 0x42a   : > { %v680_v7 = vpop.permute.xlu2 %679 }
 0x42b   : > { %v1439_v9 = vpop.eup %1438  ;;  %v687_v10 = vmul.f32 %v680_v7, %v675_v36  ;;  %v821_v13 = vpop.f32.mrf.mxu3 }
 0x42c   : > { %v826_v20 = vadd.f32 %v821_v13, %v803_v6  ;;  %1000 = vperm.xlu2 %1382, %v1439_v9   ;;  %v1441_v30 = vpop.eup %1440  ;;  %v1006_v46 = vld [vmem:[#allocation3 + $0x38] sm:$0xff] }
 0x42d   : > { %v710_v21 = vadd.f32 %v705_v48, %v687_v10 }
 0x42e   : > { %828 = vst.msk [vmem:[#allocation4 + $0x20] sm:$0xff] %vm460_vm0, %v826_v20 }
 0x42f   : > { %712 = vst.msk [vmem:[#allocation4 + $0x10] sm:$0xff] %vm460_vm0, %v710_v21 }
 0x432   : > { %v917_v27 = vpop.permute.xlu1 %916 }
 0x433   : > { %v937_v51 = vpop.f32.mrf.mxu2  ;;  %v920_v29 = vmul.f32 %v917_v27, %v908_v26  ;;  %v823_v40 = vpop.f32.mrf.mxu3 }
 0x434   : > { %v942_v25 = vadd.f32 %v937_v51, %v919_v8  ;;  %560 = vperm.xlu2 %1382, %v1433_v41  }
 0x435   : > { %v991_v62 = vld [vmem:[#allocation4 + $0x20] sm:$0xff] }
 0x436   : > { %944 = vst.msk [vmem:[#allocation4 + $0x30] sm:$0xff] %vm460_vm0, %v942_v25 }
 0x439   : > { %v1014_v28 = vpop.permute.xlu0 %1013 }
 0x43b   : > { %v939_v31 = vpop.f32.mrf.mxu2 }
 0x43c   : > { %v943_v16 = vadd.f32 %v939_v31, %v920_v29  ;;  %964 = vperm.xlu2 %1382, %v1441_v30  }
 0x43d   : > { %v1009_v3 = vld [vmem:[#allocation4 + $0x30] sm:$0xff] }
 0x43e   : > { %945 = vst.msk [vmem:[#allocation4 + $0x38] sm:$0xff] %vm460_vm0, %v943_v16  ;;  %v1021_v32 = vmul.f32 %v1014_v28, %v1009_v3 }
 0x441   : > { %v566_v19 = vpop.permute.xlu0 %565 }
 0x442   : > { %v569_v22 = vmul.f32 %v566_v19, %v557_v18 }
 0x444   : > { %v595_v37 = vadd.f32 %v1741_v49, %v569_v22  ;;  %v973_v49 = vld [vmem:[#allocation4 + $0x10] sm:$0xff] }
 0x445   : > { %v1010_v4 = vld [vmem:[#allocation4 + $0x38] sm:$0xff]  ;;  %v1399_v22 = vld [vmem:[#allocation7] ss:$0 sm:$0xff] }
 0x446   : > { %597 = vst.msk [vmem:[#allocation4 + $0x8] sm:$0xff] %vm460_vm0, %v595_v37 }
 0x44d   : > { %v956_v21 = vld [vmem:[#allocation4 + $0x8] sm:$0xff] }
 0x463   : > { %v782_v38 = vpop.xlane.xlu2 %781 }
 0x464   : > { %v786_v39 = vadd.f32 %v782_v38, %v778_v17 }
 0x466   : > { %788 = vst.msk [vmem:[#allocation3 + $0x20] sm:$0xff] %vm443_vm1, %v786_v39 }
 0x46b   : > { %v801_v58 = vpop.permute.xlu2 %800 }
 0x46c   : > { %v804_v59 = vmul.f32 %v801_v58, %v792_v56  ;;  %v1094_v56 = vld [vmem:[%s426_s15 + $0x8] sm:$0xff] }
 0x46d   : > { %v987_v41 = vld [vmem:[#allocation3 + $0x20] sm:$0xff] }
 0x46e   : > { %v827_v42 = vadd.f32 %v823_v40, %v804_v59  ;;  %1442 = vrcp.f32 %v987_v41 }
 0x46f   : > { %1444 = vrcp.f32 %v1006_v46 }
 0x470   : > { %829 = vst.msk [vmem:[#allocation4 + $0x28] sm:$0xff] %vm460_vm0, %v827_v42  ;;  %1446 = vrcp.f32 %v951_v15 }
 0x473   : > { %v978_v44 = vpop.permute.xlu2 %977 }
 0x474   : > { %v1443_v48 = vpop.eup %1442  ;;  %v985_v12 = vmul.f32 %v978_v44, %v973_v49 }
 0x475   : > { %995 = vperm.xlu1 %1381, %v1443_v48   ;;  %v1445_v50 = vpop.eup %1444 }
 0x476   : > { %v1384_v14 = vpack.i.bf16 %v986_v52, %v985_v12  ;;  %v1447_v47 = vpop.eup %1446 }
 0x477   : > { %v992_v61 = vld [vmem:[#allocation4 + $0x28] sm:$0xff] }
 0x478   : > { %1385 = vrot.lane.b32.xlu0 %v1384_v14, %s1550_s9 }
 0x47d   : > { %1018 = vperm.xlu1 %1381, %v1445_v50  }
 0x485   : > { %959 = vperm.xlu1 %1381, %v1447_v47  }
 0x486   : > { %v1001_v53 = vpop.permute.xlu2 %1000 }
 0x487   : > { %v1004_v0 = vmul.f32 %v1001_v53, %v992_v61 }
 0x48e   : > { %v561_v57 = vpop.permute.xlu2 %560 }
 0x48f   : > { %v568_v34 = vmul.f32 %v561_v57, %v556_v55 }
 0x491   : > { %v594_v60 = vadd.f32 %v1735_v45, %v568_v34  ;;  %v1323_v45 = vld [vmem:[#allocation5] sm:$0xff] }
 0x492   : > { %1086 = vmatpush.bf16.msra.mxu1 %v1323_v45 }
 0x493   : > { %596 = vst.msk [vmem:[#allocation4] sm:$0xff] %vm460_vm0, %v594_v60 }
 0x496   : > { %v965_v6 = vpop.permute.xlu2 %964 }
 0x497   : > { %v968_v23 = vmul.f32 %v965_v6, %v956_v21 }
 0x49a   : > { %v955_v10 = vld [vmem:[#allocation4] sm:$0xff] }
 0x4e7   : > { %v996_v63 = vpop.permute.xlu1 %995 }
 0x4e8   : > { %v1003_v1 = vmul.f32 %v996_v63, %v991_v62 }
 0x4ea   : > { %v1389_v2 = vpack.i.bf16 %v1004_v0, %v1003_v1  ;;  %v1386_v9 = vpop.permute.xlu0 %1385 }
 0x4eb   : > { %v1388_v13 = vunpack.i.h.bf16 %v1386_v9  ;;  %v1387_v8 = vunpack.i.l.bf16 %v1386_v9 }
 0x4ec   : > { %1390 = vrot.lane.b32.xlu1 %v1389_v2, %s1551_s10 }
 0x4ed   : > { %v1048_v26 = vsel %vm460_vm0, %v968_v23, %v1388_v13 }
 0x4ef   : > { %v1019_v35 = vpop.permute.xlu1 %1018 }
 0x4f0   : > { %v1022_v33 = vmul.f32 %v1019_v35, %v1010_v4 }
 0x4f2   : > { %v1394_v36 = vpack.i.bf16 %v1022_v33, %v1021_v32 }
 0x4f4   : > { %1395 = vrot.lane.b32.xlu2 %v1394_v36, %s1552_s11 }
 0x4f7   : > { %v960_v7 = vpop.permute.xlu1 %959 }
 0x4f8   : > { %v967_v20 = vmul.f32 %v960_v7, %v955_v10 }
 0x4fa   : > { %v1047_v27 = vsel %vm460_vm0, %v967_v20, %v1387_v8 }
 0x54e   : > { %v1396_v54 = vpop.permute.xlu2 %1395 }
 0x54f   : > { %v1398_v28 = vunpack.i.h.bf16 %v1396_v54  ;;  %v1397_v29 = vunpack.i.l.bf16 %v1396_v54 }
 0x55e   : > { %v1391_v24 = vpop.permute.xlu1 %1390 }
 0x55f   : > { %v1393_v51 = vunpack.i.h.bf16 %v1391_v24  ;;  %v1392_v25 = vunpack.i.l.bf16 %v1391_v24 }
 0x561   : > { %v1050_v30 = vsel %vm510_vm2, %v1048_v26, %v1393_v51  ;;  %v1049_v31 = vsel %vm510_vm2, %v1047_v27, %v1392_v25 }
 0x562   : > { %v1053_v16 = vsel %vm1051_vm3, %v1050_v30, %v1398_v28  ;;  %v1052_v18 = vsel %vm1051_vm3, %v1049_v31, %v1397_v29 }
 0x563   : > { %v1054_v19 = vpack.c.bf16 %v1053_v16, %v1052_v18 }
 0x565   : > { %1312 = vmatmul.msk.bf16.vlgmr.msra.gmra.mxu1 %vm1075_vm4, %v1054_v19 }
 0x5e2   : > { %v1088_v37 = vpop.f32.mrf.mxu1 }
 0x5e3   : > { %v1089_v17 = vadd.f32 %v1399_v22, %v1088_v37 }
 0x5e5   : > { %v1095_v38 = vadd.f32 %v1093_v11, %v1089_v17 }
 0x5e7   : > { %1097 = vst.msk [vmem:[%s436_s18] sm:$0xff] %vm1075_vm4, %v1095_v38 }
 0x5ea   : > { %v1090_v39 = vpop.f32.mrf.mxu1 }
 0x5eb   : > { %v1091_v58 = vadd.f32 %v1399_v22, %v1090_v39 }
 0x5ed   : > { %v1096_v59 = vadd.f32 %v1094_v56, %v1091_v58 }
 0x5ef   : > { %1098 = vst.msk [vmem:[%s436_s18 + $0x8] sm:$0xff] %vm1075_vm4, %v1096_v59 }
 0x5f0 PF: > { %s18_s23 = sadd.s32 1, %s1538_s23   ;;  %s1882_s21 = smov %s1534_s22 }
 0x5f1   : > { %p15_p8 = scmp.ge.s32.totalorder %s18_s23, 4   ;;  %s1883_s22 = smov %s1885_s25 }
 0x5f3   :  { %17 = sbr.rel (!%p15_p8) target bundleno = 3 (0x3), region = 109 }
 0x5f8   :  { %1129 = vsyncpa [#allocation6], 1 }
 0x5f9   :  { %1131 = vsyncpa [#allocation6 + $0x1], 1 }
 0x5fa   :  { %1132 = vsyncpa [#allocation8], 1 }

// kernel: basic_transformer_block.11
= control target key start
LH: loop header
LB: loop body
LE: loop exit
PB: predicated region body
PF: predicated region fallthrough
CT: control target
= control target key end

     0   :  { %vm44_vm0 = vcmask 261120   ;;  %s1014_s0 = inlined_call_operand.vmem [shape: f32[32,32], index: 0, kind: input, shape index: {}]   ;;  %s1015_s1 = inlined_call_operand.vmem [shape: f32[1,32], index: 1, kind: input, shape index: {}]   ;;  %s1016_s2 = inlined_call_operand.vmem [shape: f32[1,32], index: 2, kind: input, shape index: {}]   ;;  %s1017_s3 = inlined_call_operand.vmem [shape: bf16[32,128], index: 3, kind: input, shape index: {}]   ;;  %s1018_s4 = inlined_call_operand.vmem [shape: f32[1,128], index: 4, kind: input, shape index: {}]   ;;  %s1019_s5 = inlined_call_operand.vmem [shape: bf16[32,128], index: 5, kind: input, shape index: {}]   ;;  %s1020_s6 = inlined_call_operand.vmem [shape: f32[1,128], index: 6, kind: input, shape index: {}]   ;;  %s1021_s7 = inlined_call_operand.vmem [shape: bf16[128,32], index: 7, kind: input, shape index: {}]   ;;  %s1022_s8 = inlined_call_operand.vmem [shape: f32[1,32], index: 8, kind: input, shape index: {}]   ;;  %s1023_s9 = inlined_call_operand.hbm [shape: f32[32,32], index: 9, kind: output, shape index: {}]  }
   0x1   :  { %v786_v0 = vld [vmem:[%s1014_s0 + $0x10] sm:$0xff]  ;;  %v791_v1 = vld [vmem:[%s1014_s0] sm:$0xff] }
   0x2   :  { %v51_v2 = vsel %vm44_vm0, %v786_v0, 0.0  ;;  %v45_v3 = vsel %vm44_vm0, %v791_v1, 0.0 }
   0x3   :  { %52 = vadd.xlane.f32.xlu1 %v51_v2  ;;  %46 = vadd.xlane.f32.xlu0 %v45_v3 }
   0x4   :  { %14 = vsyncpa [#allocation5], 0  ;;  %v800_v4 = vld [vmem:[%s1014_s0 + $0x18] sm:$0xff]  ;;  %v805_v5 = vld [vmem:[%s1014_s0 + $0x8] sm:$0xff]  ;;  %v728_v8 = vmov 32.0   ;;  %vm158_vm12 = vcmask 257024  }
   0x5   :  { %v54_v6 = vsel %vm44_vm0, %v800_v4, 0.0  ;;  %v48_v7 = vsel %vm44_vm0, %v805_v5, 0.0  ;;  %684 = vrcp.f32 %v728_v8  ;;  %v655_v43 = vld [vmem:[%s1017_s3 + $0x8] sm:$0xff]  ;;  %v654_v47 = vld [vmem:[%s1017_s3] sm:$0xff]  ;;  %s576_s3 = sshll.u32 %s1023_s9, 4  ;;  %s732_s24 = smov 8   ;;  %s577_s3 = int_to_ptr.hbm [resolvable:$true] %s576_s3 }
   0x6   :  { %v657_v44 = vld [vmem:[%s1019_s5 + $0x8] sm:$0xff]  ;;  %214 = vmatpush.bf16.msra.mxu0 %v655_v43  ;;  %v656_v48 = vld [vmem:[%s1019_s5] sm:$0xff]  ;;  %s731_s5 = smov 128  }
   0x7   :  { %253 = vmatpush.bf16.msra.mxu1 %v657_v44  ;;  %v679_v3 = vld [vmem:[%s1015_s1] ss:$0 sm:$0xff] }
   0xa   :  { %215 = vmatpush.bf16.msra.mxu0 %v654_v47 }
   0xb   :  { %55 = vadd.xlane.f32.xlu1 %v54_v6  ;;  %49 = vadd.xlane.f32.xlu0 %v48_v7  ;;  %v685_v9 = vpop.eup %684 }
   0xc   :  { %v58_v10 = vmul.f32 32.0, %v685_v9  ;;  %vm62_vm1 = vweird.f32 %v685_v9  ;;  %254 = vmatpush.bf16.msra.mxu1 %v656_v48 }
   0xe   :  { %v59_v11 = vsub.f32 1.0, %v58_v10  ;;  %v680_v10 = vld [vmem:[%s1016_s2] ss:$0 sm:$0xff] }
  0x10   :  { %v60_v12 = vmul.f32 %v685_v9, %v59_v11 }
  0x12   :  { %v61_v13 = vadd.f32 %v685_v9, %v60_v12 }
  0x14   :  { %v63_v14 = vsel %vm62_vm1, %v685_v9, %v61_v13 }
  0x76   :  { %v53_v15 = vpop.xlane.xlu1 %52  ;;  %v47_v16 = vpop.xlane.xlu0 %46 }
  0x77   :  { %v66_v17 = vmul.f32 %v63_v14, %v53_v15  ;;  %v64_v18 = vmul.f32 %v63_v14, %v47_v16 }
  0x79   :  { %v812_v19 = vsub.f32 %v786_v0, %v66_v17  ;;  %v815_v20 = vsub.f32 %v791_v1, %v64_v18 }
  0x7b   :  { %v74_v21 = vmul.f32 %v812_v19, %v812_v19  ;;  %v72_v22 = vmul.f32 %v815_v20, %v815_v20 }
  0x7d   :  { %v82_v23 = vsel %vm44_vm0, %v74_v21, 0.0  ;;  %v76_v24 = vsel %vm44_vm0, %v72_v22, 0.0 }
  0x7e   :  { %v56_v25 = vpop.xlane.xlu1 %55  ;;  %83 = vadd.xlane.f32.xlu0 %v82_v23  ;;  %77 = vadd.xlane.f32.xlu2 %v76_v24  ;;  %v50_v26 = vpop.xlane.xlu0 %49 }
  0x7f   :  { %v67_v27 = vmul.f32 %v63_v14, %v56_v25  ;;  %v65_v28 = vmul.f32 %v63_v14, %v50_v26 }
  0x81   :  { %v824_v29 = vsub.f32 %v800_v4, %v67_v27  ;;  %v827_v30 = vsub.f32 %v805_v5, %v65_v28 }
  0x83   :  { %v75_v31 = vmul.f32 %v824_v29, %v824_v29  ;;  %v73_v32 = vmul.f32 %v827_v30, %v827_v30 }
  0x85   :  { %v85_v33 = vsel %vm44_vm0, %v75_v31, 0.0  ;;  %v79_v34 = vsel %vm44_vm0, %v73_v32, 0.0 }
  0x86   :  { %86 = vadd.xlane.f32.xlu1 %v85_v33  ;;  %80 = vadd.xlane.f32.xlu2 %v79_v34 }
  0xf1   :  { %v78_v35 = vpop.xlane.xlu2 %77  ;;  %v84_v36 = vpop.xlane.xlu0 %83 }
  0xf2   :  { %v88_v37 = vmul.f32 %v78_v35, %v63_v14  ;;  %v90_v38 = vmul.f32 %v84_v36, %v63_v14 }
  0xf4   :  { %v92_v39 = vadd.f32 1e-05, %v88_v37  ;;  %v94_v40 = vadd.f32 1e-05, %v90_v38 }
  0xf6   :  { %686 = vrsqrt.f32 %v92_v39  ;;  %vm122_vm2 = vweird.f32 %v94_v40  ;;  %vm102_vm5 = vweird.f32 %v92_v39 }
  0xf7   :  { %688 = vrsqrt.f32 %v94_v40 }
  0xf9   :  { %v87_v41 = vpop.xlane.xlu1 %86  ;;  %v81_v42 = vpop.xlane.xlu2 %80 }
  0xfa   :  { %v91_v45 = vmul.f32 %v87_v41, %v63_v14  ;;  %v89_v46 = vmul.f32 %v81_v42, %v63_v14 }
  0xfc   :  { %v687_v49 = vpop.eup %686  ;;  %v95_v50 = vadd.f32 1e-05, %v91_v45  ;;  %v93_v51 = vadd.f32 1e-05, %v89_v46  ;;  %v665_v45 = vld [vmem:[%s1021_s7 + $0x38] sm:$0xff] }
  0xfd   :  { %v689_v52 = vpop.eup %688  ;;  %v97_v53 = vmul.f32 %v687_v49, %v92_v39  ;;  %vm103_vm4 = vweird.f32 %v687_v49  ;;  %516 = vmatpush.bf16.msra.mxu2 %v665_v45  ;;  %666 = vmatpush.bf16.msra.mxu3 %v665_v45 }
  0xfe   :  { %v117_v54 = vmul.f32 %v689_v52, %v94_v40  ;;  %690 = vrsqrt.f32 %v95_v50  ;;  %vm123_vm3 = vweird.f32 %v689_v52  ;;  %vm104_vm7 = vmor %vm102_vm5, %vm103_vm4  ;;  %vm132_vm8 = vweird.f32 %v95_v50 }
  0xff   :  { %v98_v55 = vmul.f32 %v687_v49, %v97_v53  ;;  %692 = vrsqrt.f32 %v93_v51  ;;  %vm124_vm6 = vmor %vm122_vm2, %vm123_vm3  ;;  %vm112_vm13 = vweird.f32 %v93_v51 }
 0x100   :  { %v118_v56 = vmul.f32 %v689_v52, %v117_v54 }
 0x101   :  { %v99_v57 = vmul.f32 0.5, %v98_v55 }
 0x102   :  { %v119_v58 = vmul.f32 0.5, %v118_v56 }
 0x103   :  { %v100_v59 = vsub.f32 1.5, %v99_v57 }
 0x104   :  { %v691_v60 = vpop.eup %690  ;;  %v120_v61 = vsub.f32 1.5, %v119_v58  ;;  %v663_v58 = vld [vmem:[%s1021_s7 + $0x28] sm:$0xff] }
 0x105   :  { %v693_v62 = vpop.eup %692  ;;  %v101_v63 = vmul.f32 %v687_v49, %v100_v59  ;;  %v127_v2 = vmul.f32 %v691_v60, %v95_v50  ;;  %vm133_vm9 = vweird.f32 %v691_v60 }
 0x106   :  { %v121_v6 = vmul.f32 %v689_v52, %v120_v61  ;;  %v107_v7 = vmul.f32 %v693_v62, %v93_v51  ;;  %vm134_vm10 = vmor %vm132_vm8, %vm133_vm9  ;;  %vm113_vm11 = vweird.f32 %v693_v62 }
 0x107   :  { %v105_v8 = vsel %vm104_vm7, %v687_v49, %v101_v63  ;;  %v128_v9 = vmul.f32 %v691_v60, %v127_v2  ;;  %vm114_vm14 = vmor %vm112_vm13, %vm113_vm11 }
 0x108   :  { %v136_v11 = vmul.f32 %v105_v8, %v815_v20  ;;  %v125_v12 = vsel %vm124_vm6, %v689_v52, %v121_v6  ;;  %v108_v13 = vmul.f32 %v693_v62, %v107_v7  ;;  %v664_v52 = vld [vmem:[%s1021_s7 + $0x30] sm:$0xff]  ;;  %v662_v7 = vld [vmem:[%s1021_s7 + $0x20] sm:$0xff] }
 0x109   :  { %v138_v14 = vmul.f32 %v125_v12, %v812_v19  ;;  %v129_v15 = vmul.f32 0.5, %v128_v9  ;;  %517 = vmatpush.bf16.msra.mxu2 %v664_v52  ;;  %667 = vmatpush.bf16.msra.mxu3 %v664_v52 }
 0x10a   :  { %v143_v16 = vmul.f32 %v679_v3, %v136_v11  ;;  %v109_v17 = vmul.f32 0.5, %v108_v13 }
 0x10b   :  { %v145_v18 = vmul.f32 %v679_v3, %v138_v14  ;;  %v130_v21 = vsub.f32 1.5, %v129_v15 }
 0x10c   :  { %v150_v22 = vadd.f32 %v680_v10, %v143_v16  ;;  %v110_v23 = vsub.f32 1.5, %v109_v17  ;;  %v661_v17 = vld [vmem:[%s1021_s7 + $0x18] sm:$0xff] }
 0x10d   :  { %v152_v24 = vadd.f32 %v680_v10, %v145_v18  ;;  %v131_v25 = vmul.f32 %v691_v60, %v130_v21  ;;  %518 = vmatpush.bf16.msra.mxu2 %v663_v58  ;;  %668 = vmatpush.bf16.msra.mxu3 %v663_v58 }
 0x10e   :  { %v154_v26 = vpack.c.bf16 %v150_v22, %v150_v22  ;;  %v111_v20 = vmul.f32 %v693_v62, %v110_v23 }
 0x10f   :  { %v156_v27 = vpack.c.bf16 %v152_v24, %v152_v24  ;;  %v135_v28 = vsel %vm134_vm10, %v691_v60, %v131_v25 }
 0x110   :  { %159 = vst.msk [vmem:[#allocation2] sm:$0xf] %vm158_vm12, %v154_v26  ;;  %v139_v19 = vmul.f32 %v135_v28, %v824_v29  ;;  %v115_v31 = vsel %vm114_vm14, %v693_v62, %v111_v20 }
 0x111   :  { %161 = vst.msk [vmem:[#allocation2 + $0x8] sm:$0xf] %vm158_vm12, %v156_v27  ;;  %v137_v32 = vmul.f32 %v115_v31, %v827_v30  ;;  %v682_v30 = vld [vmem:[%s1020_s6] ss:$0 sm:$0xff]  ;;  %519 = vmatpush.bf16.msra.mxu2 %v662_v7  ;;  %669 = vmatpush.bf16.msra.mxu3 %v662_v7 }
 0x112   :  { %v146_v33 = vmul.f32 %v679_v3, %v139_v19 }
 0x113   :  { %v144_v34 = vmul.f32 %v679_v3, %v137_v32 }
 0x114   :  { %v153_v35 = vadd.f32 %v680_v10, %v146_v33 }
 0x115   :  { %v151_v36 = vadd.f32 %v680_v10, %v144_v34  ;;  %520 = vmatpush.bf16.msra.mxu2 %v661_v17  ;;  %670 = vmatpush.bf16.msra.mxu3 %v661_v17 }
 0x116   :  { %v157_v37 = vpack.c.bf16 %v153_v35, %v153_v35 }
 0x117   :  { %v155_v38 = vpack.c.bf16 %v151_v36, %v151_v36  ;;  %v660_v36 = vld [vmem:[%s1021_s7 + $0x10] sm:$0xff] }
 0x118   :  { %162 = vst.msk [vmem:[#allocation2 + $0xc] sm:$0xf] %vm158_vm12, %v157_v37 }
 0x119   :  { %160 = vst.msk [vmem:[#allocation2 + $0x4] sm:$0xf] %vm158_vm12, %v155_v38  ;;  %521 = vmatpush.bf16.msra.mxu2 %v660_v36  ;;  %671 = vmatpush.bf16.msra.mxu3 %v660_v36 }
 0x11f   :  { %v653_v29 = vld [vmem:[#allocation2 + $0x8] sm:$0xff] }
 0x120   :  { %v652_v39 = vld [vmem:[#allocation2] sm:$0xff] }
 0x121   :  { %604 = vmatmul.msk.bf16.vlgmr.msra.gmra.mxu0 %vm44_vm0, %v652_v39  ;;  %614 = vmatmul.msk.bf16.vlgmr.msra.gmra.mxu1 %vm44_vm0, %v652_v39 }
 0x131   :  { %605 = vmatmul.msk.bf16.gmra.mxu0 %vm44_vm0, %v653_v29  ;;  %615 = vmatmul.msk.bf16.gmra.mxu1 %vm44_vm0, %v653_v29 }
 0x19e   :  { %v256_v40 = vpop.f32.mrf.mxu1 }
 0x19f   :  { %v868_v41 = vadd.f32 %v682_v30, %v256_v40 }
 0x1a1   :  { %v871_v42 = vmul.f32 0.70710677, %v868_v41 }
 0x1a3   :  { %v274_v43 = vmul.f32 %v871_v42, %v871_v42 }
 0x1a5   :  { %v875_v44 = vmin.f32 %v274_v43, 16.0 }
 0x1a6   :  { %v258_v46 = vpop.f32.mrf.mxu1 }
 0x1a7   :  { %v276_v47 = vmul.f32 2.1237322e-06, %v875_v44  ;;  %v287_v48 = vmul.f32 3.8918573e-05, %v875_v44  ;;  %v882_v49 = vadd.f32 %v682_v30, %v258_v46 }
 0x1a9   :  { %v277_v50 = vadd.f32 0.00028619796, %v276_v47  ;;  %v288_v51 = vadd.f32 0.001143296, %v287_v48  ;;  %v888_v53 = vmul.f32 0.70710677, %v882_v49 }
 0x1ab   :  { %v278_v54 = vmul.f32 %v277_v50, %v875_v44  ;;  %v289_v55 = vmul.f32 %v288_v51, %v875_v44  ;;  %v314_v56 = vmul.f32 %v888_v53, %v888_v53 }
 0x1ad   :  { %v290_v57 = vadd.f32 0.014752088, %v289_v55  ;;  %v897_v59 = vmin.f32 %v314_v56, 16.0  ;;  %v279_v61 = vadd.f32 0.0036580483, %v278_v54 }
 0x1ae   :  { %v261_v60 = vpop.f32.mrf.mxu1 }
 0x1af   :  { %v291_v62 = vmul.f32 %v290_v57, %v875_v44  ;;  %v900_v63 = vadd.f32 %v682_v30, %v261_v60  ;;  %v316_v2 = vmul.f32 2.1237322e-06, %v897_v59  ;;  %v327_v3 = vmul.f32 3.8918573e-05, %v897_v59  ;;  %v658_v60 = vld [vmem:[%s1021_s7] sm:$0xff] }
 0x1b0   :  { %v280_v11 = vmul.f32 %v279_v61, %v875_v44 }
 0x1b1   :  { %v292_v6 = vadd.f32 0.112945676, %v291_v62  ;;  %v317_v8 = vadd.f32 0.00028619796, %v316_v2  ;;  %v328_v9 = vadd.f32 0.001143296, %v327_v3 }
 0x1b2   :  { %v908_v10 = vmul.f32 0.70710677, %v900_v63  ;;  %v281_v24 = vadd.f32 0.05243302, %v280_v11 }
 0x1b3   :  { %v293_v12 = vmul.f32 %v292_v6, %v875_v44  ;;  %v318_v13 = vmul.f32 %v317_v8, %v897_v59  ;;  %v329_v14 = vmul.f32 %v328_v9, %v897_v59 }
 0x1b4   :  { %v354_v15 = vmul.f32 %v908_v10, %v908_v10  ;;  %v282_v35 = vmul.f32 %v281_v24, %v875_v44 }
 0x1b5   :  { %v294_v16 = vadd.f32 0.4994258, %v293_v12  ;;  %v319_v18 = vadd.f32 0.0036580483, %v318_v13  ;;  %v330_v21 = vadd.f32 0.014752088, %v329_v14 }
 0x1b6   :  { %v919_v22 = vmin.f32 %v354_v15, 16.0  ;;  %v263_v23 = vpop.f32.mrf.mxu1  ;;  %v283_v45 = vadd.f32 0.18741608, %v282_v35 }
 0x1b7   :  { %v295_v25 = vmul.f32 %v294_v16, %v875_v44  ;;  %v922_v26 = vadd.f32 %v682_v30, %v263_v23  ;;  %v331_v20 = vmul.f32 %v330_v21, %v897_v59  ;;  %v320_v19 = vmul.f32 %v319_v18, %v897_v59  ;;  %v659_v30 = vld [vmem:[%s1021_s7 + $0x8] sm:$0xff] }
 0x1b8   :  { %v356_v27 = vmul.f32 2.1237322e-06, %v919_v22  ;;  %v367_v31 = vmul.f32 3.8918573e-05, %v919_v22  ;;  %522 = vmatpush.bf16.msra.mxu2 %v659_v30  ;;  %672 = vmatpush.bf16.msra.mxu3 %v659_v30  ;;  %v284_v61 = vmul.f32 %v283_v45, %v875_v44 }
 0x1b9   :  { %v296_v28 = vadd.f32 1.0, %v295_v25  ;;  %v929_v32 = vmul.f32 0.70710677, %v922_v26  ;;  %v332_v33 = vadd.f32 0.112945676, %v331_v20 }
 0x1ba   :  { %v357_v34 = vadd.f32 0.00028619796, %v356_v27  ;;  %v321_v38 = vadd.f32 0.05243302, %v320_v19  ;;  %v368_v39 = vadd.f32 0.001143296, %v367_v31 }
 0x1bb   :  { %694 = vrcp.f32 %v296_v28  ;;  %v333_v37 = vmul.f32 %v332_v33, %v897_v59  ;;  %v394_v29 = vmul.f32 %v929_v32, %v929_v32  ;;  %v306_v7 = vand.u32 2147483647, %v296_v28 }
 0x1bc   :  { %v358_v43 = vmul.f32 %v357_v34, %v919_v22  ;;  %v369_v46 = vmul.f32 %v368_v39, %v919_v22  ;;  %v322_v51 = vmul.f32 %v321_v38, %v897_v59  ;;  %v308_v8 = vand.u32 2147483648, %v296_v28  ;;  %523 = vmatpush.bf16.msra.mxu2 %v658_v60  ;;  %673 = vmatpush.bf16.msra.mxu3 %v658_v60 }
 0x1bd   :  { %v334_v40 = vadd.f32 0.4994258, %v333_v37  ;;  %v943_v47 = vmin.f32 %v394_v29, 16.0  ;;  %v285_v44 = vadd.f32 1.1283791, %v284_v61  ;;  %vm302_vm1 = vweird.f32 %v296_v28  ;;  %v217_v37 = vpop.f32.mrf.mxu0 }
 0x1be   :  { %v370_v52 = vadd.f32 0.014752088, %v369_v46  ;;  %v359_v58 = vadd.f32 0.0036580483, %v358_v43  ;;  %v323_v9 = vadd.f32 0.18741608, %v322_v51 }
 0x1bf   :  { %v335_v48 = vmul.f32 %v334_v40, %v897_v59  ;;  %v396_v54 = vmul.f32 2.1237322e-06, %v943_v47  ;;  %v407_v55 = vmul.f32 3.8918573e-05, %v943_v47  ;;  %v309_v21 = vor.u32 1.1754944e-38, %v308_v8 }
 0x1c0   :  { %v371_v62 = vmul.f32 %v370_v52, %v919_v22  ;;  %v360_v13 = vmul.f32 %v359_v58, %v919_v22  ;;  %v324_v23 = vmul.f32 %v323_v9, %v897_v59  ;;  %vm307_vm3 = vcmp.eq.f32.partialorder %v306_v7, 8.507059e+37  ;;  %v977_v61 = vld [vmem:[%s1018_s4] ss:$0 sm:$0xff] }
 0x1c1   :  { %v695_v50 = vpop.eup %694  ;;  %v949_v57 = vadd.f32 1.0, %v335_v48  ;;  %v397_v2 = vadd.f32 0.00028619796, %v396_v54  ;;  %v408_v3 = vadd.f32 0.001143296, %v407_v55  ;;  %v286_v31 = vmul.f32 %v285_v44, %v871_v42 }
 0x1c2   :  { %v298_v56 = vmul.f32 %v695_v50, %v296_v28  ;;  %v372_v11 = vadd.f32 0.112945676, %v371_v62  ;;  %vm303_vm15 = vweird.f32 %v695_v50  ;;  %v361_v27 = vadd.f32 0.05243302, %v360_v13 }
 0x1c3   :  { %696 = vrcp.f32 %v949_v57  ;;  %v409_v14 = vmul.f32 %v408_v3, %v943_v47  ;;  %v398_v16 = vmul.f32 %v397_v2, %v943_v47  ;;  %vm304_vm2 = vmor %vm302_vm1, %vm303_vm15  ;;  %v325_v39 = vadd.f32 1.1283791, %v324_v23 }
 0x1c4   :  { %v299_v6 = vsub.f32 1.0, %v298_v56  ;;  %v373_v15 = vmul.f32 %v372_v11, %v919_v22  ;;  %v348_v29 = vand.u32 2147483648, %v949_v57  ;;  %v362_v30 = vmul.f32 %v361_v27, %v919_v22 }
 0x1c5   :  { %v410_v18 = vadd.f32 0.014752088, %v409_v14  ;;  %v399_v35 = vadd.f32 0.0036580483, %v398_v16  ;;  %v346_v42 = vand.u32 2147483647, %v949_v57  ;;  %vm342_vm5 = vweird.f32 %v949_v57  ;;  %v219_v9 = vpop.f32.mrf.mxu0 }
 0x1c6   :  { %v300_v12 = vmul.f32 %v695_v50, %v299_v6  ;;  %v374_v24 = vadd.f32 0.4994258, %v373_v15  ;;  %v326_v52 = vmul.f32 %v325_v39, %v888_v53  ;;  %v349_v54 = vor.u32 1.1754944e-38, %v348_v29 }
 0x1c7   :  { %v411_v19 = vmul.f32 %v410_v18, %v943_v47  ;;  %v400_v46 = vmul.f32 %v399_v35, %v943_v47  ;;  %v363_v55 = vadd.f32 0.18741608, %v362_v30  ;;  %vm347_vm7 = vcmp.eq.f32.partialorder %v346_v42, 8.507059e+37 }
 0x1c8   :  { %v301_v17 = vadd.f32 %v695_v50, %v300_v12  ;;  %v375_v28 = vmul.f32 %v374_v24, %v919_v22  ;;  %v729_v7 = vmov 0.0   ;;  %v266_v8 = vmul.f32 0.5, %v868_v41 }
 0x1c9   :  { %v697_v25 = vpop.eup %696  ;;  %v412_v36 = vadd.f32 0.112945676, %v411_v19  ;;  %v401_v58 = vadd.f32 0.05243302, %v400_v46  ;;  %v364_v53 = vmul.f32 %v363_v55, %v919_v22  ;;  %163 = vst.msk [vmem:[#allocation3] sm:$0xff] %vm44_vm0, %v729_v7  ;;  %v218_v14 = vadd.f32 %v977_v61, %v217_v37 }
 0x1ca   :  { %v305_v20 = vsel %vm304_vm2, %v695_v50, %v301_v17  ;;  %v338_v34 = vmul.f32 %v697_v25, %v949_v57  ;;  %v376_v40 = vadd.f32 1.0, %v375_v28  ;;  %vm343_vm4 = vweird.f32 %v697_v25  ;;  %164 = vst.msk [vmem:[#allocation3 + $0x8] sm:$0xff] %vm44_vm0, %v729_v7 }
 0x1cb   :  { %v310_v33 = vsel %vm307_vm3, %v309_v21, %v305_v20  ;;  %v413_v43 = vmul.f32 %v412_v36, %v943_v47  ;;  %vm344_vm6 = vmor %vm342_vm5, %vm343_vm4  ;;  %v402_v13 = vmul.f32 %v401_v58, %v943_v47  ;;  %165 = vst.msk [vmem:[#allocation3 + $0x10] sm:$0xff] %vm44_vm0, %v729_v7  ;;  %v267_v22 = vmul.f32 0.5, %v882_v49 }
 0x1cc   :  { %v311_v38 = vmul.f32 %v310_v33, %v286_v31  ;;  %v339_v59 = vsub.f32 1.0, %v338_v34  ;;  %698 = vrcp.f32 %v376_v40  ;;  %166 = vst.msk [vmem:[#allocation3 + $0x18] sm:$0xff] %vm44_vm0, %v729_v7  ;;  %v220_v41 = vadd.f32 %v977_v61, %v219_v9 }
 0x1cd   :  { %v414_v51 = vadd.f32 0.4994258, %v413_v43  ;;  %v365_v17 = vadd.f32 1.1283791, %v364_v53  ;;  %v386_v18 = vand.u32 2147483647, %v376_v40  ;;  %vm382_vm9 = vweird.f32 %v376_v40 }
 0x1ce   :  { %v340_v45 = vmul.f32 %v697_v25, %v339_v59  ;;  %v616_v48 = vclamps-f32 %v311_v38, 1.0  ;;  %v388_v21 = vand.u32 2147483648, %v376_v40  ;;  %v222_v59 = vpop.f32.mrf.mxu0  ;;  %v269_v58 = vmul.f32 0.5, %v922_v26  ;;  %v683_v26 = vld [vmem:[%s1022_s8] ss:$0 sm:$0xff]  ;;  %s730_s8 = smov [#allocation4]  }
 0x1cf   :  { %v415_v60 = vmul.f32 %v414_v51, %v943_v47  ;;  %v366_v49 = vmul.f32 %v365_v17, %v908_v10  ;;  %vm387_vm11 = vcmp.eq.f32.partialorder %v386_v18, 8.507059e+37  ;;  %s574_s21 = sshll.u32 %s730_s8, 4  ;;  %s575_s21 = int_to_ptr.vmem [resolvable:$true] %s574_s21 }
 0x1d0   :  { %v341_v50 = vadd.f32 %v697_v25, %v340_v45  ;;  %v434_v2 = vadd.f32 1.0, %v616_v48  ;;  %v389_v33 = vor.u32 1.1754944e-38, %v388_v21  ;;  %v448_v53 = vld [vmem:[#allocation3] sm:$0xff] }
 0x1d1   :  { %v416_v57 = vadd.f32 1.0, %v415_v60 }
 0x1d2   :  { %v345_v56 = vsel %vm344_vm6, %v697_v25, %v341_v50  ;;  %v699_v6 = vpop.eup %698  ;;  %v438_v44 = vmul.f32 %v434_v2, %v266_v8  ;;  %v403_v25 = vadd.f32 0.18741608, %v402_v13 }
 0x1d3   :  { %v350_v62 = vsel %vm347_vm7, %v349_v54, %v345_v56  ;;  %v378_v12 = vmul.f32 %v699_v6, %v376_v40  ;;  %700 = vrcp.f32 %v416_v57  ;;  %vm383_vm8 = vweird.f32 %v699_v6  ;;  %v451_v17 = vld [vmem:[#allocation3 + $0x18] sm:$0xff] }
 0x1d4   :  { %v351_v3 = vmul.f32 %v350_v62, %v326_v52  ;;  %v442_v27 = vmul.f32 %v438_v44, %v218_v14  ;;  %vm384_vm10 = vmor %vm382_vm9, %vm383_vm8  ;;  %v404_v35 = vmul.f32 %v403_v25, %v943_v47  ;;  %v428_v29 = vand.u32 2147483648, %v416_v57  ;;  %v450_v14 = vld [vmem:[#allocation3 + $0x10] sm:$0xff] }
 0x1d5   :  { %v379_v16 = vsub.f32 1.0, %v378_v12  ;;  %v426_v43 = vand.u32 2147483647, %v416_v57  ;;  %vm422_vm13 = vweird.f32 %v416_v57  ;;  %v268_v52 = vmul.f32 0.5, %v900_v63  ;;  %v449_v63 = vld [vmem:[#allocation3 + $0x8] sm:$0xff] }
 0x1d6   :  { %v617_v11 = vclamps-f32 %v351_v3, 1.0  ;;  %v405_v30 = vadd.f32 1.1283791, %v404_v35  ;;  %v429_v42 = vor.u32 1.1754944e-38, %v428_v29  ;;  %v224_v55 = vpop.f32.mrf.mxu0  ;;  %v223_v62 = vadd.f32 %v977_v61, %v222_v59 }
 0x1d7   :  { %v380_v24 = vmul.f32 %v699_v6, %v379_v16  ;;  %vm427_vm15 = vcmp.eq.f32.partialorder %v426_v43, 8.507059e+37  ;;  %v225_v2 = vadd.f32 %v977_v61, %v224_v55 }
 0x1d8   :  { %v435_v15 = vadd.f32 1.0, %v617_v11  ;;  %v406_v46 = vmul.f32 %v405_v30, %v929_v32 }
 0x1d9   :  { %v381_v20 = vadd.f32 %v699_v6, %v380_v24  ;;  %v701_v31 = vpop.eup %700 }
 0x1da   :  { %v439_v23 = vmul.f32 %v435_v15, %v267_v22  ;;  %v418_v28 = vmul.f32 %v701_v31, %v416_v57  ;;  %vm423_vm12 = vweird.f32 %v701_v31 }
 0x1db   :  { %v385_v34 = vsel %vm384_vm10, %v699_v6, %v381_v20  ;;  %vm424_vm14 = vmor %vm422_vm13, %vm423_vm12 }
 0x1dc   :  { %v443_v19 = vmul.f32 %v439_v23, %v220_v41  ;;  %v390_v37 = vsel %vm387_vm11, %v389_v33, %v385_v34  ;;  %v419_v39 = vsub.f32 1.0, %v418_v28 }
 0x1dd   :  { %v391_v38 = vmul.f32 %v390_v37, %v366_v49 }
 0x1de   :  { %v446_v36 = vpack.c.bf16 %v443_v19, %v442_v27  ;;  %v420_v40 = vmul.f32 %v701_v31, %v419_v39 }
 0x1df   :  { %v618_v45 = vclamps-f32 %v391_v38, 1.0 }
 0x1e0   :  { %524 = vmatmul.bf16.vlgmr.msra.gmra.mxu2 %v446_v36  ;;  %v421_v10 = vadd.f32 %v701_v31, %v420_v40 }
 0x1e1   :  { %v436_v50 = vadd.f32 1.0, %v618_v45 }
 0x1e2   :  { %v425_v47 = vsel %vm424_vm14, %v701_v31, %v421_v10 }
 0x1e3   :  { %v430_v48 = vsel %vm427_vm15, %v429_v42, %v425_v47  ;;  %v440_v56 = vmul.f32 %v436_v50, %v268_v52 }
 0x1e4   :  { %v431_v51 = vmul.f32 %v430_v48, %v406_v46 }
 0x1e5   :  { %v444_v57 = vmul.f32 %v440_v56, %v223_v62 }
 0x1e6   :  { %v619_v54 = vclamps-f32 %v431_v51, 1.0 }
 0x1e8   :  { %v437_v60 = vadd.f32 1.0, %v619_v54 }
 0x1ea   :  { %v441_v3 = vmul.f32 %v437_v60, %v269_v58 }
 0x1ec   :  { %v445_v32 = vmul.f32 %v441_v3, %v225_v2 }
 0x1ee   :  { %v447_v6 = vpack.c.bf16 %v445_v32, %v444_v57 }
 0x1f0   :  { %529 = vmatmul.bf16.vlgmr.msra.gmra.mxu3 %v447_v6 }
 0x263   :  { %v525_v7 = vpop.f32.mrf.mxu2 }
 0x264   :  { %v535_v8 = vadd.f32 %v525_v7, %v448_v53 }
 0x266   :  { %539 = vst.msk [vmem:[#allocation3] sm:$0xff] %vm44_vm0, %v535_v8 }
 0x26b   :  { %v527_v9 = vpop.f32.mrf.mxu2 }
 0x26c   :  { %v536_v11 = vadd.f32 %v527_v9, %v449_v63 }
 0x26d   :  { %v546_v12 = vld [vmem:[#allocation3] sm:$0xff] }
 0x26e   :  { %540 = vst.msk [vmem:[#allocation3 + $0x8] sm:$0xff] %vm44_vm0, %v536_v11  ;;  %v554_v61 = vadd.f32 %v683_v26, %v546_v12 }
 0x270   :  { %v562_v13 = vadd.f32 %v554_v61, %v791_v1 }
 0x272   :  { %566 = vst.msk [vmem:[#allocation4] sm:$0xff] %vm44_vm0, %v562_v13 }
 0x273   :  { %v530_v15 = vpop.f32.mrf.mxu3 }
 0x274   :  { %v537_v16 = vadd.f32 %v530_v15, %v450_v14 }
 0x275   :  { %v547_v44 = vld [vmem:[#allocation3 + $0x8] sm:$0xff] }
 0x276   :  { %v555_v22 = vadd.f32 %v683_v26, %v547_v44  ;;  %541 = vst.msk [vmem:[#allocation3 + $0x10] sm:$0xff] %vm44_vm0, %v537_v16 }
 0x278   :  { %v563_v41 = vadd.f32 %v555_v22, %v805_v5 }
 0x27a   :  { %567 = vst.msk [vmem:[#allocation4 + $0x8] sm:$0xff] %vm44_vm0, %v563_v41 }
 0x27b   :  { %v532_v18 = vpop.f32.mrf.mxu3 }
 0x27c   :  { %v538_v21 = vadd.f32 %v532_v18, %v451_v17 }
 0x27d   :  { %v548_v23 = vld [vmem:[#allocation3 + $0x10] sm:$0xff] }
 0x27e   :  { %542 = vst.msk [vmem:[#allocation3 + $0x18] sm:$0xff] %vm44_vm0, %v538_v21  ;;  %v556_v1 = vadd.f32 %v683_v26, %v548_v23 }
 0x280   :  { %v564_v24 = vadd.f32 %v556_v1, %v786_v0 }
 0x282   :  { %568 = vst.msk [vmem:[#allocation4 + $0x10] sm:$0xff] %vm44_vm0, %v564_v24 }
 0x285   :  { %v549_v5 = vld [vmem:[#allocation3 + $0x18] sm:$0xff] }
 0x286   :  { %v557_v25 = vadd.f32 %v683_v26, %v549_v5 }
 0x288   :  { %v565_v20 = vadd.f32 %v557_v25, %v800_v4 }
 0x28a   :  { %569 = vst.msk [vmem:[#allocation4 + $0x18] sm:$0xff] %vm44_vm0, %v565_v20 }
 0x28b   :  { %582 = dma.vmem_to_hbm [thread:$0]  %s575_s21, 512, %s577_s3, [#allocation5], %s731_s5, %s731_s5, %s732_s24  }
 0x28c   :  { %726 = dma.done.wait [#allocation5], 512  }
 0x28d   :  { %727 = vsyncadd [#allocation5], 4294966784 }
 0x28e   :  { %587 = vsyncpa [#allocation5], 1 }

// kernel: basic_transformer_block.10
= control target key start
LH: loop header
LB: loop body
LE: loop exit
PB: predicated region body
PF: predicated region fallthrough
CT: control target
= control target key end

     0   :  { %11 = vsyncpa [#allocation6], 0  ;;  %s1836_s0 = inlined_call_operand.vmem [shape: bf16[2,16,32], index: 0, kind: input, shape index: {}]   ;;  %s1837_s1 = inlined_call_operand.vmem [shape: bf16[2,8,32], index: 1, kind: input, shape index: {}]   ;;  %s1838_s2 = inlined_call_operand.vmem [shape: bf16[2,8,32], index: 2, kind: input, shape index: {}]   ;;  %s1839_s3 = inlined_call_operand.hbm [shape: bf16[32,32], index: 3, kind: input, shape index: {}]   ;;  %s1840_s4 = inlined_call_operand.hbm [shape: f32[1,32], index: 4, kind: input, shape index: {}]   ;;  %s1841_s5 = inlined_call_operand.vmem [shape: f32[2,16,32], index: 5, kind: input, shape index: {}]   ;;  %s1842_s6 = inlined_call_operand.vmem [shape: f32[2,16,32], index: 6, kind: output, shape index: {}]  }
   0x1   :  { %12 = vsyncpa [#allocation8], 0  ;;  %s1555_s21 = smov 0   ;;  %s1557_s22 = smov 0  }
   0x2   :  { %s1559_s23 = smov 0  }
   0x3 LB: > { %s1246_s24 = sadd.s32 4294967295, %s1505_s23   ;;  %s37_s25 = sadd.s32 1, %s1501_s22  ;;  %s1505_s23 = sphi %s1559_s23, %s18_s23   ;;  %s1501_s22 = sphi %s1557_s22, %s1846_s22   ;;  %s1497_s21 = sphi %s1555_s21, %s1845_s21  }
   0x4   : > { %p39_p0 = scmp.ge.s32.totalorder %s37_s25, 2  ;;  %p1248_p1 = scmp.ge.s32.totalorder %s1505_s23, 1 }
   0x5   : > { %p224_p2 = scmp.lt.s32.totalorder %s1505_s23, 3  ;;  %p1580_p4 = scmp.eq.s32.totalorder %s1246_s24, 0 }
   0x6   : > { %s1848_s25 = smov (%p39_p0, %s37_s25), 0  ;;  %s235_s30 = sshll.u32 %s1839_s3, 4  ;;  %s236_s30 = int_to_ptr.hbm [resolvable:$true] %s235_s30 }
   0x7   : > { %p1576_p3 = pnand %p1248_p1, %p224_p2  ;;  %s1507_s7 = smov [#allocation5]  }
   0x8   : > { %s237_s8 = sshll.u32 %s1507_s7, 4  ;;  %s250_s11 = sshll.u32 %s1840_s4, 4  ;;  %s238_s8 = int_to_ptr.vmem [resolvable:$true] %s237_s8  ;;  %s251_s11 = int_to_ptr.hbm [resolvable:$true] %s250_s11 }
   0x9   : > { %p1300_p5 = pneg %p1576_p3  ;;  %s1508_s12 = smov 64  }
   0xa   : > { %s1509_s13 = smov 4   ;;  %s1510_s14 = smov [#allocation7]  }
   0xb   : > { %p1301_p6 = pnand %p1580_p4, %p1300_p5  ;;  %s252_s15 = sshll.u32 %s1510_s14, 4  ;;  %s253_s15 = int_to_ptr.vmem [resolvable:$true] %s252_s15 }
   0xc   : > { %311 = sbr.rel (%p1576_p3) target bundleno = 1520 (0x5f0), region = 44 }
   0xd   : > { %1303 = dma.hbm_to_vmem [thread:$0]  (!%p1301_p6), %s236_s30, 256, %s238_s8, [#allocation6], %s1508_s12, %s1508_s12, %s1509_s13  }
   0xe   : > { %1306 = dma.hbm_to_vmem [thread:$0]  (!%p1301_p6), %s251_s11, 16, %s253_s15, [#allocation8]  }
  0x11   : > { %1488 = dma.done.wait (%p1580_p4), [#allocation6], 256  }
  0x12   : > { %1490 = vsyncadd (%p1580_p4), [#allocation6], 4294967040 }
  0x13   : > { %1492 = dma.done.wait (%p1580_p4), [#allocation8], 16  }
  0x14   : > { %1494 = vsyncadd (%p1580_p4), [#allocation8], 4294967280  ;;  %p379_p7 = scmp.lt.s32.totalorder %s1497_s21, 1  ;;  %vm444_vm0 = vcmask 64512   ;;  %s1511_s28 = smov 120   ;;  %vm427_vm1 = vcmask 7168  }
  0x15   : > { %v1512_v5 = vmov -inf   ;;  %s1513_s29 = smov 112   ;;  %v1514_v12 = vmov 0   ;;  %v1515_v13 = vmov 0.0   ;;  %s1516_s30 = smov 104   ;;  %vm550_vm2 = vcmask 1043456  }
  0x16   : > { %s1850_s21 = smov (!%p379_p7, %s1497_s21), 1  ;;  %428 = vst.msk [vmem:[#allocation2] sm:$0xff] %vm427_vm1, %v1512_v5  ;;  %1348 = vset.pattern.permute.xlu1 %v1514_v12  ;;  %1349 = vset.pattern.permute.xlu2 %v1514_v12  ;;  %s1517_s10 = smov 8   ;;  %vm1035_vm3 = vcmask 130048   ;;  %vm1038_vm4 = vcmask 195584   ;;  %vm1062_vm5 = vcmask 261120  }
  0x17   : > { %s1257_s16 = sshll.u32 %s1850_s21, 2  ;;  %s1286_s20 = sshll.u32 %s1850_s21, 3  ;;  %429 = vst.msk [vmem:[#allocation2 + $0x8] sm:$0xff] %vm427_vm1, %v1512_v5  ;;  %1350 = vset.pattern.permute.xlu0 %v1514_v12 }
  0x18   : > { %s394_s19 = scalar_lea.vmem %s1837_s1, %s1257_s16  ;;  %s386_s27 = scalar_lea.vmem %s1836_s0, %s1286_s20  ;;  %430 = vst.msk [vmem:[#allocation2 + $0x10] sm:$0xff] %vm427_vm1, %v1512_v5 }
  0x19   : > { %v455_v0 = vld [vmem:[%s394_s19] sm:$0xf]  ;;  %431 = vst.msk [vmem:[#allocation2 + $0x18] sm:$0xff] %vm427_vm1, %v1512_v5  ;;  %s401_s9 = scalar_lea.vmem %s1838_s2, %s1257_s16  ;;  %s1518_s11 = smov 16  }
  0x1a   : > { %v467_v1 = vsel %vm444_vm0, %v455_v0, 0  ;;  %v1289_v2 = vld [vmem:[%s386_s27] sm:$0xff]  ;;  %v577_v3 = vunpack.c.l.b16 %v455_v0  ;;  %432 = vst.msk [vmem:[#allocation2 + $0x20] sm:$0xff] %vm427_vm1, %v1512_v5  ;;  %s1519_s12 = smov 24   ;;  %s1287_s13 = sshll.u32 %s1850_s21, 4 }
  0x1b   : > { %476 = vmatpush.bf16.xpose.msra.mxu0 %v467_v1  ;;  %433 = vst.msk [vmem:[#allocation2 + $0x28] sm:$0xff] %vm427_vm1, %v1512_v5  ;;  %v456_v24 = vld [vmem:[%s401_s9] sm:$0xf]  ;;  %s410_s16 = scalar_lea.vmem %s1841_s5, %s1287_s13  ;;  %s420_s19 = scalar_lea.vmem %s1842_s6, %s1287_s13 }
  0x1c   : > { %v578_v4 = vpack.c.b16 %v577_v3, %v577_v3  ;;  %434 = vst.msk [vmem:[#allocation2 + $0x30] sm:$0xff] %vm427_vm1, %v1512_v5  ;;  %v552_v25 = vsel %vm550_vm2, %v456_v24, 0  ;;  %v668_v59 = vunpack.c.l.b16 %v456_v24 }
  0x1d   : > { %435 = vst.msk [vmem:[#allocation2 + $0x38] sm:$0xff] %vm427_vm1, %v1512_v5  ;;  %v1651_v14 = vld [vmem:[#allocation2] sm:$0xff]  ;;  %561 = vmatpush.bf16.msra.mxu1 %v552_v25 }
  0x1e   : > { %579 = vrot.lane.b32.xlu1 %v578_v4, %s1511_s28  ;;  %439 = vst.msk [vmem:[#allocation3 + $0x18] sm:$0xff] %vm427_vm1, %v1515_v13  ;;  %v1661_v18 = vld [vmem:[#allocation2 + $0x8] sm:$0xff]  ;;  %v669_v60 = vpack.c.b16 %v668_v59, %v668_v59 }
  0x1f   : > { %436 = vst.msk [vmem:[#allocation3] sm:$0xff] %vm427_vm1, %v1515_v13  ;;  %v1717_v61 = vld [vmem:[#allocation2 + $0x10] sm:$0xff] }
  0x20   : > { %437 = vst.msk [vmem:[#allocation3 + $0x8] sm:$0xff] %vm427_vm1, %v1515_v13  ;;  %v1727_v1 = vld [vmem:[#allocation2 + $0x18] sm:$0xff] }
  0x21   : > { %438 = vst.msk [vmem:[#allocation3 + $0x10] sm:$0xff] %vm427_vm1, %v1515_v13  ;;  %v725_v5 = vld [vmem:[#allocation2 + $0x20] sm:$0xff] }
  0x22   : > { %1267 = vmatmul.msk.bf16.vlgmr.msra.gmra.mxu0 %vm444_vm0, %v1289_v2  ;;  %440 = vst.msk [vmem:[#allocation3 + $0x20] sm:$0xff] %vm427_vm1, %v1515_v13 }
  0x23   : > { %441 = vst.msk [vmem:[#allocation3 + $0x28] sm:$0xff] %vm427_vm1, %v1515_v13 }
  0x24   : > { %442 = vst.msk [vmem:[#allocation3 + $0x30] sm:$0xff] %vm427_vm1, %v1515_v13 }
  0x25   : > { %443 = vst.msk [vmem:[#allocation3 + $0x38] sm:$0xff] %vm427_vm1, %v1515_v13 }
  0x26   : > { %445 = vst.msk [vmem:[#allocation4] sm:$0xff] %vm444_vm0, %v1515_v13 }
  0x27   : > { %446 = vst.msk [vmem:[#allocation4 + $0x8] sm:$0xff] %vm444_vm0, %v1515_v13 }
  0x28   : > { %447 = vst.msk [vmem:[#allocation4 + $0x10] sm:$0xff] %vm444_vm0, %v1515_v13 }
  0x29   : > { %448 = vst.msk [vmem:[#allocation4 + $0x18] sm:$0xff] %vm444_vm0, %v1515_v13 }
  0x2a   : > { %449 = vst.msk [vmem:[#allocation4 + $0x20] sm:$0xff] %vm444_vm0, %v1515_v13 }
  0x2b   : > { %450 = vst.msk [vmem:[#allocation4 + $0x28] sm:$0xff] %vm444_vm0, %v1515_v13 }
  0x2c   : > { %451 = vst.msk [vmem:[#allocation4 + $0x30] sm:$0xff] %vm444_vm0, %v1515_v13 }
  0x2d   : > { %452 = vst.msk [vmem:[#allocation4 + $0x38] sm:$0xff] %vm444_vm0, %v1515_v13 }
  0x90   : > { %v580_v22 = vpop.permute.xlu1 %579 }
  0x91   : > { %v585_v23 = vsel %vm444_vm0, %v580_v22, 0  ;;  %v1739_v22 = vld [vmem:[#allocation2 + $0x38] sm:$0xff] }
  0x92   : > { %594 = vmatpush.bf16.xpose.msra.mxu2 %v585_v23 }
  0x9f   : > { %v478_v6 = vpop.f32.mrf.mxu0 }
  0xa0   : > { %v1629_v7 = vmul.f32 0.35355338, %v478_v6 }
  0xa2   : > { %v487_v8 = vsel %vm444_vm0, %v1629_v7, -inf }
  0xa3   : > { %488 = vmax.xlane.f32.xlu0 %v487_v8 }
  0xa7   : > { %v480_v9 = vpop.f32.mrf.mxu0 }
  0xa8   : > { %v484_v10 = vmul.f32 0.35355338, %v480_v9 }
  0xaa   : > { %v490_v11 = vsel %vm444_vm0, %v484_v10, -inf }
  0xab   : > { %491 = vmax.xlane.f32.xlu0 %v490_v11 }
  0xbf   : > { %700 = vrot.lane.b32.xlu0 %v578_v4, %s1513_s29 }
 0x116   : > { %v489_v15 = vpop.xlane.xlu0 %488 }
 0x117   : > { %v1654_v16 = vmax.f32 %v1651_v14, %v489_v15 }
 0x119   : > { %v495_v17 = vsub.f32 %v1651_v14, %v1654_v16  ;;  %572 = vst.msk [vmem:[#allocation2] sm:$0xff] %vm427_vm1, %v1654_v16  ;;  %503 = vperm.xlu1 %1348, %v1654_v16   ;;  %v653_v14 = vld [vmem:[#allocation4 + $0x18] sm:$0xff] }
 0x11e   : > { %v492_v19 = vpop.xlane.xlu0 %491 }
 0x11f   : > { %v1664_v20 = vmax.f32 %v1661_v18, %v492_v19 }
 0x121   : > { %v496_v21 = vsub.f32 %v1661_v18, %v1664_v20  ;;  %573 = vst.msk [vmem:[#allocation2 + $0x8] sm:$0xff] %vm427_vm1, %v1664_v20  ;;  %508 = vperm.xlu2 %1349, %v1664_v20   ;;  %818 = vrot.lane.b32.xlu1 %v578_v4, %s1516_s30 }
 0x129   : > { %574 = vrot.lane.b32.xlu2 %v1289_v2, %s1511_s28  ;;  %816 = vrot.lane.b32.xlu1 %v1289_v2, %s1516_s30 }
 0x131   : > { %698 = vrot.lane.b32.xlu2 %v1289_v2, %s1513_s29  ;;  %v701_v26 = vpop.permute.xlu0 %700 }
 0x132   : > { %v706_v27 = vsel %vm444_vm0, %v701_v26, 0 }
 0x133   : > { %715 = vmatpush.bf16.xpose.msrb.mxu1 %v706_v27 }
 0x17b   : > { %v509_v28 = vpop.permute.xlu2 %508 }
 0x17c   : > { %v512_v30 = vsub.f32 %v484_v10, %v509_v28  ;;  %v843_v10 = vld [vmem:[#allocation2 + $0x30] sm:$0xff] }
 0x17e   : > { %v515_v31 = vmul.f32 1.442695, %v512_v30 }
 0x180   : > { %1367 = vpow2.f32 %v515_v31 }
 0x183   : > { %v575_v29 = vpop.permute.xlu2 %574 }
 0x184   : > { %1269 = vmatmul.msk.bf16.vlgmr.msra.gmra.mxu2 %vm444_vm0, %v575_v29 }
 0x186   : > { %v1686_v37 = vpop.eup %1367 }
 0x18b   : > { %v504_v32 = vpop.permute.xlu1 %503  ;;  %v699_v41 = vpop.permute.xlu2 %698 }
 0x18c   : > { %v511_v33 = vsub.f32 %v1629_v7, %v504_v32 }
 0x18e   : > { %v513_v34 = vmul.f32 1.442695, %v511_v33 }
 0x190   : > { %1369 = vpow2.f32 %v513_v34 }
 0x193   : > { %v819_v35 = vpop.permute.xlu1 %818 }
 0x194   : > { %v824_v36 = vsel %vm444_vm0, %v819_v35, 0 }
 0x195   : > { %833 = vmatpush.bf16.xpose.msrb.mxu0 %v824_v36 }
 0x196   : > { %v1688_v38 = vpop.eup %1369 }
 0x197   : > { %v546_v39 = vpack.c.bf16 %v1686_v37, %v1688_v38 }
 0x199   : > { %1268 = vmatmul.msk.bf16.vlgmr.msra.gmra.mxu1 %vm444_vm0, %v546_v39  ;;  %v1751_v39 = vld [vmem:[#allocation2 + $0x28] sm:$0xff] }
 0x19b   : > { %v817_v40 = vpop.permute.xlu1 %816 }
 0x19c   : > { %1273 = vmatmul.msk.bf16.vlgmr.msrb.gmra.mxu0 %vm444_vm0, %v817_v40 }
 0x1a9   : > { %1271 = vmatmul.msk.bf16.vlgmr.msrb.gmra.mxu1 %vm444_vm0, %v699_v41 }
 0x207   : > { %v596_v42 = vpop.f32.mrf.mxu2 }
 0x208   : > { %v1695_v43 = vmul.f32 0.35355338, %v596_v42 }
 0x20a   : > { %v606_v44 = vsel %vm444_vm0, %v1695_v43, -inf }
 0x20b   : > { %607 = vmax.xlane.f32.xlu2 %v606_v44 }
 0x20f   : > { %v598_v45 = vpop.f32.mrf.mxu2 }
 0x210   : > { %v602_v46 = vmul.f32 0.35355338, %v598_v45 }
 0x212   : > { %v609_v47 = vsel %vm444_vm0, %v602_v46, -inf }
 0x213   : > { %610 = vmax.xlane.f32.xlu1 %v609_v47 }
 0x216   : > { %v1700_v48 = vpop.f32.mrf.mxu1 }
 0x219   : > { %v835_v49 = vpop.f32.mrf.mxu0 }
 0x21a   : > { %v1702_v50 = vmul.f32 0.35355338, %v835_v49 }
 0x21c   : > { %v845_v51 = vsel %vm444_vm0, %v1702_v50, -inf }
 0x21d   : > { %846 = vmax.xlane.f32.xlu2 %v845_v51  ;;  %v524_v51 = vsel %vm444_vm0, %v1686_v37, 0.0  ;;  %v521_v37 = vsel %vm444_vm0, %v1688_v38, 0.0 }
 0x21e   : > { %v1706_v52 = vpop.f32.mrf.mxu1 }
 0x221   : > { %v837_v53 = vpop.f32.mrf.mxu0 }
 0x222   : > { %v1708_v54 = vmul.f32 0.35355338, %v837_v53 }
 0x224   : > { %v848_v55 = vsel %vm444_vm0, %v1708_v54, -inf }
 0x225   : > { %849 = vmax.xlane.f32.xlu1 %v848_v55 }
 0x226   : > { %v717_v56 = vpop.f32.mrf.mxu1 }
 0x227   : > { %v1712_v57 = vmul.f32 0.35355338, %v717_v56 }
 0x229   : > { %v727_v58 = vsel %vm444_vm0, %v1712_v57, -inf }
 0x22a   : > { %728 = vmax.xlane.f32.xlu0 %v727_v58 }
 0x22e   : > { %v719_v9 = vpop.f32.mrf.mxu1 }
 0x22f   : > { %v1734_v13 = vmul.f32 0.35355338, %v719_v9 }
 0x231   : > { %v730_v19 = vsel %vm444_vm0, %v1734_v13, -inf }
 0x23e   : > { %670 = vrot.lane.b32.xlu1 %v669_v60, %s1511_s28 }
 0x27e   : > { %v608_v62 = vpop.xlane.xlu2 %607 }
 0x27f   : > { %v1720_v63 = vmax.f32 %v1717_v61, %v608_v62  ;;  %v638_v62 = vld [vmem:[#allocation3 + $0x18] sm:$0xff] }
 0x281   : > { %v614_v0 = vsub.f32 %v1717_v61, %v1720_v63  ;;  %696 = vst.msk [vmem:[#allocation2 + $0x10] sm:$0xff] %vm427_vm1, %v1720_v63  ;;  %622 = vperm.xlu0 %1350, %v1720_v63   ;;  %v637_v61 = vld [vmem:[#allocation3 + $0x10] sm:$0xff] }
 0x283   : > { %v616_v18 = vmul.f32 1.442695, %v614_v0 }
 0x286   : > { %v611_v2 = vpop.xlane.xlu1 %610 }
 0x287   : > { %v613_v3 = vmax.f32 %v1727_v1, %v611_v2 }
 0x289   : > { %v615_v4 = vsub.f32 %v1727_v1, %v613_v3  ;;  %697 = vst.msk [vmem:[#allocation2 + $0x18] sm:$0xff] %vm427_vm1, %v613_v3  ;;  %627 = vperm.xlu2 %1349, %v613_v3   ;;  %788 = vrot.lane.b32.xlu0 %v669_v60, %s1513_s29 }
 0x28b   : > { %v618_v55 = vmul.f32 1.442695, %v615_v4 }
 0x290   : > { %v847_v11 = vpop.xlane.xlu2 %846 }
 0x291   : > { %v851_v12 = vmax.f32 %v843_v10, %v847_v11 }
 0x293   : > { %v853_v15 = vsub.f32 %v843_v10, %v851_v12  ;;  %932 = vst.msk [vmem:[#allocation2 + $0x30] sm:$0xff] %vm427_vm1, %v851_v12 }
 0x295   : > { %v855_v59 = vmul.f32 1.442695, %v853_v15 }
 0x298   : > { %v850_v23 = vpop.xlane.xlu1 %849 }
 0x299   : > { %v1742_v24 = vmax.f32 %v1739_v22, %v850_v23 }
 0x29b   : > { %933 = vst.msk [vmem:[#allocation2 + $0x38] sm:$0xff] %vm427_vm1, %v1742_v24 }
 0x29d   : > { %v729_v6 = vpop.xlane.xlu0 %728 }
 0x29e   : > { %v733_v7 = vmax.f32 %v725_v5, %v729_v6 }
 0x2a0   : > { %v735_v8 = vsub.f32 %v725_v5, %v733_v7  ;;  %814 = vst.msk [vmem:[#allocation2 + $0x20] sm:$0xff] %vm427_vm1, %v733_v7 }
 0x2a2   : > { %v737_v53 = vmul.f32 1.442695, %v735_v8 }
 0x2b0   : > { %v671_v25 = vpop.permute.xlu1 %670 }
 0x2b1   : > { %v676_v26 = vsel %vm550_vm2, %v671_v25, 0 }
 0x2b2   : > { %731 = vmax.xlane.f32.xlu2 %v730_v19  ;;  %685 = vmatpush.bf16.msra.mxu3 %v676_v26 }
 0x2ca   : > { %743 = vperm.xlu2 %1349, %v733_v7  }
 0x2d2   : > { %861 = vperm.xlu2 %1349, %v851_v12  }
 0x2da   : > { %906 = vrot.lane.b32.xlu2 %v669_v60, %s1516_s30 }
 0x2e3   : > { %v628_v27 = vpop.permute.xlu2 %627 }
 0x2e4   : > { %v631_v28 = vsub.f32 %v602_v46, %v628_v27 }
 0x2e6   : > { %v634_v29 = vmul.f32 1.442695, %v631_v28 }
 0x2e8   : > { %1371 = vpow2.f32 %v634_v29 }
 0x2ee   : > { %v1372_v30 = vpop.eup %1371 }
 0x2ef   : > { %v644_v31 = vsel %vm444_vm0, %v1372_v30, 0.0 }
 0x2f0   : > { %645 = vadd.xlane.f32.xlu0 %v644_v31  ;;  %v499_v31 = vmul.f32 1.442695, %v496_v21 }
 0x2f3   : > { %v623_v32 = vpop.permute.xlu0 %622 }
 0x2f4   : > { %v630_v33 = vsub.f32 %v1695_v43, %v623_v32  ;;  %v876_v32 = vld [vmem:[#allocation3 + $0x30] sm:$0xff] }
 0x2f6   : > { %v632_v34 = vmul.f32 1.442695, %v630_v33 }
 0x2f8   : > { %1373 = vpow2.f32 %v632_v34 }
 0x2fb   : > { %v789_v58 = vpop.permute.xlu0 %788 }
 0x2fc   : > { %v794_v7 = vsel %vm550_vm2, %v789_v58, 0 }
 0x2fd   : > { %803 = vmatpush.bf16.msrb.mxu3 %v794_v7 }
 0x2fe   : > { %v1374_v35 = vpop.eup %1373 }
 0x2ff   : > { %v666_v36 = vpack.c.bf16 %v1372_v30, %v1374_v35  ;;  %v641_v56 = vsel %vm444_vm0, %v1374_v35, 0.0 }
 0x301   : > { %1270 = vmatmul.msk.bf16.vlgmr.msra.gmra.mxu3 %vm444_vm0, %v666_v36 }
 0x325   : > { %v732_v40 = vpop.xlane.xlu2 %731 }
 0x326   : > { %v1754_v41 = vmax.f32 %v1751_v39, %v732_v40 }
 0x328   : > { %v736_v42 = vsub.f32 %v1751_v39, %v1754_v41  ;;  %815 = vst.msk [vmem:[#allocation2 + $0x28] sm:$0xff] %vm427_vm1, %v1754_v41  ;;  %748 = vperm.xlu1 %1348, %v1754_v41   ;;  %v773_v41 = vld [vmem:[#allocation4 + $0x20] sm:$0xff] }
 0x32d   : > { %v744_v43 = vpop.permute.xlu2 %743 }
 0x32e   : > { %v751_v38 = vsub.f32 %v1712_v57, %v744_v43  ;;  %v518_v43 = vld [vmem:[#allocation3 + $0x8] sm:$0xff] }
 0x330   : > { %866 = vperm.xlu1 %1348, %v1742_v24   ;;  %v753_v10 = vmul.f32 1.442695, %v751_v38 }
 0x335   : > { %v862_v44 = vpop.permute.xlu2 %861 }
 0x336   : > { %v869_v45 = vsub.f32 %v1702_v50, %v862_v44 }
 0x338   : > { %v871_v46 = vmul.f32 1.442695, %v869_v45 }
 0x33a   : > { %1375 = vpow2.f32 %v871_v46 }
 0x33b   : > { %1377 = vpow2.f32 %v737_v53  ;;  %v517_v53 = vld [vmem:[#allocation3] sm:$0xff] }
 0x33c   : > { %1379 = vpow2.f32 %v618_v55 }
 0x33d   : > { %1381 = vpow2.f32 %v855_v59  ;;  %v907_v8 = vpop.permute.xlu2 %906 }
 0x33e   : > { %v912_v9 = vsel %vm550_vm2, %v907_v8, 0 }
 0x33f   : > { %921 = vmatpush.bf16.msrb.mxu2 %v912_v9  ;;  %v877_v9 = vld [vmem:[#allocation3 + $0x38] sm:$0xff] }
 0x340   : > { %v1376_v47 = vpop.eup %1375 }
 0x341   : > { %v880_v49 = vsel %vm444_vm0, %v1376_v47, 0.0  ;;  %v1767_v50 = vpop.eup %1377 }
 0x342   : > { %881 = vadd.xlane.f32.xlu0 %v880_v49  ;;  %v1380_v60 = vpop.eup %1379 }
 0x343   : > { %v640_v1 = vmul.f32 %v1380_v60, %v638_v62  ;;  %v1382_v4 = vpop.eup %1381 }
 0x344   : > { %v878_v33 = vmul.f32 %v1382_v4, %v876_v32 }
 0x34a   : > { %525 = vadd.xlane.f32.xlu0 %v524_v51 }
 0x35a   : > { %642 = vadd.xlane.f32.xlu1 %v641_v56 }
 0x35e   : > { %777 = vperm.xlu0 %1350, %v1767_v50  }
 0x362   : > { %522 = vadd.xlane.f32.xlu1 %v521_v37 }
 0x363   : > { %v646_v2 = vpop.xlane.xlu0 %645 }
 0x364   : > { %v648_v3 = vadd.f32 %v646_v2, %v640_v1  ;;  %v739_v1 = vmul.f32 1.442695, %v736_v42  ;;  %v652_v42 = vld [vmem:[#allocation4 + $0x10] sm:$0xff] }
 0x366   : > { %650 = vst.msk [vmem:[#allocation3 + $0x18] sm:$0xff] %vm427_vm1, %v648_v3  ;;  %895 = vperm.xlu0 %1350, %v1382_v4  }
 0x36d   : > { %v956_v5 = vld [vmem:[#allocation3 + $0x18] sm:$0xff] }
 0x36e   : > { %1383 = vrcp.f32 %v956_v5  ;;  %v759_v5 = vld [vmem:[#allocation3 + $0x28] sm:$0xff] }
 0x36f   : > { %1385 = vpow2.f32 %v753_v10 }
 0x374   : > { %v1384_v6 = vpop.eup %1383 }
 0x375   : > { %968 = vperm.xlu0 %1350, %v1384_v6   ;;  %v1386_v25 = vpop.eup %1385 }
 0x376   : > { %v762_v62 = vsel %vm444_vm0, %v1386_v25, 0.0 }
 0x37b   : > { %661 = vperm.xlu1 %1348, %v1380_v60  }
 0x384   : > { %v687_v59 = vpop.f32.mrf.mxu3 }
 0x38c   : > { %v689_v60 = vpop.f32.mrf.mxu3 }
 0x39a   : > { %v749_v11 = vpop.permute.xlu1 %748 }
 0x39b   : > { %v752_v12 = vsub.f32 %v1734_v13, %v749_v11 }
 0x39d   : > { %v755_v15 = vmul.f32 1.442695, %v752_v12 }
 0x39f   : > { %1387 = vpow2.f32 %v755_v15 }
 0x3a2   : > { %v867_v19 = vpop.permute.xlu1 %866 }
 0x3a3   : > { %v870_v23 = vsub.f32 %v1708_v54, %v867_v19  ;;  %v854_v54 = vsub.f32 %v1739_v22, %v1742_v24 }
 0x3a5   : > { %v1388_v26 = vpop.eup %1387  ;;  %v873_v27 = vmul.f32 1.442695, %v870_v23  ;;  %v857_v34 = vmul.f32 1.442695, %v854_v54 }
 0x3a6   : > { %v765_v28 = vsel %vm444_vm0, %v1388_v26, 0.0  ;;  %v787_v29 = vpack.c.bf16 %v1388_v26, %v1386_v25 }
 0x3a7   : > { %1389 = vpow2.f32 %v873_v27  ;;  %766 = vadd.xlane.f32.xlu1 %v765_v28 }
 0x3a8   : > { %1272 = vmatmul.msk.bf16.vlgmr.msrb.gmra.mxu3 %vm444_vm0, %v787_v29  ;;  %1391 = vpow2.f32 %v499_v31 }
 0x3a9   : > { %1393 = vpow2.f32 %v857_v34 }
 0x3aa   : > { %1395 = vpow2.f32 %v616_v18 }
 0x3ad   : > { %v1390_v57 = vpop.eup %1389 }
 0x3ae   : > { %v883_v30 = vsel %vm444_vm0, %v1390_v57, 0.0  ;;  %v905_v13 = vpack.c.bf16 %v1390_v57, %v1376_v47  ;;  %v1392_v40 = vpop.eup %1391  ;;  %v497_v47 = vmul.f32 1.442695, %v495_v17  ;;  %v891_v57 = vld [vmem:[#allocation4 + $0x30] sm:$0xff] }
 0x3af   : > { %884 = vadd.xlane.f32.xlu2 %v883_v30  ;;  %v520_v20 = vmul.f32 %v1392_v40, %v518_v43  ;;  %v1394_v45 = vpop.eup %1393 }
 0x3b0   : > { %1274 = vmatmul.msk.bf16.vlgmr.msrb.gmra.mxu2 %vm444_vm0, %v905_v13  ;;  %v1396_v24 = vpop.eup %1395  ;;  %v879_v10 = vmul.f32 %v1394_v45, %v877_v9 }
 0x3b1   : > { %v639_v63 = vmul.f32 %v1396_v24, %v637_v61  ;;  %v774_v61 = vld [vmem:[#allocation4 + $0x28] sm:$0xff] }
 0x3b5   : > { %v882_v35 = vpop.xlane.xlu0 %881 }
 0x3b6   : > { %v886_v36 = vadd.f32 %v882_v35, %v878_v33  ;;  %v892_v33 = vld [vmem:[#allocation4 + $0x38] sm:$0xff] }
 0x3b8   : > { %888 = vst.msk [vmem:[#allocation3 + $0x30] sm:$0xff] %vm427_vm1, %v886_v36 }
 0x3bd   : > { %v526_v21 = vpop.xlane.xlu0 %525 }
 0x3be   : > { %v528_v44 = vadd.f32 %v526_v21, %v520_v20  ;;  %v533_v20 = vld [vmem:[#allocation4 + $0x8] sm:$0xff] }
 0x3bf   : > { %v991_v22 = vld [vmem:[#allocation3 + $0x30] sm:$0xff] }
 0x3c0   : > { %531 = vst.msk [vmem:[#allocation3 + $0x8] sm:$0xff] %vm427_vm1, %v528_v44  ;;  %900 = vperm.xlu1 %1348, %v1394_v45   ;;  %1397 = vrcp.f32 %v991_v22  ;;  %v758_v22 = vld [vmem:[#allocation3 + $0x20] sm:$0xff] }
 0x3c1   : > { %1399 = vpow2.f32 %v497_v47 }
 0x3c2   : > { %1401 = vpow2.f32 %v739_v1  ;;  %v532_v1 = vld [vmem:[#allocation4] sm:$0xff] }
 0x3c6   : > { %v1398_v46 = vpop.eup %1397 }
 0x3c7   : > { %999 = vperm.xlu0 %1350, %v1398_v46   ;;  %656 = vperm.xlu2 %1349, %v1396_v24   ;;  %v1400_v51 = vpop.eup %1399  ;;  %v938_v31 = vld [vmem:[#allocation3 + $0x8] sm:$0xff]  ;;  %v760_v24 = vmul.f32 %v1767_v50, %v758_v22  ;;  %v1080_v22 = vld [vmem:[%s410_s16] sm:$0xff] }
 0x3c8   : > { %v519_v55 = vmul.f32 %v1400_v51, %v517_v53  ;;  %v1402_v3 = vpop.eup %1401 }
 0x3c9   : > { %v761_v6 = vmul.f32 %v1402_v3, %v759_v5 }
 0x3cd   : > { %v643_v0 = vpop.xlane.xlu1 %642 }
 0x3ce   : > { %v647_v49 = vadd.f32 %v643_v0, %v639_v63 }
 0x3cf   : > { %541 = vperm.xlu0 %1350, %v1392_v40  }
 0x3d0   : > { %649 = vst.msk [vmem:[#allocation3 + $0x10] sm:$0xff] %vm427_vm1, %v647_v49  ;;  %v778_v38 = vpop.permute.xlu0 %777 }
 0x3d1   : > { %v785_v19 = vmul.f32 %v778_v38, %v773_v41 }
 0x3d5   : > { %v523_v56 = vpop.xlane.xlu1 %522 }
 0x3d6   : > { %v527_v58 = vadd.f32 %v523_v56, %v519_v55 }
 0x3d7   : > { %v955_v2 = vld [vmem:[#allocation3 + $0x10] sm:$0xff] }
 0x3d8   : > { %530 = vst.msk [vmem:[#allocation3] sm:$0xff] %vm427_vm1, %v527_v58  ;;  %1403 = vrcp.f32 %v955_v2  ;;  %v896_v15 = vpop.permute.xlu0 %895 }
 0x3d9   : > { %v903_v13 = vmul.f32 %v896_v15, %v891_v57  ;;  %v1291_v15 = vld [vmem:[#allocation5 + $0x8] sm:$0xff] }
 0x3da   : > { %1072 = vmatpush.bf16.msra.mxu1 %v1291_v15 }
 0x3de   : > { %v1404_v4 = vpop.eup %1403 }
 0x3e7   : > { %v969_v30 = vpop.permute.xlu0 %968 }
 0x3ed   : > { %v662_v16 = vpop.permute.xlu1 %661 }
 0x3ee   : > { %v665_v17 = vmul.f32 %v662_v16, %v653_v14 }
 0x3f0   : > { %v693_v37 = vadd.f32 %v689_v60, %v665_v17  ;;  %763 = vadd.xlane.f32.xlu2 %v762_v62  ;;  %v937_v17 = vld [vmem:[#allocation3] sm:$0xff] }
 0x3f2   : > { %695 = vst.msk [vmem:[#allocation4 + $0x18] sm:$0xff] %vm444_vm0, %v693_v37 }
 0x3f9   : > { %v960_v55 = vld [vmem:[#allocation4 + $0x18] sm:$0xff] }
 0x3fa   : > { %v972_v50 = vmul.f32 %v969_v30, %v960_v55 }
 0x408   : > { %782 = vperm.xlu2 %1349, %v1402_v3  }
 0x410   : > { %963 = vperm.xlu2 %1349, %v1404_v4  }
 0x41a   : > { %v767_v7 = vpop.xlane.xlu1 %766 }
 0x41b   : > { %v769_v8 = vadd.f32 %v767_v7, %v761_v6 }
 0x41d   : > { %771 = vst.msk [vmem:[#allocation3 + $0x28] sm:$0xff] %vm427_vm1, %v769_v8 }
 0x422   : > { %v885_v11 = vpop.xlane.xlu2 %884 }
 0x423   : > { %v887_v12 = vadd.f32 %v885_v11, %v879_v10 }
 0x424   : > { %v974_v39 = vld [vmem:[#allocation3 + $0x28] sm:$0xff] }
 0x425   : > { %889 = vst.msk [vmem:[#allocation3 + $0x38] sm:$0xff] %vm427_vm1, %v887_v12  ;;  %1405 = vrcp.f32 %v974_v39 }
 0x426   : > { %1407 = vrcp.f32 %v938_v31 }
 0x42a   : > { %v657_v23 = vpop.permute.xlu2 %656 }
 0x42b   : > { %v1406_v25 = vpop.eup %1405  ;;  %v664_v26 = vmul.f32 %v657_v23, %v652_v42  ;;  %v805_v27 = vpop.f32.mrf.mxu3 }
 0x42c   : > { %v810_v28 = vadd.f32 %v805_v27, %v785_v19  ;;  %986 = vperm.xlu2 %1349, %v1406_v25   ;;  %v1408_v40 = vpop.eup %1407  ;;  %v992_v58 = vld [vmem:[#allocation3 + $0x38] sm:$0xff] }
 0x42d   : > { %v692_v29 = vadd.f32 %v687_v59, %v664_v26 }
 0x42e   : > { %812 = vst.msk [vmem:[#allocation4 + $0x20] sm:$0xff] %vm444_vm0, %v810_v28 }
 0x42f   : > { %694 = vst.msk [vmem:[#allocation4 + $0x10] sm:$0xff] %vm444_vm0, %v692_v29 }
 0x432   : > { %v901_v34 = vpop.permute.xlu1 %900 }
 0x433   : > { %v923_v54 = vpop.f32.mrf.mxu2  ;;  %v904_v36 = vmul.f32 %v901_v34, %v892_v33  ;;  %v807_v49 = vpop.f32.mrf.mxu3 }
 0x434   : > { %v928_v32 = vadd.f32 %v923_v54, %v903_v13  ;;  %536 = vperm.xlu2 %1349, %v1400_v51  }
 0x435   : > { %v977_v6 = vld [vmem:[#allocation4 + $0x20] sm:$0xff] }
 0x436   : > { %930 = vst.msk [vmem:[#allocation4 + $0x30] sm:$0xff] %vm444_vm0, %v928_v32 }
 0x439   : > { %v1000_v35 = vpop.permute.xlu0 %999 }
 0x43b   : > { %v925_v43 = vpop.f32.mrf.mxu2 }
 0x43c   : > { %v929_v18 = vadd.f32 %v925_v43, %v904_v36  ;;  %950 = vperm.xlu2 %1349, %v1408_v40  }
 0x43d   : > { %v995_v10 = vld [vmem:[#allocation4 + $0x30] sm:$0xff] }
 0x43e   : > { %931 = vst.msk [vmem:[#allocation4 + $0x38] sm:$0xff] %vm444_vm0, %v929_v18  ;;  %v1007_v39 = vmul.f32 %v1000_v35, %v995_v10 }
 0x441   : > { %v542_v21 = vpop.permute.xlu0 %541 }
 0x442   : > { %v545_v44 = vmul.f32 %v542_v21, %v533_v20 }
 0x444   : > { %v569_v45 = vadd.f32 %v1706_v52, %v545_v44  ;;  %v959_v52 = vld [vmem:[#allocation4 + $0x10] sm:$0xff] }
 0x445   : > { %v996_v11 = vld [vmem:[#allocation4 + $0x38] sm:$0xff]  ;;  %v1366_v44 = vld [vmem:[#allocation7] ss:$0 sm:$0xff] }
 0x446   : > { %571 = vst.msk [vmem:[#allocation4 + $0x8] sm:$0xff] %vm444_vm0, %v569_v45 }
 0x44d   : > { %v942_v29 = vld [vmem:[#allocation4 + $0x8] sm:$0xff] }
 0x463   : > { %v764_v46 = vpop.xlane.xlu2 %763 }
 0x464   : > { %v768_v47 = vadd.f32 %v764_v46, %v760_v24 }
 0x466   : > { %770 = vst.msk [vmem:[#allocation3 + $0x20] sm:$0xff] %vm427_vm1, %v768_v47 }
 0x46b   : > { %v783_v63 = vpop.permute.xlu2 %782 }
 0x46c   : > { %v786_v0 = vmul.f32 %v783_v63, %v774_v61  ;;  %v1081_v61 = vld [vmem:[%s410_s16 + $0x8] sm:$0xff] }
 0x46d   : > { %v973_v51 = vld [vmem:[#allocation3 + $0x20] sm:$0xff] }
 0x46e   : > { %v811_v53 = vadd.f32 %v807_v49, %v786_v0  ;;  %1409 = vrcp.f32 %v973_v51 }
 0x46f   : > { %1411 = vrcp.f32 %v992_v58 }
 0x470   : > { %813 = vst.msk [vmem:[#allocation4 + $0x28] sm:$0xff] %vm444_vm0, %v811_v53  ;;  %1413 = vrcp.f32 %v937_v17 }
 0x473   : > { %v964_v56 = vpop.permute.xlu2 %963 }
 0x474   : > { %v1410_v59 = vpop.eup %1409  ;;  %v971_v14 = vmul.f32 %v964_v56, %v959_v52 }
 0x475   : > { %981 = vperm.xlu1 %1348, %v1410_v59   ;;  %v1412_v60 = vpop.eup %1411 }
 0x476   : > { %v1351_v16 = vpack.i.bf16 %v972_v50, %v971_v14  ;;  %v1414_v62 = vpop.eup %1413 }
 0x477   : > { %v978_v5 = vld [vmem:[#allocation4 + $0x28] sm:$0xff] }
 0x478   : > { %1352 = vrot.lane.b32.xlu0 %v1351_v16, %s1517_s10 }
 0x47d   : > { %1004 = vperm.xlu1 %1348, %v1412_v60  }
 0x485   : > { %945 = vperm.xlu1 %1348, %v1414_v62  }
 0x486   : > { %v987_v37 = vpop.permute.xlu2 %986 }
 0x487   : > { %v990_v8 = vmul.f32 %v987_v37, %v978_v5 }
 0x48e   : > { %v537_v2 = vpop.permute.xlu2 %536 }
 0x48f   : > { %v544_v3 = vmul.f32 %v537_v2, %v532_v1 }
 0x491   : > { %v568_v4 = vadd.f32 %v1700_v48, %v544_v3  ;;  %v1290_v48 = vld [vmem:[#allocation5] sm:$0xff] }
 0x492   : > { %1073 = vmatpush.bf16.msra.mxu1 %v1290_v48 }
 0x493   : > { %570 = vst.msk [vmem:[#allocation4] sm:$0xff] %vm444_vm0, %v568_v4 }
 0x496   : > { %v951_v19 = vpop.permute.xlu2 %950 }
 0x497   : > { %v954_v30 = vmul.f32 %v951_v19, %v942_v29 }
 0x49a   : > { %v941_v26 = vld [vmem:[#allocation4] sm:$0xff] }
 0x4e7   : > { %v982_v7 = vpop.permute.xlu1 %981 }
 0x4e8   : > { %v989_v9 = vmul.f32 %v982_v7, %v977_v6 }
 0x4ea   : > { %v1356_v38 = vpack.i.bf16 %v990_v8, %v989_v9  ;;  %v1353_v25 = vpop.permute.xlu0 %1352 }
 0x4eb   : > { %v1355_v27 = vunpack.i.h.bf16 %v1353_v25  ;;  %v1354_v13 = vunpack.i.l.bf16 %v1353_v25 }
 0x4ec   : > { %1357 = vrot.lane.b32.xlu1 %v1356_v38, %s1518_s11 }
 0x4ed   : > { %v1034_v33 = vsel %vm444_vm0, %v954_v30, %v1355_v27 }
 0x4ef   : > { %v1005_v12 = vpop.permute.xlu1 %1004 }
 0x4f0   : > { %v1008_v41 = vmul.f32 %v1005_v12, %v996_v11 }
 0x4f2   : > { %v1361_v42 = vpack.i.bf16 %v1008_v41, %v1007_v39 }
 0x4f4   : > { %1362 = vrot.lane.b32.xlu2 %v1361_v42, %s1519_s12 }
 0x4f7   : > { %v946_v23 = vpop.permute.xlu1 %945 }
 0x4f8   : > { %v953_v28 = vmul.f32 %v946_v23, %v941_v26 }
 0x4fa   : > { %v1033_v34 = vsel %vm444_vm0, %v953_v28, %v1354_v13 }
 0x54e   : > { %v1363_v57 = vpop.permute.xlu2 %1362 }
 0x54f   : > { %v1365_v35 = vunpack.i.h.bf16 %v1363_v57  ;;  %v1364_v36 = vunpack.i.l.bf16 %v1363_v57 }
 0x55e   : > { %v1358_v31 = vpop.permute.xlu1 %1357 }
 0x55f   : > { %v1360_v54 = vunpack.i.h.bf16 %v1358_v31  ;;  %v1359_v32 = vunpack.i.l.bf16 %v1358_v31 }
 0x561   : > { %v1037_v40 = vsel %vm1035_vm3, %v1034_v33, %v1360_v54  ;;  %v1036_v43 = vsel %vm1035_vm3, %v1033_v34, %v1359_v32 }
 0x562   : > { %v1040_v18 = vsel %vm1038_vm4, %v1037_v40, %v1365_v35  ;;  %v1039_v20 = vsel %vm1038_vm4, %v1036_v43, %v1364_v36 }
 0x563   : > { %v1041_v21 = vpack.c.bf16 %v1040_v18, %v1039_v20 }
 0x565   : > { %1283 = vmatmul.msk.bf16.vlgmr.msra.gmra.mxu1 %vm1062_vm5, %v1041_v21 }
 0x5e2   : > { %v1075_v45 = vpop.f32.mrf.mxu1 }
 0x5e3   : > { %v1076_v24 = vadd.f32 %v1366_v44, %v1075_v45 }
 0x5e5   : > { %v1082_v46 = vadd.f32 %v1080_v22, %v1076_v24 }
 0x5e7   : > { %1084 = vst.msk [vmem:[%s420_s19] sm:$0xff] %vm1062_vm5, %v1082_v46 }
 0x5ea   : > { %v1077_v47 = vpop.f32.mrf.mxu1 }
 0x5eb   : > { %v1078_v63 = vadd.f32 %v1366_v44, %v1077_v47 }
 0x5ed   : > { %v1083_v0 = vadd.f32 %v1081_v61, %v1078_v63 }
 0x5ef   : > { %1085 = vst.msk [vmem:[%s420_s19 + $0x8] sm:$0xff] %vm1062_vm5, %v1083_v0 }
 0x5f0 PF: > { %s18_s23 = sadd.s32 1, %s1505_s23   ;;  %s1845_s21 = smov %s1501_s22 }
 0x5f1   : > { %p15_p8 = scmp.ge.s32.totalorder %s18_s23, 4   ;;  %s1846_s22 = smov %s1848_s25 }
 0x5f3   :  { %17 = sbr.rel (!%p15_p8) target bundleno = 3 (0x3), region = 109 }
 0x5f8   :  { %1116 = vsyncpa [#allocation6], 1 }
 0x5f9   :  { %1118 = vsyncpa [#allocation6 + $0x1], 1 }
 0x5fa   :  { %1119 = vsyncpa [#allocation8], 1 }

</bundles_post_ra>
